<compile_context>
chip_gen: v7x
topology: tpu7x:2x2x1
jax: 0.10.0
libtpu: 0.0.40
codegen_flags: <defaults>
</compile_context>

<pallas_src>
import functools

import jax
import jax.numpy as jnp
from jax import lax
from jax.experimental import pallas as pl
from jax.experimental.pallas import tpu as pltpu


def _split_channels(channels, num_groups):
    split = [channels // num_groups for _ in range(num_groups)]
    split[0] += channels - sum(split)
    return split


def _round_up(v, m):
    return (v + m - 1) // m * m


def _vmem_limits():
    """Generation-aware VMEM sizing.

    budget: target total pipelined working set used to pick block sizes
            (double-buffered in/out blocks + f32 halo scratch).
    limit : scoped-VMEM limit requested from the compiler.
    """
    try:
        cap = int(pltpu.get_tpu_info().vmem_capacity_bytes)
    except Exception:
        cap = 64 << 20  # conservative fallback (v7x per-TensorCore VMEM)
    limit = min(cap * 3 // 4, 96 << 20)      # ~48 MiB on v7x, ~96 MiB on v5e/v6e
    budget = min(limit * 2 // 3, 32 << 20)   # leave headroom for compiler scratch
    return int(budget), int(limit)


def _block_bytes(nb, cb, H, W, H_out, W_out, H_pad, W_pad, K, in_it, out_it):
    """Approximate VMEM footprint of one grid step (with double buffering)."""
    def tile(r, c, b):  # one (sublane, lane) tile padded to the (8, 128) layout
        return _round_up(max(r, 1), 8) * _round_up(max(c, 1), 128) * b
    return (2 * nb * H * tile(W, cb, in_it)             # input block (x2 buffers)
            + 2 * nb * H_out * tile(W_out, cb, out_it)  # output block (x2 buffers)
            + 2 * tile(K * K, cb, 4)                    # packed weights (x2)
            + nb * H_pad * tile(W_pad, cb, 4))          # f32 padded-input scratch


def _pick_blocks(N, C, H, W, H_out, W_out, pad, K, in_it, out_it, budget):
    """Choose (nb, cb, C_pad): lane-dense channel blocks that fit the budget and
    keep the grid >= 2 steps when possible (v7x has 2 TensorCores)."""
    H_pad, W_pad = H + 2 * pad, W + 2 * pad

    def fits(nb, cb):
        return _block_bytes(nb, cb, H, W, H_out, W_out, H_pad, W_pad, K,
                            in_it, out_it)

    # Channel block: full C if it fits (or C is small), else a multiple of 128.
    if C <= 128 or fits(1, C) <= budget:
        C_pad, cb = C, C
    else:
        C_pad = _round_up(C, 128)
        q = C_pad // 128
        d = q
        while d > 1 and (q % d != 0 or fits(1, 128 * d) > budget):
            d -= 1
        cb = 128 * d
    # TODO(synk): if even (nb=1, cb) overflows VMEM for huge spatial extents,
    # add grid-level H-strip tiling with a halo.

    # Batch block: largest divisor of N that fits the budget.
    nb = 1
    for cand in range(N, 0, -1):
        if N % cand == 0 and fits(cand, cb) <= budget:
            nb = cand
            break

    # Keep at least two grid steps so both v7x TensorCores get work.
    if (N // nb) * (C_pad // cb) < 2:
        if N > 1:
            for cand in range(N // 2, 0, -1):
                if N % cand == 0:
                    nb = cand
                    break
        elif cb == C_pad and C_pad % 256 == 0:
            cb = C_pad // 2

    return nb, cb, C_pad


def _pick_strip(nb, cb, W_out, H_out, target_bytes=64 << 10):
    """Rows per in-kernel H strip so the live f32 accumulator stays in vregs."""
    row_bytes = nb * _round_up(max(W_out, 1), 8) * _round_up(max(cb, 1), 128) * 4
    return int(max(1, min(H_out, target_bytes // max(row_bytes, 1))))


def _mdconv_kernel(x_ref, w_ref, o_ref, xpad_ref, *,
                   K, stride, pad, H, W, H_out, W_out, hs):
    # NHWC blocks: channels on the lane axis, W on the sublane axis.
    #   x_ref:    (nb, H, W, cb)          input block
    #   w_ref:    (K*K, cb)               fused zero-padded depthwise taps (f32)
    #   o_ref:    (nb, H_out, W_out, cb)  output block
    #   xpad_ref: (nb, H+2p, W+2p, cb)    f32 staging buffer with 'same' halo
    nb, cb = x_ref.shape[0], x_ref.shape[3]
    H_pad, W_pad = H + 2 * pad, W + 2 * pad
    f32 = jnp.float32

    # Stage the input once in f32; zero only the four halo strips.
    if pad > 0:
        xpad_ref[:, :pad, :, :] = jnp.zeros((nb, pad, W_pad, cb), f32)
        xpad_ref[:, pad + H:, :, :] = jnp.zeros((nb, pad, W_pad, cb), f32)
        xpad_ref[:, :, :pad, :] = jnp.zeros((nb, H_pad, pad, cb), f32)
        xpad_ref[:, :, pad + W:, :] = jnp.zeros((nb, H_pad, pad, cb), f32)
    xpad_ref[:, pad:pad + H, pad:pad + W, :] = x_ref[...].astype(f32)

    # Per-tap per-channel weights as lane vectors, loaded once.
    w_taps = [w_ref[t] for t in range(K * K)]

    def do_strip(ho0, hh):
        # Register accumulator: init from the first tap, += the rest, one store.
        acc = None
        for dh in range(K):
            for dw in range(K):
                if stride == 1:
                    patch = xpad_ref[:, pl.ds(ho0 + dh, hh),
                                     pl.ds(dw, W_out), :]
                else:
                    h_len = (hh - 1) * stride + 1
                    patch = xpad_ref[:, pl.ds(ho0 * stride + dh, h_len),
                                     pl.ds(dw, W_out, stride), :]
                    patch = patch[:, ::stride, :, :]  # decimate non-layout dim
                term = patch * w_taps[dh * K + dw]
                acc = term if acc is None else acc + term
        o_ref[:, pl.ds(ho0, hh), :, :] = acc.astype(o_ref.dtype)

    n_full, tail = H_out // hs, H_out % hs
    if n_full > 0:
        if n_full <= 4:
            for s in range(n_full):
                do_strip(s * hs, hs)
        else:
            def body(s, carry):
                do_strip(s * hs, hs)
                return carry
            lax.fori_loop(0, n_full, body, 0)
    if tail:
        do_strip(n_full * hs, tail)


def _mdconv_pallas(x_nchw, w_packed, K, stride):
    """Fused mixed depthwise conv.  x_nchw: (N, C, H, W); w_packed: (K*K, C)."""
    N, C, H, W = x_nchw.shape
    pad = K // 2
    H_out = (H + 2 * pad - K) // stride + 1
    W_out = (W + 2 * pad - K) // stride + 1
    H_pad, W_pad = H + 2 * pad, W + 2 * pad

    in_it = jnp.dtype(x_nchw.dtype).itemsize
    budget, vmem_limit = _vmem_limits()
    nb, cb, C_pad = _pick_blocks(N, C, H, W, H_out, W_out, pad, K,
                                 in_it, in_it, budget)
    hs = _pick_strip(nb, cb, W_out, H_out)

    # Lane-dense NHWC layout for the kernel (channels on the 128-lane axis).
    # TODO(synk): in a full network keep activations NHWC end-to-end instead of
    # transposing around every MDConv call.
    x_nhwc = jnp.transpose(x_nchw, (0, 2, 3, 1))
    w = w_packed
    if C_pad != C:
        x_nhwc = jnp.pad(x_nhwc, ((0, 0), (0, 0), (0, 0), (0, C_pad - C)))
        w = jnp.pad(w, ((0, 0), (0, C_pad - C)))

    kernel = functools.partial(
        _mdconv_kernel, K=K, stride=stride, pad=pad,
        H=H, W=W, H_out=H_out, W_out=W_out, hs=hs)

    y_nhwc = pl.pallas_call(
        kernel,
        out_shape=jax.ShapeDtypeStruct((N, H_out, W_out, C_pad), x_nchw.dtype),
        grid_spec=pltpu.PrefetchScalarGridSpec(
            num_scalar_prefetch=0,
            grid=(N // nb, C_pad // cb),
            in_specs=[
                pl.BlockSpec((nb, H, W, cb), lambda i, j: (i, 0, 0, j)),
                pl.BlockSpec((K * K, cb), lambda i, j: (0, j)),
            ],
            out_specs=pl.BlockSpec((nb, H_out, W_out, cb),
                                   lambda i, j: (i, 0, 0, j)),
            scratch_shapes=[
                pltpu.VMEM((nb, H_pad, W_pad, cb), jnp.float32),
            ],
        ),
        compiler_params=pltpu.CompilerParams(
            dimension_semantics=("parallel", "parallel"),
            vmem_limit_bytes=vmem_limit),
    )(x_nhwc, w)

    if C_pad != C:
        y_nhwc = y_nhwc[..., :C]
    return jnp.transpose(y_nhwc, (0, 3, 1, 2))


class MDConvPallas:
    """Mixed depthwise conv: channels split across groups, each group with its
    own (odd) kernel size.  Matches torch MDConv forward semantics (NCHW
    in/out), implemented as one fused Pallas depthwise pass."""

    def __init__(self, channels, kernel_size, stride, key):
        self.num_groups = len(kernel_size)
        self.split_channels = _split_channels(channels, self.num_groups)
        self.kernel_size = list(kernel_size)
        self.stride = stride
        assert all(k % 2 == 1 for k in self.kernel_size), \
            "MDConvPallas assumes odd kernel sizes ('same' padding = k//2)."
        self.K = max(self.kernel_size)

        # Reference __init__ zero-fills the weights (output would be trivially
        # zero); use small random weights so the kernel is exercised.
        self.weights = []
        for i in range(self.num_groups):
            key, sub = jax.random.split(key)
            k = self.kernel_size[i]
            cg = self.split_channels[i]
            self.weights.append(
                jax.random.normal(sub, (k, k, cg), dtype=jnp.float32) * 0.1)

        # Fuse all groups into one (C, K, K) depthwise filter (each group's
        # k x k kernel centered, zeros elsewhere), packed as (K*K, C) so each
        # tap's per-channel scale is a lane vector in the NHWC kernel.
        K = self.K
        w_full = jnp.zeros((channels, K, K), jnp.float32)
        c0 = 0
        for i in range(self.num_groups):
            k = self.kernel_size[i]
            cg = self.split_channels[i]
            off = (K - k) // 2
            wg = jnp.transpose(self.weights[i], (2, 0, 1))  # (cg, k, k)
            w_full = w_full.at[c0:c0 + cg, off:off + k, off:off + k].set(wg)
            c0 += cg
        self.w_packed = jnp.transpose(w_full, (1, 2, 0)).reshape(K * K, channels)

    def __call__(self, x_nchw):
        return _mdconv_pallas(x_nchw, self.w_packed, self.K, self.stride)


def _reference_depthwise(x_nchw, weights, split_channels, kernel_size, stride):
    """Pure-JAX reference: per-group lax.conv_general_dilated, then concat."""
    outs = []
    c0 = 0
    x = x_nchw.astype(jnp.float32)
    for i, cg in enumerate(split_channels):
        k = kernel_size[i]
        xg = x[:, c0:c0 + cg]                                     # (N, Cg, H, W)
        w = jnp.transpose(weights[i], (2, 0, 1))[:, None, :, :]   # OIHW, I=1
        pad = k // 2
        y = lax.conv_general_dilated(
            xg, w, window_strides=(stride, stride),
            padding=((pad, pad), (pad, pad)),
            dimension_numbers=("NCHW", "OIHW", "NCHW"),
            feature_group_count=cg)
        outs.append(y)
        c0 += cg
    return jnp.concatenate(outs, axis=1).astype(x_nchw.dtype)


if __name__ == "__main__":
    root = jax.random.PRNGKey(0)

    cases = [
        # (N, C, H, W, kernel_size, stride, dtype, tol)
        (2, 4, 16, 16, [3, 5], 1, jnp.float32, 1e-4),
        (2, 4, 16, 16, [3, 5], 2, jnp.float32, 1e-4),
        (2, 4, 16, 16, [3, 5], 1, jnp.bfloat16, 2e-2),
    ]
    for idx, (N, C, H, W, ks, stride, dtype, tol) in enumerate(cases):
        k_x, k_w = jax.random.split(jax.random.fold_in(root, idx))
        x = jax.random.normal(k_x, (N, C, H, W), dtype=jnp.float32).astype(dtype)

        mod = MDConvPallas(C, ks, stride, k_w)
        y = jax.block_until_ready(mod(x))

        y_ref = _reference_depthwise(x, mod.weights, mod.split_channels,
                                     ks, stride)
        assert y.shape == y_ref.shape, (idx, y.shape, y_ref.shape)
        assert jnp.allclose(y.astype(jnp.float32), y_ref.astype(jnp.float32),
                            atol=tol, rtol=tol), f"case {idx} mismatch"

    print("KERNEL_OK")
</pallas_src>

<mosaic_0001>
module attributes {stable_mosaic.version = 11 : i64} {
  func.func @_mdconv_kernel(%arg0: i32, %arg1: i32, %arg2: memref<1x16x16x4xf32, #tpu.memory_space<vmem>>, %arg3: memref<25x4xf32, #tpu.memory_space<vmem>>, %arg4: memref<1x16x16x4xf32, #tpu.memory_space<vmem>>, %arg5: memref<1x20x20x4xf32, #tpu.memory_space<vmem>>) attributes {dimension_semantics = [#tpu.dimension_semantics<parallel>, #tpu.dimension_semantics<parallel>], iteration_bounds = array<i64: 2, 1>, scalar_prefetch = 0 : i64, scratch_operands = 1 : i64, tpu.core_type = #tpu.core_type<tc>, window_params = [{transform_indices = @transform_0, window_bounds = array<i64: 1, 16, 16, 4>}, {transform_indices = @transform_1, window_bounds = array<i64: 25, 4>}, {transform_indices = @transform_2, window_bounds = array<i64: 1, 16, 16, 4>}]} {
    %cst = arith.constant 0.000000e+00 : f32
    %0 = vector.broadcast %cst : f32 to vector<1x2x20x4xf32>
    %c0 = arith.constant 0 : index
    %c0_0 = arith.constant 0 : index
    %c0_1 = arith.constant 0 : index
    %c0_2 = arith.constant 0 : index
    %1 = vector.load %arg5[%c0, %c0_0, %c0_1, %c0_2] : memref<1x20x20x4xf32, #tpu.memory_space<vmem>>, vector<1x2x20x4xf32>
    tpu.vector_store %arg5[%c0, %c0_0, %c0_1, %c0_2], %0 {strides = array<i32>} : memref<1x20x20x4xf32, #tpu.memory_space<vmem>>, vector<1x2x20x4xf32>,
    %cst_3 = arith.constant 0.000000e+00 : f32
    %2 = vector.broadcast %cst_3 : f32 to vector<1x2x20x4xf32>
    %c0_4 = arith.constant 0 : index
    %c18 = arith.constant 18 : index
    %c0_5 = arith.constant 0 : index
    %c0_6 = arith.constant 0 : index
    %3 = vector.load %arg5[%c0_4, %c18, %c0_5, %c0_6] : memref<1x20x20x4xf32, #tpu.memory_space<vmem>>, vector<1x2x20x4xf32>
    tpu.vector_store %arg5[%c0_4, %c18, %c0_5, %c0_6], %2 {strides = array<i32>} : memref<1x20x20x4xf32, #tpu.memory_space<vmem>>, vector<1x2x20x4xf32>,
    %cst_7 = arith.constant 0.000000e+00 : f32
    %4 = vector.broadcast %cst_7 : f32 to vector<1x20x2x4xf32>
    %c0_8 = arith.constant 0 : index
    %c0_9 = arith.constant 0 : index
    %c0_10 = arith.constant 0 : index
    %c0_11 = arith.constant 0 : index
    %5 = vector.load %arg5[%c0_8, %c0_9, %c0_10, %c0_11] : memref<1x20x20x4xf32, #tpu.memory_space<vmem>>, vector<1x20x2x4xf32>
    tpu.vector_store %arg5[%c0_8, %c0_9, %c0_10, %c0_11], %4 {strides = array<i32>} : memref<1x20x20x4xf32, #tpu.memory_space<vmem>>, vector<1x20x2x4xf32>,
    %cst_12 = arith.constant 0.000000e+00 : f32
    %6 = vector.broadcast %cst_12 : f32 to vector<1x20x2x4xf32>
    %c0_13 = arith.constant 0 : index
    %c0_14 = arith.constant 0 : index
    %c18_15 = arith.constant 18 : index
    %c0_16 = arith.constant 0 : index
    %7 = vector.load %arg5[%c0_13, %c0_14, %c18_15, %c0_16] : memref<1x20x20x4xf32, #tpu.memory_space<vmem>>, vector<1x20x2x4xf32>
    tpu.vector_store %arg5[%c0_13, %c0_14, %c18_15, %c0_16], %6 {strides = array<i32>} : memref<1x20x20x4xf32, #tpu.memory_space<vmem>>, vector<1x20x2x4xf32>,
    %c0_17 = arith.constant 0 : index
    %c0_18 = arith.constant 0 : index
    %c0_19 = arith.constant 0 : index
    %c0_20 = arith.constant 0 : index
    %8 = vector.load %arg2[%c0_17, %c0_18, %c0_19, %c0_20] : memref<1x16x16x4xf32, #tpu.memory_space<vmem>>, vector<1x16x16x4xf32>
    %c0_21 = arith.constant 0 : index
    %c2 = arith.constant 2 : index
    %c2_22 = arith.constant 2 : index
    %c0_23 = arith.constant 0 : index
    %9 = vector.load %arg5[%c0_21, %c2, %c2_22, %c0_23] : memref<1x20x20x4xf32, #tpu.memory_space<vmem>>, vector<1x16x16x4xf32>
    tpu.vector_store %arg5[%c0_21, %c2, %c2_22, %c0_23], %8 {strides = array<i32>} : memref<1x20x20x4xf32, #tpu.memory_space<vmem>>, vector<1x16x16x4xf32>,
    %c0_24 = arith.constant 0 : index
    %c0_25 = arith.constant 0 : index
    %10 = vector.load %arg3[%c0_24, %c0_25] : memref<25x4xf32, #tpu.memory_space<vmem>>, vector<1x4xf32>
    %11 = vector.shape_cast %10 : vector<1x4xf32> to vector<4xf32>
    %c1 = arith.constant 1 : index
    %c0_26 = arith.constant 0 : index
    %12 = vector.load %arg3[%c1, %c0_26] : memref<25x4xf32, #tpu.memory_space<vmem>>, vector<1x4xf32>
    %13 = vector.shape_cast %12 : vector<1x4xf32> to vector<4xf32>
    %c2_27 = arith.constant 2 : index
    %c0_28 = arith.constant 0 : index
    %14 = vector.load %arg3[%c2_27, %c0_28] : memref<25x4xf32, #tpu.memory_space<vmem>>, vector<1x4xf32>
    %15 = vector.shape_cast %14 : vector<1x4xf32> to vector<4xf32>
    %c3 = arith.constant 3 : index
    %c0_29 = arith.constant 0 : index
    %16 = vector.load %arg3[%c3, %c0_29] : memref<25x4xf32, #tpu.memory_space<vmem>>, vector<1x4xf32>
    %17 = vector.shape_cast %16 : vector<1x4xf32> to vector<4xf32>
    %c4 = arith.constant 4 : index
    %c0_30 = arith.constant 0 : index
    %18 = vector.load %arg3[%c4, %c0_30] : memref<25x4xf32, #tpu.memory_space<vmem>>, vector<1x4xf32>
    %19 = vector.shape_cast %18 : vector<1x4xf32> to vector<4xf32>
    %c5 = arith.constant 5 : index
    %c0_31 = arith.constant 0 : index
    %20 = vector.load %arg3[%c5, %c0_31] : memref<25x4xf32, #tpu.memory_space<vmem>>, vector<1x4xf32>
    %21 = vector.shape_cast %20 : vector<1x4xf32> to vector<4xf32>
    %c6 = arith.constant 6 : index
    %c0_32 = arith.constant 0 : index
    %22 = vector.load %arg3[%c6, %c0_32] : memref<25x4xf32, #tpu.memory_space<vmem>>, vector<1x4xf32>
    %23 = vector.shape_cast %22 : vector<1x4xf32> to vector<4xf32>
    %c7 = arith.constant 7 : index
    %c0_33 = arith.constant 0 : index
    %24 = vector.load %arg3[%c7, %c0_33] : memref<25x4xf32, #tpu.memory_space<vmem>>, vector<1x4xf32>
    %25 = vector.shape_cast %24 : vector<1x4xf32> to vector<4xf32>
    %c8 = arith.constant 8 : index
    %c0_34 = arith.constant 0 : index
    %26 = vector.load %arg3[%c8, %c0_34] : memref<25x4xf32, #tpu.memory_space<vmem>>, vector<1x4xf32>
    %27 = vector.shape_cast %26 : vector<1x4xf32> to vector<4xf32>
    %c9 = arith.constant 9 : index
    %c0_35 = arith.constant 0 : index
    %28 = vector.load %arg3[%c9, %c0_35] : memref<25x4xf32, #tpu.memory_space<vmem>>, vector<1x4xf32>
    %29 = vector.shape_cast %28 : vector<1x4xf32> to vector<4xf32>
    %c10 = arith.constant 10 : index
    %c0_36 = arith.constant 0 : index
    %30 = vector.load %arg3[%c10, %c0_36] : memref<25x4xf32, #tpu.memory_space<vmem>>, vector<1x4xf32>
    %31 = vector.shape_cast %30 : vector<1x4xf32> to vector<4xf32>
    %c11 = arith.constant 11 : index
    %c0_37 = arith.constant 0 : index
    %32 = vector.load %arg3[%c11, %c0_37] : memref<25x4xf32, #tpu.memory_space<vmem>>, vector<1x4xf32>
    %33 = vector.shape_cast %32 : vector<1x4xf32> to vector<4xf32>
    %c12 = arith.constant 12 : index
    %c0_38 = arith.constant 0 : index
    %34 = vector.load %arg3[%c12, %c0_38] : memref<25x4xf32, #tpu.memory_space<vmem>>, vector<1x4xf32>
    %35 = vector.shape_cast %34 : vector<1x4xf32> to vector<4xf32>
    %c13 = arith.constant 13 : index
    %c0_39 = arith.constant 0 : index
    %36 = vector.load %arg3[%c13, %c0_39] : memref<25x4xf32, #tpu.memory_space<vmem>>, vector<1x4xf32>
    %37 = vector.shape_cast %36 : vector<1x4xf32> to vector<4xf32>
    %c14 = arith.constant 14 : index
    %c0_40 = arith.constant 0 : index
    %38 = vector.load %arg3[%c14, %c0_40] : memref<25x4xf32, #tpu.memory_space<vmem>>, vector<1x4xf32>
    %39 = vector.shape_cast %38 : vector<1x4xf32> to vector<4xf32>
    %c15 = arith.constant 15 : index
    %c0_41 = arith.constant 0 : index
    %40 = vector.load %arg3[%c15, %c0_41] : memref<25x4xf32, #tpu.memory_space<vmem>>, vector<1x4xf32>
    %41 = vector.shape_cast %40 : vector<1x4xf32> to vector<4xf32>
    %c16 = arith.constant 16 : index
    %c0_42 = arith.constant 0 : index
    %42 = vector.load %arg3[%c16, %c0_42] : memref<25x4xf32, #tpu.memory_space<vmem>>, vector<1x4xf32>
    %43 = vector.shape_cast %42 : vector<1x4xf32> to vector<4xf32>
    %c17 = arith.constant 17 : index
    %c0_43 = arith.constant 0 : index
    %44 = vector.load %arg3[%c17, %c0_43] : memref<25x4xf32, #tpu.memory_space<vmem>>, vector<1x4xf32>
    %45 = vector.shape_cast %44 : vector<1x4xf32> to vector<4xf32>
    %c18_44 = arith.constant 18 : index
    %c0_45 = arith.constant 0 : index
    %46 = vector.load %arg3[%c18_44, %c0_45] : memref<25x4xf32, #tpu.memory_space<vmem>>, vector<1x4xf32>
    %47 = vector.shape_cast %46 : vector<1x4xf32> to vector<4xf32>
    %c19 = arith.constant 19 : index
    %c0_46 = arith.constant 0 : index
    %48 = vector.load %arg3[%c19, %c0_46] : memref<25x4xf32, #tpu.memory_space<vmem>>, vector<1x4xf32>
    %49 = vector.shape_cast %48 : vector<1x4xf32> to vector<4xf32>
    %c20 = arith.constant 20 : index
    %c0_47 = arith.constant 0 : index
    %50 = vector.load %arg3[%c20, %c0_47] : memref<25x4xf32, #tpu.memory_space<vmem>>, vector<1x4xf32>
    %51 = vector.shape_cast %50 : vector<1x4xf32> to vector<4xf32>
    %c21 = arith.constant 21 : index
    %c0_48 = arith.constant 0 : index
    %52 = vector.load %arg3[%c21, %c0_48] : memref<25x4xf32, #tpu.memory_space<vmem>>, vector<1x4xf32>
    %53 = vector.shape_cast %52 : vector<1x4xf32> to vector<4xf32>
    %c22 = arith.constant 22 : index
    %c0_49 = arith.constant 0 : index
    %54 = vector.load %arg3[%c22, %c0_49] : memref<25x4xf32, #tpu.memory_space<vmem>>, vector<1x4xf32>
    %55 = vector.shape_cast %54 : vector<1x4xf32> to vector<4xf32>
    %c23 = arith.constant 23 : index
    %c0_50 = arith.constant 0 : index
    %56 = vector.load %arg3[%c23, %c0_50] : memref<25x4xf32, #tpu.memory_space<vmem>>, vector<1x4xf32>
    %57 = vector.shape_cast %56 : vector<1x4xf32> to vector<4xf32>
    %c24 = arith.constant 24 : index
    %c0_51 = arith.constant 0 : index
    %58 = vector.load %arg3[%c24, %c0_51] : memref<25x4xf32, #tpu.memory_space<vmem>>, vector<1x4xf32>
    %59 = vector.shape_cast %58 : vector<1x4xf32> to vector<4xf32>
    %c0_52 = arith.constant 0 : index
    %c0_53 = arith.constant 0 : index
    %c0_54 = arith.constant 0 : index
    %c0_55 = arith.constant 0 : index
    %60 = vector.load %arg5[%c0_52, %c0_53, %c0_54, %c0_55] : memref<1x20x20x4xf32, #tpu.memory_space<vmem>>, vector<1x8x16x4xf32>
    %61 = vector.shape_cast %11 : vector<4xf32> to vector<1x1x1x4xf32>
    %62 = vector.broadcast %61 : vector<1x1x1x4xf32> to vector<1x8x16x4xf32>
    %63 = arith.mulf %60, %62 : vector<1x8x16x4xf32>
    %c0_56 = arith.constant 0 : index
    %c0_57 = arith.constant 0 : index
    %c1_58 = arith.constant 1 : index
    %c0_59 = arith.constant 0 : index
    %64 = vector.load %arg5[%c0_56, %c0_57, %c1_58, %c0_59] : memref<1x20x20x4xf32, #tpu.memory_space<vmem>>, vector<1x8x16x4xf32>
    %65 = vector.shape_cast %13 : vector<4xf32> to vector<1x1x1x4xf32>
    %66 = vector.broadcast %65 : vector<1x1x1x4xf32> to vector<1x8x16x4xf32>
    %67 = arith.mulf %64, %66 : vector<1x8x16x4xf32>
    %68 = arith.addf %63, %67 : vector<1x8x16x4xf32>
    %c0_60 = arith.constant 0 : index
    %c0_61 = arith.constant 0 : index
    %c2_62 = arith.constant 2 : index
    %c0_63 = arith.constant 0 : index
    %69 = vector.load %arg5[%c0_60, %c0_61, %c2_62, %c0_63] : memref<1x20x20x4xf32, #tpu.memory_space<vmem>>, vector<1x8x16x4xf32>
    %70 = vector.shape_cast %15 : vector<4xf32> to vector<1x1x1x4xf32>
    %71 = vector.broadcast %70 : vector<1x1x1x4xf32> to vector<1x8x16x4xf32>
    %72 = arith.mulf %69, %71 : vector<1x8x16x4xf32>
    %73 = arith.addf %68, %72 : vector<1x8x16x4xf32>
    %c0_64 = arith.constant 0 : index
    %c0_65 = arith.constant 0 : index
    %c3_66 = arith.constant 3 : index
    %c0_67 = arith.constant 0 : index
    %74 = vector.load %arg5[%c0_64, %c0_65, %c3_66, %c0_67] : memref<1x20x20x4xf32, #tpu.memory_space<vmem>>, vector<1x8x16x4xf32>
    %75 = vector.shape_cast %17 : vector<4xf32> to vector<1x1x1x4xf32>
    %76 = vector.broadcast %75 : vector<1x1x1x4xf32> to vector<1x8x16x4xf32>
    %77 = arith.mulf %74, %76 : vector<1x8x16x4xf32>
    %78 = arith.addf %73, %77 : vector<1x8x16x4xf32>
    %c0_68 = arith.constant 0 : index
    %c0_69 = arith.constant 0 : index
    %c4_70 = arith.constant 4 : index
    %c0_71 = arith.constant 0 : index
    %79 = vector.load %arg5[%c0_68, %c0_69, %c4_70, %c0_71] : memref<1x20x20x4xf32, #tpu.memory_space<vmem>>, vector<1x8x16x4xf32>
    %80 = vector.shape_cast %19 : vector<4xf32> to vector<1x1x1x4xf32>
    %81 = vector.broadcast %80 : vector<1x1x1x4xf32> to vector<1x8x16x4xf32>
    %82 = arith.mulf %79, %81 : vector<1x8x16x4xf32>
    %83 = arith.addf %78, %82 : vector<1x8x16x4xf32>
    %c0_72 = arith.constant 0 : index
    %c1_73 = arith.constant 1 : index
    %c0_74 = arith.constant 0 : index
    %c0_75 = arith.constant 0 : index
    %84 = vector.load %arg5[%c0_72, %c1_73, %c0_74, %c0_75] : memref<1x20x20x4xf32, #tpu.memory_space<vmem>>, vector<1x8x16x4xf32>
    %85 = vector.shape_cast %21 : vector<4xf32> to vector<1x1x1x4xf32>
    %86 = vector.broadcast %85 : vector<1x1x1x4xf32> to vector<1x8x16x4xf32>
    %87 = arith.mulf %84, %86 : vector<1x8x16x4xf32>
    %88 = arith.addf %83, %87 : vector<1x8x16x4xf32>
    %c0_76 = arith.constant 0 : index
    %c1_77 = arith.constant 1 : index
    %c1_78 = arith.constant 1 : index
    %c0_79 = arith.constant 0 : index
    %89 = vector.load %arg5[%c0_76, %c1_77, %c1_78, %c0_79] : memref<1x20x20x4xf32, #tpu.memory_space<vmem>>, vector<1x8x16x4xf32>
    %90 = vector.shape_cast %23 : vector<4xf32> to vector<1x1x1x4xf32>
    %91 = vector.broadcast %90 : vector<1x1x1x4xf32> to vector<1x8x16x4xf32>
    %92 = arith.mulf %89, %91 : vector<1x8x16x4xf32>
    %93 = arith.addf %88, %92 : vector<1x8x16x4xf32>
    %c0_80 = arith.constant 0 : index
    %c1_81 = arith.constant 1 : index
    %c2_82 = arith.constant 2 : index
    %c0_83 = arith.constant 0 : index
    %94 = vector.load %arg5[%c0_80, %c1_81, %c2_82, %c0_83] : memref<1x20x20x4xf32, #tpu.memory_space<vmem>>, vector<1x8x16x4xf32>
    %95 = vector.shape_cast %25 : vector<4xf32> to vector<1x1x1x4xf32>
    %96 = vector.broadcast %95 : vector<1x1x1x4xf32> to vector<1x8x16x4xf32>
    %97 = arith.mulf %94, %96 : vector<1x8x16x4xf32>
    %98 = arith.addf %93, %97 : vector<1x8x16x4xf32>
    %c0_84 = arith.constant 0 : index
    %c1_85 = arith.constant 1 : index
    %c3_86 = arith.constant 3 : index
    %c0_87 = arith.constant 0 : index
    %99 = vector.load %arg5[%c0_84, %c1_85, %c3_86, %c0_87] : memref<1x20x20x4xf32, #tpu.memory_space<vmem>>, vector<1x8x16x4xf32>
    %100 = vector.shape_cast %27 : vector<4xf32> to vector<1x1x1x4xf32>
    %101 = vector.broadcast %100 : vector<1x1x1x4xf32> to vector<1x8x16x4xf32>
    %102 = arith.mulf %99, %101 : vector<1x8x16x4xf32>
    %103 = arith.addf %98, %102 : vector<1x8x16x4xf32>
    %c0_88 = arith.constant 0 : index
    %c1_89 = arith.constant 1 : index
    %c4_90 = arith.constant 4 : index
    %c0_91 = arith.constant 0 : index
    %104 = vector.load %arg5[%c0_88, %c1_89, %c4_90, %c0_91] : memref<1x20x20x4xf32, #tpu.memory_space<vmem>>, vector<1x8x16x4xf32>
    %105 = vector.shape_cast %29 : vector<4xf32> to vector<1x1x1x4xf32>
    %106 = vector.broadcast %105 : vector<1x1x1x4xf32> to vector<1x8x16x4xf32>
    %107 = arith.mulf %104, %106 : vector<1x8x16x4xf32>
    %108 = arith.addf %103, %107 : vector<1x8x16x4xf32>
    %c0_92 = arith.constant 0 : index
    %c2_93 = arith.constant 2 : index
    %c0_94 = arith.constant 0 : index
    %c0_95 = arith.constant 0 : index
    %109 = vector.load %arg5[%c0_92, %c2_93, %c0_94, %c0_95] : memref<1x20x20x4xf32, #tpu.memory_space<vmem>>, vector<1x8x16x4xf32>
    %110 = vector.shape_cast %31 : vector<4xf32> to vector<1x1x1x4xf32>
    %111 = vector.broadcast %110 : vector<1x1x1x4xf32> to vector<1x8x16x4xf32>
    %112 = arith.mulf %109, %111 : vector<1x8x16x4xf32>
    %113 = arith.addf %108, %112 : vector<1x8x16x4xf32>
    %c0_96 = arith.constant 0 : index
    %c2_97 = arith.constant 2 : index
    %c1_98 = arith.constant 1 : index
    %c0_99 = arith.constant 0 : index
    %114 = vector.load %arg5[%c0_96, %c2_97, %c1_98, %c0_99] : memref<1x20x20x4xf32, #tpu.memory_space<vmem>>, vector<1x8x16x4xf32>
    %115 = vector.shape_cast %33 : vector<4xf32> to vector<1x1x1x4xf32>
    %116 = vector.broadcast %115 : vector<1x1x1x4xf32> to vector<1x8x16x4xf32>
    %117 = arith.mulf %114, %116 : vector<1x8x16x4xf32>
    %118 = arith.addf %113, %117 : vector<1x8x16x4xf32>
    %c0_100 = arith.constant 0 : index
    %c2_101 = arith.constant 2 : index
    %c2_102 = arith.constant 2 : index
    %c0_103 = arith.constant 0 : index
    %119 = vector.load %arg5[%c0_100, %c2_101, %c2_102, %c0_103] : memref<1x20x20x4xf32, #tpu.memory_space<vmem>>, vector<1x8x16x4xf32>
    %120 = vector.shape_cast %35 : vector<4xf32> to vector<1x1x1x4xf32>
    %121 = vector.broadcast %120 : vector<1x1x1x4xf32> to vector<1x8x16x4xf32>
    %122 = arith.mulf %119, %121 : vector<1x8x16x4xf32>
    %123 = arith.addf %118, %122 : vector<1x8x16x4xf32>
    %c0_104 = arith.constant 0 : index
    %c2_105 = arith.constant 2 : index
    %c3_106 = arith.constant 3 : index
    %c0_107 = arith.constant 0 : index
    %124 = vector.load %arg5[%c0_104, %c2_105, %c3_106, %c0_107] : memref<1x20x20x4xf32, #tpu.memory_space<vmem>>, vector<1x8x16x4xf32>
    %125 = vector.shape_cast %37 : vector<4xf32> to vector<1x1x1x4xf32>
    %126 = vector.broadcast %125 : vector<1x1x1x4xf32> to vector<1x8x16x4xf32>
    %127 = arith.mulf %124, %126 : vector<1x8x16x4xf32>
    %128 = arith.addf %123, %127 : vector<1x8x16x4xf32>
    %c0_108 = arith.constant 0 : index
    %c2_109 = arith.constant 2 : index
    %c4_110 = arith.constant 4 : index
    %c0_111 = arith.constant 0 : index
    %129 = vector.load %arg5[%c0_108, %c2_109, %c4_110, %c0_111] : memref<1x20x20x4xf32, #tpu.memory_space<vmem>>, vector<1x8x16x4xf32>
    %130 = vector.shape_cast %39 : vector<4xf32> to vector<1x1x1x4xf32>
    %131 = vector.broadcast %130 : vector<1x1x1x4xf32> to vector<1x8x16x4xf32>
    %132 = arith.mulf %129, %131 : vector<1x8x16x4xf32>
    %133 = arith.addf %128, %132 : vector<1x8x16x4xf32>
    %c0_112 = arith.constant 0 : index
    %c3_113 = arith.constant 3 : index
    %c0_114 = arith.constant 0 : index
    %c0_115 = arith.constant 0 : index
    %134 = vector.load %arg5[%c0_112, %c3_113, %c0_114, %c0_115] : memref<1x20x20x4xf32, #tpu.memory_space<vmem>>, vector<1x8x16x4xf32>
    %135 = vector.shape_cast %41 : vector<4xf32> to vector<1x1x1x4xf32>
    %136 = vector.broadcast %135 : vector<1x1x1x4xf32> to vector<1x8x16x4xf32>
    %137 = arith.mulf %134, %136 : vector<1x8x16x4xf32>
    %138 = arith.addf %133, %137 : vector<1x8x16x4xf32>
    %c0_116 = arith.constant 0 : index
    %c3_117 = arith.constant 3 : index
    %c1_118 = arith.constant 1 : index
    %c0_119 = arith.constant 0 : index
    %139 = vector.load %arg5[%c0_116, %c3_117, %c1_118, %c0_119] : memref<1x20x20x4xf32, #tpu.memory_space<vmem>>, vector<1x8x16x4xf32>
    %140 = vector.shape_cast %43 : vector<4xf32> to vector<1x1x1x4xf32>
    %141 = vector.broadcast %140 : vector<1x1x1x4xf32> to vector<1x8x16x4xf32>
    %142 = arith.mulf %139, %141 : vector<1x8x16x4xf32>
    %143 = arith.addf %138, %142 : vector<1x8x16x4xf32>
    %c0_120 = arith.constant 0 : index
    %c3_121 = arith.constant 3 : index
    %c2_122 = arith.constant 2 : index
    %c0_123 = arith.constant 0 : index
    %144 = vector.load %arg5[%c0_120, %c3_121, %c2_122, %c0_123] : memref<1x20x20x4xf32, #tpu.memory_space<vmem>>, vector<1x8x16x4xf32>
    %145 = vector.shape_cast %45 : vector<4xf32> to vector<1x1x1x4xf32>
    %146 = vector.broadcast %145 : vector<1x1x1x4xf32> to vector<1x8x16x4xf32>
    %147 = arith.mulf %144, %146 : vector<1x8x16x4xf32>
    %148 = arith.addf %143, %147 : vector<1x8x16x4xf32>
    %c0_124 = arith.constant 0 : index
    %c3_125 = arith.constant 3 : index
    %c3_126 = arith.constant 3 : index
    %c0_127 = arith.constant 0 : index
    %149 = vector.load %arg5[%c0_124, %c3_125, %c3_126, %c0_127] : memref<1x20x20x4xf32, #tpu.memory_space<vmem>>, vector<1x8x16x4xf32>
    %150 = vector.shape_cast %47 : vector<4xf32> to vector<1x1x1x4xf32>
    %151 = vector.broadcast %150 : vector<1x1x1x4xf32> to vector<1x8x16x4xf32>
    %152 = arith.mulf %149, %151 : vector<1x8x16x4xf32>
    %153 = arith.addf %148, %152 : vector<1x8x16x4xf32>
    %c0_128 = arith.constant 0 : index
    %c3_129 = arith.constant 3 : index
    %c4_130 = arith.constant 4 : index
    %c0_131 = arith.constant 0 : index
    %154 = vector.load %arg5[%c0_128, %c3_129, %c4_130, %c0_131] : memref<1x20x20x4xf32, #tpu.memory_space<vmem>>, vector<1x8x16x4xf32>
    %155 = vector.shape_cast %49 : vector<4xf32> to vector<1x1x1x4xf32>
    %156 = vector.broadcast %155 : vector<1x1x1x4xf32> to vector<1x8x16x4xf32>
    %157 = arith.mulf %154, %156 : vector<1x8x16x4xf32>
    %158 = arith.addf %153, %157 : vector<1x8x16x4xf32>
    %c0_132 = arith.constant 0 : index
    %c4_133 = arith.constant 4 : index
    %c0_134 = arith.constant 0 : index
    %c0_135 = arith.constant 0 : index
    %159 = vector.load %arg5[%c0_132, %c4_133, %c0_134, %c0_135] : memref<1x20x20x4xf32, #tpu.memory_space<vmem>>, vector<1x8x16x4xf32>
    %160 = vector.shape_cast %51 : vector<4xf32> to vector<1x1x1x4xf32>
    %161 = vector.broadcast %160 : vector<1x1x1x4xf32> to vector<1x8x16x4xf32>
    %162 = arith.mulf %159, %161 : vector<1x8x16x4xf32>
    %163 = arith.addf %158, %162 : vector<1x8x16x4xf32>
    %c0_136 = arith.constant 0 : index
    %c4_137 = arith.constant 4 : index
    %c1_138 = arith.constant 1 : index
    %c0_139 = arith.constant 0 : index
    %164 = vector.load %arg5[%c0_136, %c4_137, %c1_138, %c0_139] : memref<1x20x20x4xf32, #tpu.memory_space<vmem>>, vector<1x8x16x4xf32>
    %165 = vector.shape_cast %53 : vector<4xf32> to vector<1x1x1x4xf32>
    %166 = vector.broadcast %165 : vector<1x1x1x4xf32> to vector<1x8x16x4xf32>
    %167 = arith.mulf %164, %166 : vector<1x8x16x4xf32>
    %168 = arith.addf %163, %167 : vector<1x8x16x4xf32>
    %c0_140 = arith.constant 0 : index
    %c4_141 = arith.constant 4 : index
    %c2_142 = arith.constant 2 : index
    %c0_143 = arith.constant 0 : index
    %169 = vector.load %arg5[%c0_140, %c4_141, %c2_142, %c0_143] : memref<1x20x20x4xf32, #tpu.memory_space<vmem>>, vector<1x8x16x4xf32>
    %170 = vector.shape_cast %55 : vector<4xf32> to vector<1x1x1x4xf32>
    %171 = vector.broadcast %170 : vector<1x1x1x4xf32> to vector<1x8x16x4xf32>
    %172 = arith.mulf %169, %171 : vector<1x8x16x4xf32>
    %173 = arith.addf %168, %172 : vector<1x8x16x4xf32>
    %c0_144 = arith.constant 0 : index
    %c4_145 = arith.constant 4 : index
    %c3_146 = arith.constant 3 : index
    %c0_147 = arith.constant 0 : index
    %174 = vector.load %arg5[%c0_144, %c4_145, %c3_146, %c0_147] : memref<1x20x20x4xf32, #tpu.memory_space<vmem>>, vector<1x8x16x4xf32>
    %175 = vector.shape_cast %57 : vector<4xf32> to vector<1x1x1x4xf32>
    %176 = vector.broadcast %175 : vector<1x1x1x4xf32> to vector<1x8x16x4xf32>
    %177 = arith.mulf %174, %176 : vector<1x8x16x4xf32>
    %178 = arith.addf %173, %177 : vector<1x8x16x4xf32>
    %c0_148 = arith.constant 0 : index
    %c4_149 = arith.constant 4 : index
    %c4_150 = arith.constant 4 : index
    %c0_151 = arith.constant 0 : index
    %179 = vector.load %arg5[%c0_148, %c4_149, %c4_150, %c0_151] : memref<1x20x20x4xf32, #tpu.memory_space<vmem>>, vector<1x8x16x4xf32>
    %180 = vector.shape_cast %59 : vector<4xf32> to vector<1x1x1x4xf32>
    %181 = vector.broadcast %180 : vector<1x1x1x4xf32> to vector<1x8x16x4xf32>
    %182 = arith.mulf %179, %181 : vector<1x8x16x4xf32>
    %183 = arith.addf %178, %182 : vector<1x8x16x4xf32>
    %c0_152 = arith.constant 0 : index
    %c0_153 = arith.constant 0 : index
    %c0_154 = arith.constant 0 : index
    %c0_155 = arith.constant 0 : index
    %184 = vector.load %arg4[%c0_152, %c0_153, %c0_154, %c0_155] : memref<1x16x16x4xf32, #tpu.memory_space<vmem>>, vector<1x8x16x4xf32>
    tpu.vector_store %arg4[%c0_152, %c0_153, %c0_154, %c0_155], %183 {strides = array<i32>} : memref<1x16x16x4xf32, #tpu.memory_space<vmem>>, vector<1x8x16x4xf32>,
    %c0_156 = arith.constant 0 : index
    %c8_157 = arith.constant 8 : index
    %c0_158 = arith.constant 0 : index
    %c0_159 = arith.constant 0 : index
    %185 = vector.load %arg5[%c0_156, %c8_157, %c0_158, %c0_159] : memref<1x20x20x4xf32, #tpu.memory_space<vmem>>, vector<1x8x16x4xf32>
    %186 = vector.shape_cast %11 : vector<4xf32> to vector<1x1x1x4xf32>
    %187 = vector.broadcast %186 : vector<1x1x1x4xf32> to vector<1x8x16x4xf32>
    %188 = arith.mulf %185, %187 : vector<1x8x16x4xf32>
    %c0_160 = arith.constant 0 : index
    %c8_161 = arith.constant 8 : index
    %c1_162 = arith.constant 1 : index
    %c0_163 = arith.constant 0 : index
    %189 = vector.load %arg5[%c0_160, %c8_161, %c1_162, %c0_163] : memref<1x20x20x4xf32, #tpu.memory_space<vmem>>, vector<1x8x16x4xf32>
    %190 = vector.shape_cast %13 : vector<4xf32> to vector<1x1x1x4xf32>
    %191 = vector.broadcast %190 : vector<1x1x1x4xf32> to vector<1x8x16x4xf32>
    %192 = arith.mulf %189, %191 : vector<1x8x16x4xf32>
    %193 = arith.addf %188, %192 : vector<1x8x16x4xf32>
    %c0_164 = arith.constant 0 : index
    %c8_165 = arith.constant 8 : index
    %c2_166 = arith.constant 2 : index
    %c0_167 = arith.constant 0 : index
    %194 = vector.load %arg5[%c0_164, %c8_165, %c2_166, %c0_167] : memref<1x20x20x4xf32, #tpu.memory_space<vmem>>, vector<1x8x16x4xf32>
    %195 = vector.shape_cast %15 : vector<4xf32> to vector<1x1x1x4xf32>
    %196 = vector.broadcast %195 : vector<1x1x1x4xf32> to vector<1x8x16x4xf32>
    %197 = arith.mulf %194, %196 : vector<1x8x16x4xf32>
    %198 = arith.addf %193, %197 : vector<1x8x16x4xf32>
    %c0_168 = arith.constant 0 : index
    %c8_169 = arith.constant 8 : index
    %c3_170 = arith.constant 3 : index
    %c0_171 = arith.constant 0 : index
    %199 = vector.load %arg5[%c0_168, %c8_169, %c3_170, %c0_171] : memref<1x20x20x4xf32, #tpu.memory_space<vmem>>, vector<1x8x16x4xf32>
    %200 = vector.shape_cast %17 : vector<4xf32> to vector<1x1x1x4xf32>
    %201 = vector.broadcast %200 : vector<1x1x1x4xf32> to vector<1x8x16x4xf32>
    %202 = arith.mulf %199, %201 : vector<1x8x16x4xf32>
    %203 = arith.addf %198, %202 : vector<1x8x16x4xf32>
    %c0_172 = arith.constant 0 : index
    %c8_173 = arith.constant 8 : index
    %c4_174 = arith.constant 4 : index
    %c0_175 = arith.constant 0 : index
    %204 = vector.load %arg5[%c0_172, %c8_173, %c4_174, %c0_175] : memref<1x20x20x4xf32, #tpu.memory_space<vmem>>, vector<1x8x16x4xf32>
    %205 = vector.shape_cast %19 : vector<4xf32> to vector<1x1x1x4xf32>
    %206 = vector.broadcast %205 : vector<1x1x1x4xf32> to vector<1x8x16x4xf32>
    %207 = arith.mulf %204, %206 : vector<1x8x16x4xf32>
    %208 = arith.addf %203, %207 : vector<1x8x16x4xf32>
    %c0_176 = arith.constant 0 : index
    %c9_177 = arith.constant 9 : index
    %c0_178 = arith.constant 0 : index
    %c0_179 = arith.constant 0 : index
    %209 = vector.load %arg5[%c0_176, %c9_177, %c0_178, %c0_179] : memref<1x20x20x4xf32, #tpu.memory_space<vmem>>, vector<1x8x16x4xf32>
    %210 = vector.shape_cast %21 : vector<4xf32> to vector<1x1x1x4xf32>
    %211 = vector.broadcast %210 : vector<1x1x1x4xf32> to vector<1x8x16x4xf32>
    %212 = arith.mulf %209, %211 : vector<1x8x16x4xf32>
    %213 = arith.addf %208, %212 : vector<1x8x16x4xf32>
    %c0_180 = arith.constant 0 : index
    %c9_181 = arith.constant 9 : index
    %c1_182 = arith.constant 1 : index
    %c0_183 = arith.constant 0 : index
    %214 = vector.load %arg5[%c0_180, %c9_181, %c1_182, %c0_183] : memref<1x20x20x4xf32, #tpu.memory_space<vmem>>, vector<1x8x16x4xf32>
    %215 = vector.shape_cast %23 : vector<4xf32> to vector<1x1x1x4xf32>
    %216 = vector.broadcast %215 : vector<1x1x1x4xf32> to vector<1x8x16x4xf32>
    %217 = arith.mulf %214, %216 : vector<1x8x16x4xf32>
    %218 = arith.addf %213, %217 : vector<1x8x16x4xf32>
    %c0_184 = arith.constant 0 : index
    %c9_185 = arith.constant 9 : index
    %c2_186 = arith.constant 2 : index
    %c0_187 = arith.constant 0 : index
    %219 = vector.load %arg5[%c0_184, %c9_185, %c2_186, %c0_187] : memref<1x20x20x4xf32, #tpu.memory_space<vmem>>, vector<1x8x16x4xf32>
    %220 = vector.shape_cast %25 : vector<4xf32> to vector<1x1x1x4xf32>
    %221 = vector.broadcast %220 : vector<1x1x1x4xf32> to vector<1x8x16x4xf32>
    %222 = arith.mulf %219, %221 : vector<1x8x16x4xf32>
    %223 = arith.addf %218, %222 : vector<1x8x16x4xf32>
    %c0_188 = arith.constant 0 : index
    %c9_189 = arith.constant 9 : index
    %c3_190 = arith.constant 3 : index
    %c0_191 = arith.constant 0 : index
    %224 = vector.load %arg5[%c0_188, %c9_189, %c3_190, %c0_191] : memref<1x20x20x4xf32, #tpu.memory_space<vmem>>, vector<1x8x16x4xf32>
    %225 = vector.shape_cast %27 : vector<4xf32> to vector<1x1x1x4xf32>
    %226 = vector.broadcast %225 : vector<1x1x1x4xf32> to vector<1x8x16x4xf32>
    %227 = arith.mulf %224, %226 : vector<1x8x16x4xf32>
    %228 = arith.addf %223, %227 : vector<1x8x16x4xf32>
    %c0_192 = arith.constant 0 : index
    %c9_193 = arith.constant 9 : index
    %c4_194 = arith.constant 4 : index
    %c0_195 = arith.constant 0 : index
    %229 = vector.load %arg5[%c0_192, %c9_193, %c4_194, %c0_195] : memref<1x20x20x4xf32, #tpu.memory_space<vmem>>, vector<1x8x16x4xf32>
    %230 = vector.shape_cast %29 : vector<4xf32> to vector<1x1x1x4xf32>
    %231 = vector.broadcast %230 : vector<1x1x1x4xf32> to vector<1x8x16x4xf32>
    %232 = arith.mulf %229, %231 : vector<1x8x16x4xf32>
    %233 = arith.addf %228, %232 : vector<1x8x16x4xf32>
    %c0_196 = arith.constant 0 : index
    %c10_197 = arith.constant 10 : index
    %c0_198 = arith.constant 0 : index
    %c0_199 = arith.constant 0 : index
    %234 = vector.load %arg5[%c0_196, %c10_197, %c0_198, %c0_199] : memref<1x20x20x4xf32, #tpu.memory_space<vmem>>, vector<1x8x16x4xf32>
    %235 = vector.shape_cast %31 : vector<4xf32> to vector<1x1x1x4xf32>
    %236 = vector.broadcast %235 : vector<1x1x1x4xf32> to vector<1x8x16x4xf32>
    %237 = arith.mulf %234, %236 : vector<1x8x16x4xf32>
    %238 = arith.addf %233, %237 : vector<1x8x16x4xf32>
    %c0_200 = arith.constant 0 : index
    %c10_201 = arith.constant 10 : index
    %c1_202 = arith.constant 1 : index
    %c0_203 = arith.constant 0 : index
    %239 = vector.load %arg5[%c0_200, %c10_201, %c1_202, %c0_203] : memref<1x20x20x4xf32, #tpu.memory_space<vmem>>, vector<1x8x16x4xf32>
    %240 = vector.shape_cast %33 : vector<4xf32> to vector<1x1x1x4xf32>
    %241 = vector.broadcast %240 : vector<1x1x1x4xf32> to vector<1x8x16x4xf32>
    %242 = arith.mulf %239, %241 : vector<1x8x16x4xf32>
    %243 = arith.addf %238, %242 : vector<1x8x16x4xf32>
    %c0_204 = arith.constant 0 : index
    %c10_205 = arith.constant 10 : index
    %c2_206 = arith.constant 2 : index
    %c0_207 = arith.constant 0 : index
    %244 = vector.load %arg5[%c0_204, %c10_205, %c2_206, %c0_207] : memref<1x20x20x4xf32, #tpu.memory_space<vmem>>, vector<1x8x16x4xf32>
    %245 = vector.shape_cast %35 : vector<4xf32> to vector<1x1x1x4xf32>
    %246 = vector.broadcast %245 : vector<1x1x1x4xf32> to vector<1x8x16x4xf32>
    %247 = arith.mulf %244, %246 : vector<1x8x16x4xf32>
    %248 = arith.addf %243, %247 : vector<1x8x16x4xf32>
    %c0_208 = arith.constant 0 : index
    %c10_209 = arith.constant 10 : index
    %c3_210 = arith.constant 3 : index
    %c0_211 = arith.constant 0 : index
    %249 = vector.load %arg5[%c0_208, %c10_209, %c3_210, %c0_211] : memref<1x20x20x4xf32, #tpu.memory_space<vmem>>, vector<1x8x16x4xf32>
    %250 = vector.shape_cast %37 : vector<4xf32> to vector<1x1x1x4xf32>
    %251 = vector.broadcast %250 : vector<1x1x1x4xf32> to vector<1x8x16x4xf32>
    %252 = arith.mulf %249, %251 : vector<1x8x16x4xf32>
    %253 = arith.addf %248, %252 : vector<1x8x16x4xf32>
    %c0_212 = arith.constant 0 : index
    %c10_213 = arith.constant 10 : index
    %c4_214 = arith.constant 4 : index
    %c0_215 = arith.constant 0 : index
    %254 = vector.load %arg5[%c0_212, %c10_213, %c4_214, %c0_215] : memref<1x20x20x4xf32, #tpu.memory_space<vmem>>, vector<1x8x16x4xf32>
    %255 = vector.shape_cast %39 : vector<4xf32> to vector<1x1x1x4xf32>
    %256 = vector.broadcast %255 : vector<1x1x1x4xf32> to vector<1x8x16x4xf32>
    %257 = arith.mulf %254, %256 : vector<1x8x16x4xf32>
    %258 = arith.addf %253, %257 : vector<1x8x16x4xf32>
    %c0_216 = arith.constant 0 : index
    %c11_217 = arith.constant 11 : index
    %c0_218 = arith.constant 0 : index
    %c0_219 = arith.constant 0 : index
    %259 = vector.load %arg5[%c0_216, %c11_217, %c0_218, %c0_219] : memref<1x20x20x4xf32, #tpu.memory_space<vmem>>, vector<1x8x16x4xf32>
    %260 = vector.shape_cast %41 : vector<4xf32> to vector<1x1x1x4xf32>
    %261 = vector.broadcast %260 : vector<1x1x1x4xf32> to vector<1x8x16x4xf32>
    %262 = arith.mulf %259, %261 : vector<1x8x16x4xf32>
    %263 = arith.addf %258, %262 : vector<1x8x16x4xf32>
    %c0_220 = arith.constant 0 : index
    %c11_221 = arith.constant 11 : index
    %c1_222 = arith.constant 1 : index
    %c0_223 = arith.constant 0 : index
    %264 = vector.load %arg5[%c0_220, %c11_221, %c1_222, %c0_223] : memref<1x20x20x4xf32, #tpu.memory_space<vmem>>, vector<1x8x16x4xf32>
    %265 = vector.shape_cast %43 : vector<4xf32> to vector<1x1x1x4xf32>
    %266 = vector.broadcast %265 : vector<1x1x1x4xf32> to vector<1x8x16x4xf32>
    %267 = arith.mulf %264, %266 : vector<1x8x16x4xf32>
    %268 = arith.addf %263, %267 : vector<1x8x16x4xf32>
    %c0_224 = arith.constant 0 : index
    %c11_225 = arith.constant 11 : index
    %c2_226 = arith.constant 2 : index
    %c0_227 = arith.constant 0 : index
    %269 = vector.load %arg5[%c0_224, %c11_225, %c2_226, %c0_227] : memref<1x20x20x4xf32, #tpu.memory_space<vmem>>, vector<1x8x16x4xf32>
    %270 = vector.shape_cast %45 : vector<4xf32> to vector<1x1x1x4xf32>
    %271 = vector.broadcast %270 : vector<1x1x1x4xf32> to vector<1x8x16x4xf32>
    %272 = arith.mulf %269, %271 : vector<1x8x16x4xf32>
    %273 = arith.addf %268, %272 : vector<1x8x16x4xf32>
    %c0_228 = arith.constant 0 : index
    %c11_229 = arith.constant 11 : index
    %c3_230 = arith.constant 3 : index
    %c0_231 = arith.constant 0 : index
    %274 = vector.load %arg5[%c0_228, %c11_229, %c3_230, %c0_231] : memref<1x20x20x4xf32, #tpu.memory_space<vmem>>, vector<1x8x16x4xf32>
    %275 = vector.shape_cast %47 : vector<4xf32> to vector<1x1x1x4xf32>
    %276 = vector.broadcast %275 : vector<1x1x1x4xf32> to vector<1x8x16x4xf32>
    %277 = arith.mulf %274, %276 : vector<1x8x16x4xf32>
    %278 = arith.addf %273, %277 : vector<1x8x16x4xf32>
    %c0_232 = arith.constant 0 : index
    %c11_233 = arith.constant 11 : index
    %c4_234 = arith.constant 4 : index
    %c0_235 = arith.constant 0 : index
    %279 = vector.load %arg5[%c0_232, %c11_233, %c4_234, %c0_235] : memref<1x20x20x4xf32, #tpu.memory_space<vmem>>, vector<1x8x16x4xf32>
    %280 = vector.shape_cast %49 : vector<4xf32> to vector<1x1x1x4xf32>
    %281 = vector.broadcast %280 : vector<1x1x1x4xf32> to vector<1x8x16x4xf32>
    %282 = arith.mulf %279, %281 : vector<1x8x16x4xf32>
    %283 = arith.addf %278, %282 : vector<1x8x16x4xf32>
    %c0_236 = arith.constant 0 : index
    %c12_237 = arith.constant 12 : index
    %c0_238 = arith.constant 0 : index
    %c0_239 = arith.constant 0 : index
    %284 = vector.load %arg5[%c0_236, %c12_237, %c0_238, %c0_239] : memref<1x20x20x4xf32, #tpu.memory_space<vmem>>, vector<1x8x16x4xf32>
    %285 = vector.shape_cast %51 : vector<4xf32> to vector<1x1x1x4xf32>
    %286 = vector.broadcast %285 : vector<1x1x1x4xf32> to vector<1x8x16x4xf32>
    %287 = arith.mulf %284, %286 : vector<1x8x16x4xf32>
    %288 = arith.addf %283, %287 : vector<1x8x16x4xf32>
    %c0_240 = arith.constant 0 : index
    %c12_241 = arith.constant 12 : index
    %c1_242 = arith.constant 1 : index
    %c0_243 = arith.constant 0 : index
    %289 = vector.load %arg5[%c0_240, %c12_241, %c1_242, %c0_243] : memref<1x20x20x4xf32, #tpu.memory_space<vmem>>, vector<1x8x16x4xf32>
    %290 = vector.shape_cast %53 : vector<4xf32> to vector<1x1x1x4xf32>
    %291 = vector.broadcast %290 : vector<1x1x1x4xf32> to vector<1x8x16x4xf32>
    %292 = arith.mulf %289, %291 : vector<1x8x16x4xf32>
    %293 = arith.addf %288, %292 : vector<1x8x16x4xf32>
    %c0_244 = arith.constant 0 : index
    %c12_245 = arith.constant 12 : index
    %c2_246 = arith.constant 2 : index
    %c0_247 = arith.constant 0 : index
    %294 = vector.load %arg5[%c0_244, %c12_245, %c2_246, %c0_247] : memref<1x20x20x4xf32, #tpu.memory_space<vmem>>, vector<1x8x16x4xf32>
    %295 = vector.shape_cast %55 : vector<4xf32> to vector<1x1x1x4xf32>
    %296 = vector.broadcast %295 : vector<1x1x1x4xf32> to vector<1x8x16x4xf32>
    %297 = arith.mulf %294, %296 : vector<1x8x16x4xf32>
    %298 = arith.addf %293, %297 : vector<1x8x16x4xf32>
    %c0_248 = arith.constant 0 : index
    %c12_249 = arith.constant 12 : index
    %c3_250 = arith.constant 3 : index
    %c0_251 = arith.constant 0 : index
    %299 = vector.load %arg5[%c0_248, %c12_249, %c3_250, %c0_251] : memref<1x20x20x4xf32, #tpu.memory_space<vmem>>, vector<1x8x16x4xf32>
    %300 = vector.shape_cast %57 : vector<4xf32> to vector<1x1x1x4xf32>
    %301 = vector.broadcast %300 : vector<1x1x1x4xf32> to vector<1x8x16x4xf32>
    %302 = arith.mulf %299, %301 : vector<1x8x16x4xf32>
    %303 = arith.addf %298, %302 : vector<1x8x16x4xf32>
    %c0_252 = arith.constant 0 : index
    %c12_253 = arith.constant 12 : index
    %c4_254 = arith.constant 4 : index
    %c0_255 = arith.constant 0 : index
    %304 = vector.load %arg5[%c0_252, %c12_253, %c4_254, %c0_255] : memref<1x20x20x4xf32, #tpu.memory_space<vmem>>, vector<1x8x16x4xf32>
    %305 = vector.shape_cast %59 : vector<4xf32> to vector<1x1x1x4xf32>
    %306 = vector.broadcast %305 : vector<1x1x1x4xf32> to vector<1x8x16x4xf32>
    %307 = arith.mulf %304, %306 : vector<1x8x16x4xf32>
    %308 = arith.addf %303, %307 : vector<1x8x16x4xf32>
    %c0_256 = arith.constant 0 : index
    %c8_257 = arith.constant 8 : index
    %c0_258 = arith.constant 0 : index
    %c0_259 = arith.constant 0 : index
    %309 = vector.load %arg4[%c0_256, %c8_257, %c0_258, %c0_259] : memref<1x16x16x4xf32, #tpu.memory_space<vmem>>, vector<1x8x16x4xf32>
    tpu.vector_store %arg4[%c0_256, %c8_257, %c0_258, %c0_259], %308 {strides = array<i32>} : memref<1x16x16x4xf32, #tpu.memory_space<vmem>>, vector<1x8x16x4xf32>,
    return
  }
  func.func @transform_0(%arg0: i32, %arg1: i32) -> (i32, i32, i32, i32) {
    %c0_i32 = arith.constant 0 : i32
    %c0_i32_0 = arith.constant 0 : i32
    %c0_i32_1 = arith.constant 0 : i32
    return %arg0, %c0_i32, %c0_i32_0, %arg1 : i32, i32, i32, i32
  }
  func.func @transform_1(%arg0: i32, %arg1: i32) -> (i32, i32) {
    %c0_i32 = arith.constant 0 : i32
    %c0_i32_0 = arith.constant 0 : i32
    return %c0_i32, %arg1 : i32, i32
  }
  func.func @transform_2(%arg0: i32, %arg1: i32) -> (i32, i32, i32, i32) {
    %c0_i32 = arith.constant 0 : i32
    %c0_i32_0 = arith.constant 0 : i32
    %c0_i32_1 = arith.constant 0 : i32
    return %arg0, %c0_i32, %c0_i32_0, %arg1 : i32, i32, i32, i32
  }
}

</mosaic_0001>

<bundles_post_ra>
// kernel: tpu_custom_call.1
= control target key start
LH: loop header
LB: loop body
LE: loop exit
PB: predicated region body
PF: predicated region fallthrough
CT: control target
= control target key end

     0   :  { %s3135_s9 = smov 0   ;;  %s3137_s10 = smov 0   ;;  %s5516_s0 = inlined_call_operand.vmem [shape: f32[2,16,16,4], index: 0, kind: input, shape index: {}]   ;;  %s5517_s1 = inlined_call_operand.vmem [shape: f32[25,4], index: 1, kind: input, shape index: {}]   ;;  %s5518_s2 = inlined_call_operand.vmem [shape: f32[2,16,16,4], index: 2, kind: output, shape index: {}]  }
   0x1   :  { %s3139_s11 = smov 0  }
   0x2 LB: > { %s24_s12 = sadd.s32 1, %s3113_s10  ;;  %p2951_p0 = scmp.ge.s32.totalorder %s3117_s11, 1  ;;  %s3117_s11 = sphi %s3139_s11, %s12_s11   ;;  %s3113_s10 = sphi %s3137_s10, %s5688_s10   ;;  %s3109_s9 = sphi %s3135_s9, %s5687_s9  }
   0x3   : > { %p26_p1 = scmp.ge.s32.totalorder %s24_s12, 2  ;;  %p140_p2 = scmp.lt.s32.totalorder %s3117_s11, 3 }
   0x5   : > { %s5690_s12 = smov (%p26_p1, %s24_s12), 0  ;;  %p141_p3 = pnand %p2951_p0, %p140_p2 }
   0x7   : > { %144 = sbr.rel (%p141_p3) target bundleno = 454 (0x1c6), region = 28 }
   0xe   : > { %vm192_vm0 = vcmask 31744   ;;  %v3119_v0 = vmov 0.0   ;;  %vm195_vm1 = vcmask 27648   ;;  %vm207_vm2 = vcmask 25600   ;;  %p172_p4 = scmp.lt.s32.totalorder %s3109_s9, 1 }
   0xf   : > { %193 = vst.msk [vmem:[#allocation2] sm:$0xff] %vm192_vm0, %v3119_v0  ;;  %194 = vst.msk [vmem:[#allocation2 + $0x8] sm:$0xff] %vm192_vm0, %v3119_v0  ;;  %v3210_v1 = vld [vmem:[%s5517_s1] ss:$0 sm:$0xff]  ;;  %v3215_v2 = vld [vmem:[%s5517_s1 + $0x2] ss:$0 sm:$0xff] }
  0x10   : > { %197 = vst.msk [vmem:[#allocation2 + $0x18] sm:$0xff] %vm192_vm0, %v3119_v0  ;;  %198 = vst.msk [vmem:[#allocation2 + $0x20] sm:$0xff] %vm192_vm0, %v3119_v0  ;;  %s5692_s9 = smov (!%p172_p4, %s3109_s9), 1  ;;  %v3223_v6 = vld [vmem:[%s5517_s1 + $0x1] ss:$0 sm:$0xff] }
  0x11   : > { %201 = vst.msk [vmem:[#allocation2 + $0x1b0] sm:$0xff] %vm192_vm0, %v3119_v0  ;;  %202 = vst.msk [vmem:[#allocation2 + $0x1b8] sm:$0xff] %vm192_vm0, %v3119_v0  ;;  %s2999_s17 = sshll.u32 %s5692_s9, 8  ;;  %v3235_v7 = vld [vmem:[%s5517_s1 + $0x3] ss:$0 sm:$0xff] }
  0x12   : > { %204 = vst.msk [vmem:[#allocation2 + $0x1c8] sm:$0xff] %vm192_vm0, %v3119_v0  ;;  %205 = vst.msk [vmem:[#allocation2 + $0x1d0] sm:$0xff] %vm192_vm0, %v3119_v0  ;;  %s3230_s22 = scalar_lea.vmem %s5516_s0, %s2999_s17  ;;  %v3262_v28 = vld [vmem:[%s5517_s1 + $0x4] ss:$0 sm:$0xff]  ;;  %v3301_v57 = vld [vmem:[%s5517_s1 + $0x5] ss:$0 sm:$0xff] }
  0x13   : > { %196 = vst.msk [vmem:[#allocation2 + $0x10] sm:$0xf] %vm195_vm1, %v3119_v0  ;;  %199 = vst.msk [vmem:[#allocation2 + $0x28] sm:$0xf] %vm195_vm1, %v3119_v0  ;;  %v248_v11 = vld [vmem:[%s3230_s22] sm:$0xff]  ;;  %v249_v40 = vld [vmem:[%s3230_s22 + $0x8] sm:$0xff] }
  0x14   : > { %203 = vst.msk [vmem:[#allocation2 + $0x1c0] sm:$0xf] %vm195_vm1, %v3119_v0  ;;  %206 = vst.msk [vmem:[#allocation2 + $0x1d8] sm:$0xf] %vm195_vm1, %v3119_v0  ;;  %v250_v41 = vld [vmem:[%s3230_s22 + $0x10] sm:$0xff]  ;;  %v251_v42 = vld [vmem:[%s3230_s22 + $0x18] sm:$0xff] }
  0x15   : > { %208 = vst.msk [vmem:[#allocation2] sm:$0x3] %vm207_vm2, %v3119_v0  ;;  %209 = vst.msk [vmem:[#allocation2 + $0x18] sm:$0x3] %vm207_vm2, %v3119_v0  ;;  %v252_v47 = vld [vmem:[%s3230_s22 + $0x20] sm:$0xff]  ;;  %v253_v48 = vld [vmem:[%s3230_s22 + $0x28] sm:$0xff] }
  0x16   : > { %210 = vst.msk [vmem:[#allocation2 + $0x30] sm:$0x3] %vm207_vm2, %v3119_v0  ;;  %211 = vst.msk [vmem:[#allocation2 + $0x48] sm:$0x3] %vm207_vm2, %v3119_v0  ;;  %v339_v3 = vld [vmem:[#allocation2 + $0x8] sm:$0xff]  ;;  %v254_v49 = vld [vmem:[%s3230_s22 + $0x30] sm:$0xff] }
  0x17   : > { %212 = vst.msk [vmem:[#allocation2 + $0x60] sm:$0x3] %vm207_vm2, %v3119_v0  ;;  %213 = vst.msk [vmem:[#allocation2 + $0x78] sm:$0x3] %vm207_vm2, %v3119_v0  ;;  %v3218_v4 = vld [vmem:[#allocation2 + $0x20] sm:$0xff]  ;;  %v359_v8 = vmul.f32 %v3210_v1, %v339_v3  ;;  %v255_v54 = vld [vmem:[%s3230_s22 + $0x38] sm:$0xff] }
  0x18   : > { %214 = vst.msk [vmem:[#allocation2 + $0x90] sm:$0x3] %vm207_vm2, %v3119_v0  ;;  %215 = vst.msk [vmem:[#allocation2 + $0xa8] sm:$0x3] %vm207_vm2, %v3119_v0  ;;  %v426_v5 = vld [vmem:[#allocation2 + $0x2] sm:$0xff]  ;;  %v3238_v9 = vld [vmem:[#allocation2 + $0x1a] sm:$0xff]  ;;  %v361_v15 = vmul.f32 %v3210_v1, %v3218_v4 }
  0x19   : > { %216 = vst.msk [vmem:[#allocation2 + $0xc0] sm:$0x3] %vm207_vm2, %v3119_v0  ;;  %217 = vst.msk [vmem:[#allocation2 + $0xd8] sm:$0x3] %vm207_vm2, %v3119_v0  ;;  %v478_v10 = vld [vmem:[#allocation2 + $0x3] sm:$0xff]  ;;  %v3246_v16 = vld [vmem:[#allocation2 + $0x1b] sm:$0xff]  ;;  %v446_v21 = vmul.f32 %v3215_v2, %v426_v5  ;;  %v448_v29 = vmul.f32 %v3215_v2, %v3238_v9 }
  0x1a   : > { %218 = vst.msk [vmem:[#allocation2 + $0xf0] sm:$0x3] %vm207_vm2, %v3119_v0  ;;  %219 = vst.msk [vmem:[#allocation2 + $0x108] sm:$0x3] %vm207_vm2, %v3119_v0  ;;  %v375_v12 = vld [vmem:[#allocation2 + $0x9] sm:$0xff]  ;;  %v3241_v14 = vld [vmem:[#allocation2 + $0x21] sm:$0xff]  ;;  %v498_v35 = vmul.f32 %v3235_v7, %v478_v10  ;;  %v500_v43 = vmul.f32 %v3235_v7, %v3246_v16 }
  0x1b   : > { %220 = vst.msk [vmem:[#allocation2 + $0x120] sm:$0x3] %vm207_vm2, %v3119_v0  ;;  %221 = vst.msk [vmem:[#allocation2 + $0x138] sm:$0x3] %vm207_vm2, %v3119_v0  ;;  %v427_v13 = vld [vmem:[#allocation2 + $0xa] sm:$0xff]  ;;  %v395_v17 = vmul.f32 %v3223_v6, %v375_v12  ;;  %v397_v22 = vmul.f32 %v3223_v6, %v3241_v14  ;;  %v3266_v31 = vld [vmem:[#allocation2 + $0x22] sm:$0xff] }
  0x1c   : > { %222 = vst.msk [vmem:[#allocation2 + $0x150] sm:$0x3] %vm207_vm2, %v3119_v0  ;;  %223 = vst.msk [vmem:[#allocation2 + $0x168] sm:$0x3] %vm207_vm2, %v3119_v0  ;;  %v447_v18 = vmul.f32 %v3215_v2, %v427_v13  ;;  %v338_v19 = vld [vmem:[#allocation2] sm:$0xff]  ;;  %v3255_v25 = vld [vmem:[#allocation2 + $0x18] sm:$0xff]  ;;  %v449_v51 = vmul.f32 %v3215_v2, %v3266_v31 }
  0x1d   : > { %224 = vst.msk [vmem:[#allocation2 + $0x180] sm:$0x3] %vm207_vm2, %v3119_v0  ;;  %225 = vst.msk [vmem:[#allocation2 + $0x198] sm:$0x3] %vm207_vm2, %v3119_v0  ;;  %v374_v20 = vld [vmem:[#allocation2 + $0x1] sm:$0xff]  ;;  %v358_v23 = vmul.f32 %v3210_v1, %v338_v19  ;;  %v3257_v26 = vld [vmem:[#allocation2 + $0x19] sm:$0xff]  ;;  %v411_v30 = vadd.f32 %v395_v17, %v359_v8  ;;  %v360_v32 = vmul.f32 %v3210_v1, %v3255_v25 }
  0x1e   : > { %226 = vst.msk [vmem:[#allocation2 + $0x1b0] sm:$0x3] %vm207_vm2, %v3119_v0  ;;  %227 = vst.msk [vmem:[#allocation2 + $0x1c8] sm:$0x3] %vm207_vm2, %v3119_v0  ;;  %v394_v24 = vmul.f32 %v3223_v6, %v374_v20  ;;  %v396_v33 = vmul.f32 %v3223_v6, %v3257_v26  ;;  %v530_v36 = vld [vmem:[#allocation2 + $0x4] sm:$0xff]  ;;  %v3273_v37 = vld [vmem:[#allocation2 + $0x1c] sm:$0xff]  ;;  %v413_v50 = vadd.f32 %v397_v22, %v361_v15 }
  0x1f   : > { %230 = vst.msk [vmem:[#allocation2 + $0x42] sm:$0x3] %vm207_vm2, %v3119_v0  ;;  %231 = vst.msk [vmem:[#allocation2 + $0x5a] sm:$0x3] %vm207_vm2, %v3119_v0  ;;  %v463_v44 = vadd.f32 %v447_v18, %v411_v30  ;;  %v256_v55 = vld [vmem:[%s3230_s22 + $0x40] sm:$0xff]  ;;  %v257_v56 = vld [vmem:[%s3230_s22 + $0x48] sm:$0xff]  ;;  %v552_v12 = vmul.f32 %v3262_v28, %v3273_v37 }
  0x20   : > { %232 = vst.msk [vmem:[#allocation2 + $0x72] sm:$0x3] %vm207_vm2, %v3119_v0  ;;  %233 = vst.msk [vmem:[#allocation2 + $0x8a] sm:$0x3] %vm207_vm2, %v3119_v0  ;;  %v410_v38 = vadd.f32 %v394_v24, %v358_v23  ;;  %v412_v45 = vadd.f32 %v396_v33, %v360_v32  ;;  %v258_v5 = vld [vmem:[%s3230_s22 + $0x50] sm:$0xff]  ;;  %v259_v8 = vld [vmem:[%s3230_s22 + $0x58] sm:$0xff]  ;;  %v465_v20 = vadd.f32 %v449_v51, %v413_v50 }
  0x21   : > { %234 = vst.msk [vmem:[#allocation2 + $0xa2] sm:$0x3] %vm207_vm2, %v3119_v0  ;;  %235 = vst.msk [vmem:[#allocation2 + $0xba] sm:$0x3] %vm207_vm2, %v3119_v0  ;;  %v260_v10 = vld [vmem:[%s3230_s22 + $0x60] sm:$0xff]  ;;  %v261_v17 = vld [vmem:[%s3230_s22 + $0x68] sm:$0xff] }
  0x22   : > { %236 = vst.msk [vmem:[#allocation2 + $0xd2] sm:$0x3] %vm207_vm2, %v3119_v0  ;;  %237 = vst.msk [vmem:[#allocation2 + $0xea] sm:$0x3] %vm207_vm2, %v3119_v0  ;;  %v462_v52 = vadd.f32 %v446_v21, %v410_v38  ;;  %v464_v58 = vadd.f32 %v448_v29, %v412_v45  ;;  %v262_v18 = vld [vmem:[%s3230_s22 + $0x70] sm:$0xff]  ;;  %v263_v19 = vld [vmem:[%s3230_s22 + $0x78] sm:$0xff]  ;;  %v604_v38 = vmul.f32 %v3301_v57, %v3218_v4 }
  0x23   : > { %238 = vst.msk [vmem:[#allocation2 + $0x102] sm:$0x3] %vm207_vm2, %v3119_v0  ;;  %239 = vst.msk [vmem:[#allocation2 + $0x11a] sm:$0x3] %vm207_vm2, %v3119_v0  ;;  %v264_v24 = vld [vmem:[%s3230_s22 + $0x80] sm:$0xff]  ;;  %v266_v29 = vld [vmem:[%s3230_s22 + $0x90] sm:$0xff] }
  0x24   : > { %240 = vst.msk [vmem:[#allocation2 + $0x132] sm:$0x3] %vm207_vm2, %v3119_v0  ;;  %241 = vst.msk [vmem:[#allocation2 + $0x14a] sm:$0x3] %vm207_vm2, %v3119_v0  ;;  %v514_v63 = vadd.f32 %v498_v35, %v462_v52  ;;  %v516_v15 = vadd.f32 %v500_v43, %v464_v58  ;;  %v267_v33 = vld [vmem:[%s3230_s22 + $0x98] sm:$0xff]  ;;  %v269_v35 = vld [vmem:[%s3230_s22 + $0xa8] sm:$0xff]  ;;  %v603_v43 = vmul.f32 %v3301_v57, %v3255_v25 }
  0x25   : > { %242 = vst.msk [vmem:[#allocation2 + $0x162] sm:$0x3] %vm207_vm2, %v3119_v0  ;;  %243 = vst.msk [vmem:[#allocation2 + $0x17a] sm:$0x3] %vm207_vm2, %v3119_v0  ;;  %v3383_v25 = vld [vmem:[%s5517_s1 + $0x9] ss:$0 sm:$0xff] }
  0x26   : > { %244 = vst.msk [vmem:[#allocation2 + $0x192] sm:$0x3] %vm207_vm2, %v3119_v0  ;;  %245 = vst.msk [vmem:[#allocation2 + $0x1aa] sm:$0x3] %vm207_vm2, %v3119_v0 }
  0x27   : > { %228 = vst.msk [vmem:[#allocation2 + $0x12] sm:$0x3] %vm207_vm2, %v3119_v0  ;;  %229 = vst.msk [vmem:[#allocation2 + $0x2a] sm:$0x3] %vm207_vm2, %v3119_v0 }
  0x28   : > { %246 = vst.msk [vmem:[#allocation2 + $0x1c2] sm:$0x3] %vm207_vm2, %v3119_v0  ;;  %247 = vst.msk [vmem:[#allocation2 + $0x1da] sm:$0x3] %vm207_vm2, %v3119_v0 }
  0x29   : > { %281 = vst.msk [vmem:[#allocation2 + $0x32] sm:$0xff] %vm192_vm0, %v248_v11  ;;  %282 = vst.msk [vmem:[#allocation2 + $0x3a] sm:$0xff] %vm192_vm0, %v249_v40  ;;  %v550_v11 = vmul.f32 %v3262_v28, %v530_v36  ;;  %v3349_v36 = vld [vmem:[%s5517_s1 + $0x7] ss:$0 sm:$0xff] }
  0x2a   : > { %283 = vst.msk [vmem:[#allocation2 + $0x4a] sm:$0xff] %vm192_vm0, %v250_v41  ;;  %284 = vst.msk [vmem:[#allocation2 + $0x52] sm:$0xff] %vm192_vm0, %v251_v42  ;;  %v3363_v42 = vld [vmem:[%s5517_s1 + $0x6] ss:$0 sm:$0xff]  ;;  %v707_v58 = vmul.f32 %v3349_v36, %v3238_v9 }
  0x2b   : > { %285 = vst.msk [vmem:[#allocation2 + $0x62] sm:$0xff] %vm192_vm0, %v252_v47  ;;  %286 = vst.msk [vmem:[#allocation2 + $0x6a] sm:$0xff] %vm192_vm0, %v253_v48  ;;  %v566_v30 = vadd.f32 %v550_v11, %v514_v63 }
  0x2c   : > { %287 = vst.msk [vmem:[#allocation2 + $0x7a] sm:$0xff] %vm192_vm0, %v254_v49  ;;  %288 = vst.msk [vmem:[#allocation2 + $0x82] sm:$0xff] %vm192_vm0, %v255_v54  ;;  %v3378_v49 = vld [vmem:[%s5517_s1 + $0x8] ss:$0 sm:$0xff] }
  0x2d   : > { %289 = vst.msk [vmem:[#allocation2 + $0x92] sm:$0xff] %vm192_vm0, %v256_v55  ;;  %290 = vst.msk [vmem:[#allocation2 + $0x9a] sm:$0xff] %vm192_vm0, %v257_v56  ;;  %v619_v54 = vadd.f32 %v603_v43, %v566_v30 }
  0x2e   : > { %v479_v27 = vld [vmem:[#allocation2 + $0xb] sm:$0xff]  ;;  %v3281_v46 = vld [vmem:[#allocation2 + $0x23] sm:$0xff]  ;;  %291 = vst.msk [vmem:[#allocation2 + $0xaa] sm:$0xff] %vm192_vm0, %v258_v5  ;;  %292 = vst.msk [vmem:[#allocation2 + $0xb2] sm:$0xff] %vm192_vm0, %v259_v8  ;;  %v3399_v5 = vmul.f32 %v3378_v49, %v3246_v16  ;;  %v3403_v8 = vmul.f32 %v3383_v25, %v3273_v37  ;;  %v708_v16 = vmul.f32 %v3349_v36, %v3266_v31 }
  0x2f   : > { %v531_v34 = vld [vmem:[#allocation2 + $0xc] sm:$0xff]  ;;  %v499_v39 = vmul.f32 %v3235_v7, %v479_v27  ;;  %v3322_v13 = vld [vmem:[#allocation2 + $0x24] sm:$0xff]  ;;  %293 = vst.msk [vmem:[#allocation2 + $0xc2] sm:$0xff] %vm192_vm0, %v260_v10  ;;  %v501_v21 = vmul.f32 %v3235_v7, %v3281_v46  ;;  %294 = vst.msk [vmem:[#allocation2 + $0xca] sm:$0xff] %vm192_vm0, %v261_v17  ;;  %v655_v10 = vmul.f32 %v3363_v42, %v3257_v26 }
  0x30   : > { %v551_v53 = vmul.f32 %v3262_v28, %v531_v34  ;;  %v3303_v60 = vld [vmem:[#allocation2 + $0x30] sm:$0xff]  ;;  %295 = vst.msk [vmem:[#allocation2 + $0xda] sm:$0xff] %vm192_vm0, %v262_v18  ;;  %296 = vst.msk [vmem:[#allocation2 + $0xe2] sm:$0xff] %vm192_vm0, %v263_v19  ;;  %v265_v27 = vld [vmem:[%s3230_s22 + $0x88] sm:$0xff]  ;;  %v553_v51 = vmul.f32 %v3262_v28, %v3322_v13  ;;  %v760_v37 = vmul.f32 %v3378_v49, %v3281_v46 }
  0x31   : > { %v515_v59 = vadd.f32 %v499_v39, %v463_v44  ;;  %v3305_v61 = vld [vmem:[#allocation2 + $0x31] sm:$0xff]  ;;  %v362_v0 = vmul.f32 %v3210_v1, %v3303_v60  ;;  %297 = vst.msk [vmem:[#allocation2 + $0xf2] sm:$0xff] %vm192_vm0, %v264_v24  ;;  %298 = vst.msk [vmem:[#allocation2 + $0xfa] sm:$0xff] %vm192_vm0, %v265_v27  ;;  %v268_v34 = vld [vmem:[%s3230_s22 + $0xa0] sm:$0xff]  ;;  %v568_v39 = vadd.f32 %v552_v12, %v516_v15 }
  0x32   : > { %v3307_v62 = vld [vmem:[#allocation2 + $0x32] sm:$0xff]  ;;  %v398_v3 = vmul.f32 %v3223_v6, %v3305_v61  ;;  %299 = vst.msk [vmem:[#allocation2 + $0x10a] sm:$0xff] %vm192_vm0, %v266_v29  ;;  %300 = vst.msk [vmem:[#allocation2 + $0x112] sm:$0xff] %vm192_vm0, %v267_v33  ;;  %v3371_v47 = vld [vmem:[#allocation2 + $0x3a] sm:$0xff]  ;;  %v517_v50 = vadd.f32 %v501_v21, %v465_v20  ;;  %v657_v17 = vmul.f32 %v3363_v42, %v3305_v61 }
  0x33   : > { %v567_v22 = vadd.f32 %v551_v53, %v515_v59  ;;  %v450_v32 = vmul.f32 %v3215_v2, %v3307_v62  ;;  %v3353_v40 = vld [vmem:[#allocation2 + $0x38] sm:$0xff]  ;;  %301 = vst.msk [vmem:[#allocation2 + $0x122] sm:$0xff] %vm192_vm0, %v268_v34  ;;  %302 = vst.msk [vmem:[#allocation2 + $0x12a] sm:$0xff] %vm192_vm0, %v269_v35  ;;  %v605_v53 = vmul.f32 %v3301_v57, %v3303_v60  ;;  %v3407_v12 = vld [vmem:[#allocation2 + $0x48] sm:$0xff] }
  0x34   : > { %v414_v23 = vadd.f32 %v398_v3, %v362_v0  ;;  %v3355_v41 = vld [vmem:[#allocation2 + $0x39] sm:$0xff]  ;;  %v363_v44 = vmul.f32 %v3210_v1, %v3353_v40  ;;  %v656_v59 = vmul.f32 %v3363_v42, %v3241_v14  ;;  %v451_v0 = vmul.f32 %v3215_v2, %v3371_v47  ;;  %v380_v19 = vld [vmem:[#allocation2 + $0x49] sm:$0xff]  ;;  %v381_v29 = vld [vmem:[#allocation2 + $0x51] sm:$0xff] }
  0x35   : > { %v399_v45 = vmul.f32 %v3223_v6, %v3355_v41  ;;  %v3373_v48 = vld [vmem:[#allocation2 + $0x33] sm:$0xff]  ;;  %v620_v52 = vadd.f32 %v604_v38, %v567_v22  ;;  %v621_v63 = vadd.f32 %v605_v53, %v568_v39  ;;  %v483_v9 = vld [vmem:[#allocation2 + $0x3b] sm:$0xff]  ;;  %v569_v14 = vadd.f32 %v553_v51, %v517_v50  ;;  %v432_v21 = vld [vmem:[#allocation2 + $0x4a] sm:$0xff] }
  0x36   : > { %v466_v4 = vadd.f32 %v450_v32, %v414_v23  ;;  %v502_v56 = vmul.f32 %v3235_v7, %v3373_v48  ;;  %v534_v3 = vld [vmem:[#allocation2 + $0x34] sm:$0xff]  ;;  %v671_v20 = vadd.f32 %v655_v10, %v619_v54  ;;  %v503_v23 = vmul.f32 %v3235_v7, %v483_v9  ;;  %v3430_v46 = vld [vmem:[%s5517_s1 + $0xa] ss:$0 sm:$0xff]  ;;  %v535_v32 = vld [vmem:[#allocation2 + $0x3c] sm:$0xff] }
  0x37   : > { %v415_v55 = vadd.f32 %v399_v45, %v363_v44  ;;  %v672_v15 = vadd.f32 %v656_v59, %v620_v52  ;;  %v554_v26 = vmul.f32 %v3262_v28, %v534_v3  ;;  %v673_v22 = vadd.f32 %v657_v17, %v621_v63  ;;  %v3421_v27 = vld [vmem:[#allocation2 + $0x50] sm:$0xff] }
  0x38   : > { %v518_v11 = vadd.f32 %v502_v56, %v466_v4  ;;  %v606_v24 = vmul.f32 %v3301_v57, %v3353_v40  ;;  %v364_v61 = vmul.f32 %v3210_v1, %v3407_v12  ;;  %v3425_v31 = vmul.f32 %v3383_v25, %v3322_v13  ;;  %v484_v50 = vld [vmem:[#allocation2 + $0x4b] sm:$0xff] }
  0x39   : > { %v467_v18 = vadd.f32 %v451_v0, %v415_v55  ;;  %v709_v30 = vmul.f32 %v3349_v36, %v3307_v62  ;;  %v400_v34 = vmul.f32 %v3223_v6, %v380_v19  ;;  %v724_v35 = vadd.f32 %v708_v16, %v672_v15  ;;  %v433_v54 = vld [vmem:[#allocation2 + $0x52] sm:$0xff]  ;;  %v382_v16 = vld [vmem:[#allocation2 + $0x61] sm:$0xff] }
  0x3a   : > { %v570_v33 = vadd.f32 %v554_v26, %v518_v11  ;;  %v622_v39 = vadd.f32 %v606_v24, %v569_v14  ;;  %v452_v43 = vmul.f32 %v3215_v2, %v432_v21  ;;  %v607_v13 = vmul.f32 %v3301_v57, %v3407_v12 }
  0x3b   : > { %v519_v38 = vadd.f32 %v503_v23, %v467_v18  ;;  %v416_v4 = vadd.f32 %v400_v34, %v364_v61  ;;  %v365_v44 = vmul.f32 %v3210_v1, %v3421_v27  ;;  %v401_v45 = vmul.f32 %v3223_v6, %v381_v29  ;;  %v3459_v18 = vld [vmem:[#allocation2 + $0x60] sm:$0xff] }
  0x3c   : > { %v3441_v62 = vadd.f32 %v707_v58, %v671_v20  ;;  %v725_v51 = vadd.f32 %v709_v30, %v673_v22  ;;  %v3445_v52 = vmul.f32 %v3430_v46, %v3303_v60  ;;  %v555_v53 = vmul.f32 %v3262_v28, %v535_v32  ;;  %v434_v61 = vld [vmem:[#allocation2 + $0x62] sm:$0xff] }
  0x3d   : > { %v658_v55 = vmul.f32 %v3363_v42, %v3355_v41  ;;  %v468_v56 = vadd.f32 %v452_v43, %v416_v4  ;;  %v623_v59 = vadd.f32 %v607_v13, %v570_v33  ;;  %v417_v63 = vadd.f32 %v401_v45, %v365_v44  ;;  %v536_v41 = vld [vmem:[#allocation2 + $0x4c] sm:$0xff]  ;;  %v537_v4 = vld [vmem:[#allocation2 + $0x54] sm:$0xff] }
  0x3e   : > { %v3450_v0 = vadd.f32 %v760_v37, %v724_v35  ;;  %v571_v10 = vadd.f32 %v555_v53, %v519_v38  ;;  %v710_v58 = vmul.f32 %v3349_v36, %v3371_v47  ;;  %v504_v11 = vmul.f32 %v3235_v7, %v484_v50  ;;  %v485_v47 = vld [vmem:[#allocation2 + $0x53] sm:$0xff]  ;;  %v3472_v30 = vld [vmem:[#allocation2 + $0x68] sm:$0xff] }
  0x3f   : > { %v674_v14 = vadd.f32 %v658_v55, %v622_v39  ;;  %v761_v60 = vmul.f32 %v3378_v49, %v3373_v48  ;;  %v659_v15 = vmul.f32 %v3363_v42, %v380_v19  ;;  %v453_v17 = vmul.f32 %v3215_v2, %v433_v54  ;;  %v3478_v35 = vld [vmem:[#allocation2 + $0x69] sm:$0xff] }
  0x40   : > { %v762_v20 = vmul.f32 %v3378_v49, %v483_v9  ;;  %v3463_v37 = vmul.f32 %v3383_v25, %v534_v3  ;;  %v520_v26 = vadd.f32 %v504_v11, %v468_v56  ;;  %v608_v22 = vmul.f32 %v3301_v57, %v3421_v27  ;;  %v486_v53 = vld [vmem:[#allocation2 + $0x63] sm:$0xff] }
  0x41   : > { %v3467_v23 = vadd.f32 %v761_v60, %v725_v51  ;;  %v3470_v48 = vmul.f32 %v3383_v25, %v535_v32  ;;  %v675_v19 = vadd.f32 %v659_v15, %v623_v59  ;;  %v469_v24 = vadd.f32 %v453_v17, %v417_v63  ;;  %v435_v11 = vld [vmem:[#allocation2 + $0x6a] sm:$0xff] }
  0x42   : > { %v556_v9 = vmul.f32 %v3262_v28, %v536_v41  ;;  %v624_v33 = vadd.f32 %v608_v22, %v571_v10  ;;  %v366_v3 = vmul.f32 %v3210_v1, %v3459_v18  ;;  %v402_v34 = vmul.f32 %v3223_v6, %v382_v16 }
  0x43   : > { %v726_v38 = vadd.f32 %v710_v58, %v674_v14  ;;  %v711_v39 = vmul.f32 %v3349_v36, %v432_v21  ;;  %v505_v32 = vmul.f32 %v3235_v7, %v485_v47  ;;  %v660_v43 = vmul.f32 %v3363_v42, %v381_v29 }
  0x44   : > { %v572_v13 = vadd.f32 %v556_v9, %v520_v26  ;;  %v418_v44 = vadd.f32 %v402_v34, %v366_v3  ;;  %v454_v45 = vmul.f32 %v3215_v2, %v434_v61  ;;  %v367_v51 = vmul.f32 %v3210_v1, %v3472_v30  ;;  %v384_v34 = vld [vmem:[#allocation2 + $0x79] sm:$0xff] }
  0x45   : > { %v3488_v55 = vmul.f32 %v3430_v46, %v3353_v40  ;;  %v3492_v21 = vmul.f32 %v3430_v46, %v3407_v12  ;;  %v521_v56 = vadd.f32 %v505_v32, %v469_v24  ;;  %v403_v29 = vmul.f32 %v3223_v6, %v3478_v35  ;;  %v3505_v24 = vld [vmem:[#allocation2 + $0x78] sm:$0xff] }
  0x46   : > { %v727_v59 = vadd.f32 %v711_v39, %v675_v19  ;;  %v676_v63 = vadd.f32 %v660_v43, %v624_v33  ;;  %v470_v10 = vadd.f32 %v454_v45, %v418_v44  ;;  %v609_v58 = vmul.f32 %v3301_v57, %v3459_v18  ;;  %v538_v19 = vld [vmem:[#allocation2 + $0x64] sm:$0xff]  ;;  %v3522_v44 = vld [vmem:[#allocation2 + $0x7a] sm:$0xff] }
  0x47   : > { %5519 = vst [vmem:[#allocation3_spill] sm:$0xff] %v3492_v21  ;;  %v3498_v14 = vadd.f32 %v762_v20, %v726_v38  ;;  %v557_v40 = vmul.f32 %v3262_v28, %v537_v4  ;;  %v419_v60 = vadd.f32 %v403_v29, %v367_v51  ;;  %v506_v15 = vmul.f32 %v3235_v7, %v486_v53  ;;  %v3524_v45 = vld [vmem:[#allocation2 + $0x80] sm:$0xff] }
  0x48   : > { %v712_v12 = vmul.f32 %v3349_v36, %v433_v54  ;;  %v763_v17 = vmul.f32 %v3378_v49, %v484_v50  ;;  %v764_v26 = vmul.f32 %v3378_v49, %v485_v47  ;;  %v625_v22 = vadd.f32 %v609_v58, %v572_v13  ;;  %v487_v47 = vld [vmem:[#allocation2 + $0x6b] sm:$0xff]  ;;  %v3526_v51 = vld [vmem:[#allocation2 + $0x81] sm:$0xff] }
  0x49   : > { %v573_v9 = vadd.f32 %v557_v40, %v521_v56  ;;  %v3508_v33 = vmul.f32 %v3383_v25, %v536_v41  ;;  %v455_v20 = vmul.f32 %v3215_v2, %v435_v11  ;;  %v522_v3 = vadd.f32 %v506_v15, %v470_v10  ;;  %v3539_v40 = vld [vmem:[#allocation2 + $0x82] sm:$0xff] }
  0x4a   : > { %v728_v38 = vadd.f32 %v712_v12, %v676_v63  ;;  %v3511_v39 = vadd.f32 %v763_v17, %v727_v59  ;;  %v3514_v54 = vmul.f32 %v3383_v25, %v537_v4  ;;  %v661_v50 = vmul.f32 %v3363_v42, %v382_v16 }
  0x4b   : > { %5520 = vst [vmem:[#allocation4_spill] sm:$0xff] %v3508_v33  ;;  %v471_v32 = vadd.f32 %v455_v20, %v419_v60  ;;  %v558_v43 = vmul.f32 %v3262_v28, %v538_v19  ;;  %v610_v41 = vmul.f32 %v3301_v57, %v3472_v30  ;;  %v368_v13 = vmul.f32 %v3210_v1, %v3505_v24  ;;  %v539_v60 = vld [vmem:[#allocation2 + $0x6c] sm:$0xff]  ;;  %v3553_v20 = vld [vmem:[#allocation2 + $0x7b] sm:$0xff] }
  0x4c   : > { %5521 = vst [vmem:[#allocation5_spill] sm:$0xff] %v3511_v39  ;;  %5522 = vst [vmem:[#allocation6_spill] sm:$0xff] %v3514_v54  ;;  %v3530_v4 = vmul.f32 %v3430_v46, %v3421_v27  ;;  %v677_v16 = vadd.f32 %v661_v50, %v625_v22  ;;  %v713_v56 = vmul.f32 %v3349_v36, %v434_v61 }
  0x4d   : > { %v404_v29 = vmul.f32 %v3223_v6, %v384_v34  ;;  %v3536_v59 = vmul.f32 %v3430_v46, %v3459_v18  ;;  %v507_v63 = vmul.f32 %v3235_v7, %v487_v47  ;;  %v574_v10 = vadd.f32 %v558_v43, %v522_v3 }
  0x4e   : > { %v626_v58 = vadd.f32 %v610_v41, %v573_v9  ;;  %v456_v27 = vmul.f32 %v3215_v2, %v3522_v44  ;;  %v369_v61 = vmul.f32 %v3210_v1, %v3524_v45  ;;  %v405_v12 = vmul.f32 %v3223_v6, %v3526_v51 }
  0x4f   : > { %5523 = vst [vmem:[#allocation7_spill] sm:$0xff] %v3536_v59  ;;  %v420_v15 = vadd.f32 %v404_v29, %v368_v13  ;;  %v3547_v17 = vadd.f32 %v764_v26, %v728_v38  ;;  %v523_v18 = vadd.f32 %v507_v63, %v471_v32  ;;  %v662_v22 = vmul.f32 %v3363_v42, %v3478_v35  ;;  %v3560_v29 = vld [vmem:[#allocation2 + $0x83] sm:$0xff] }
  0x50   : > { %v611_v9 = vmul.f32 %v3301_v57, %v3505_v24  ;;  %v729_v3 = vadd.f32 %v713_v56, %v677_v16  ;;  %v421_v43 = vadd.f32 %v405_v12, %v369_v61  ;;  %v457_v41 = vmul.f32 %v3215_v2, %v3539_v40  ;;  %v3562_v35 = vld [vmem:[#allocation2 + $0x7c] sm:$0xff]  ;;  %v3569_v61 = vld [vmem:[#allocation2 + $0x91] sm:$0xff]  ;;  %v3580_v12 = vld [vmem:[#allocation2 + $0x84] sm:$0xff] }
  0x51   : > { %5524 = vst [vmem:[#allocation8_spill] sm:$0xff] %v3547_v17  ;;  %v472_v50 = vadd.f32 %v456_v27, %v420_v15  ;;  %v559_v13 = vmul.f32 %v3262_v28, %v539_v60  ;;  %v714_v26 = vmul.f32 %v3349_v36, %v435_v11  ;;  %v765_v38 = vmul.f32 %v3378_v49, %v486_v53  ;;  %v3567_v27 = vld [vmem:[#allocation2 + $0x90] sm:$0xff] }
  0x52   : > { %v627_v32 = vadd.f32 %v611_v9, %v574_v10  ;;  %v678_v63 = vadd.f32 %v662_v22, %v626_v58  ;;  %v766_v16 = vmul.f32 %v3378_v49, %v487_v47  ;;  %v473_v56 = vadd.f32 %v457_v41, %v421_v43  ;;  %v3571_v11 = vld [vmem:[#allocation2 + $0x92] sm:$0xff] }
  0x53   : > { %v508_v15 = vmul.f32 %v3235_v7, %v3553_v20  ;;  %v575_v53 = vadd.f32 %v559_v13, %v523_v18  ;;  %v3574_v10 = vmul.f32 %v3383_v25, %v538_v19  ;;  %v3577_v58 = vmul.f32 %v3383_v25, %v539_v60  ;;  %v3582_v22 = vld [vmem:[#allocation2 + $0x98] sm:$0xff]  ;;  %v270_v43 = vld [vmem:[%s3230_s22 + $0xb0] sm:$0xff] }
  0x54   : > { %v663_v47 = vmul.f32 %v3363_v42, %v384_v34  ;;  %v3584_v9 = vld [vmem:[#allocation2 + $0x99] sm:$0xff]  ;;  %v3587_v41 = vadd.f32 %v765_v38, %v729_v3  ;;  %v3591_v18 = vmul.f32 %v3430_v46, %v3472_v30  ;;  %v509_v19 = vmul.f32 %v3235_v7, %v3560_v29  ;;  %303 = vst.msk [vmem:[#allocation2 + $0x13a] sm:$0xff] %vm192_vm0, %v270_v43 }
  0x55   : > { %5525 = vst [vmem:[#allocation9_spill] sm:$0xff] %v3574_v10  ;;  %5526 = vst [vmem:[#allocation10_spill] sm:$0xff] %v3577_v58  ;;  %v524_v34 = vadd.f32 %v508_v15, %v472_v50  ;;  %v3595_v60 = vld [vmem:[#allocation2 + $0x93] sm:$0xff]  ;;  %v272_v58 = vld [vmem:[%s3230_s22 + $0xc0] sm:$0xff]  ;;  %v612_v38 = vmul.f32 %v3301_v57, %v3524_v45  ;;  %v370_v30 = vmul.f32 %v3210_v1, %v3567_v27 }
  0x56   : > { %5527 = vst [vmem:[#allocation11_spill] sm:$0xff] %v3587_v41  ;;  %5528 = vst [vmem:[#allocation12_spill] sm:$0xff] %v3591_v18  ;;  %v271_v13 = vld [vmem:[%s3230_s22 + $0xb8] sm:$0xff]  ;;  %v273_v10 = vld [vmem:[%s3230_s22 + $0xc8] sm:$0xff]  ;;  %v679_v3 = vadd.f32 %v663_v47, %v627_v32  ;;  %v406_v41 = vmul.f32 %v3223_v6, %v3569_v61  ;;  %v730_v47 = vadd.f32 %v714_v26, %v678_v63 }
  0x57   : > { %304 = vst.msk [vmem:[#allocation2 + $0x142] sm:$0xff] %vm192_vm0, %v271_v13  ;;  %305 = vst.msk [vmem:[#allocation2 + $0x152] sm:$0xff] %vm192_vm0, %v272_v58  ;;  %v274_v50 = vld [vmem:[%s3230_s22 + $0xd0] sm:$0xff]  ;;  %v275_v32 = vld [vmem:[%s3230_s22 + $0xd8] sm:$0xff]  ;;  %v715_v43 = vmul.f32 %v3349_v36, %v3522_v44  ;;  %v525_v18 = vadd.f32 %v509_v19, %v473_v56  ;;  %v560_v54 = vmul.f32 %v3262_v28, %v3562_v35 }
  0x58   : > { %306 = vst.msk [vmem:[#allocation2 + $0x15a] sm:$0xff] %vm192_vm0, %v273_v10  ;;  %v276_v15 = vld [vmem:[%s3230_s22 + $0xe0] sm:$0xff]  ;;  %307 = vst.msk [vmem:[#allocation2 + $0x16a] sm:$0xff] %vm192_vm0, %v274_v50  ;;  %v277_v58 = vld [vmem:[%s3230_s22 + $0xe8] sm:$0xff]  ;;  %v628_v17 = vadd.f32 %v612_v38, %v575_v53  ;;  %v422_v59 = vadd.f32 %v406_v41, %v370_v30  ;;  %v458_v26 = vmul.f32 %v3215_v2, %v3571_v11 }
  0x59   : > { %308 = vst.msk [vmem:[#allocation2 + $0x172] sm:$0xff] %vm192_vm0, %v275_v32  ;;  %309 = vst.msk [vmem:[#allocation2 + $0x182] sm:$0xff] %vm192_vm0, %v276_v15  ;;  %v278_v13 = vld [vmem:[%s3230_s22 + $0xf0] sm:$0xff]  ;;  %v279_v10 = vld [vmem:[%s3230_s22 + $0xf8] sm:$0xff]  ;;  %v371_v44 = vmul.f32 %v3210_v1, %v3582_v22  ;;  %v3632_v63 = vmul.f32 %v3430_v46, %v3505_v24  ;;  %v561_v56 = vmul.f32 %v3262_v28, %v3580_v12  ;;  %s4428_s22 = scalar_lea.vmem %s5518_s2, %s2999_s17 }
  0x5a   : > { %310 = vst.msk [vmem:[#allocation2 + $0x18a] sm:$0xff] %vm192_vm0, %v277_v58  ;;  %311 = vst.msk [vmem:[#allocation2 + $0x19a] sm:$0xff] %vm192_vm0, %v278_v13  ;;  %v576_v53 = vadd.f32 %v560_v54, %v524_v34  ;;  %v407_v41 = vmul.f32 %v3223_v6, %v3584_v9  ;;  %v731_v19 = vadd.f32 %v715_v43, %v679_v3  ;;  %v439_v50 = vld [vmem:[#allocation2 + $0x9a] sm:$0xff]  ;;  %v3650_v43 = vld [vmem:[#allocation2 + $0xa8] sm:$0xff] }
  0x5b   : > { %312 = vst.msk [vmem:[#allocation2 + $0x1a2] sm:$0xff] %vm192_vm0, %v279_v10  ;;  %5529 = vst [vmem:[#allocation13_spill] sm:$0xff] %v3632_v63  ;;  %v664_v38 = vmul.f32 %v3363_v42, %v3526_v51  ;;  %v474_v30 = vadd.f32 %v458_v26, %v422_v59  ;;  %v510_v32 = vmul.f32 %v3235_v7, %v3595_v60  ;;  %v542_v54 = vld [vmem:[#allocation2 + $0x94] sm:$0xff]  ;;  %v388_v26 = vld [vmem:[#allocation2 + $0xa9] sm:$0xff] }
  0x5c   : > { %v3642_v15 = vadd.f32 %v766_v16, %v730_v47  ;;  %v577_v24 = vadd.f32 %v561_v56, %v525_v18  ;;  %v613_v58 = vmul.f32 %v3301_v57, %v3567_v27  ;;  %v423_v13 = vadd.f32 %v407_v41, %v371_v44  ;;  %v491_v44 = vld [vmem:[#allocation2 + $0x9b] sm:$0xff]  ;;  %v440_v56 = vld [vmem:[#allocation2 + $0xaa] sm:$0xff] }
  0x5d   : > { %v680_v34 = vadd.f32 %v664_v38, %v628_v17  ;;  %v716_v3 = vmul.f32 %v3349_v36, %v3539_v40  ;;  %v767_v51 = vmul.f32 %v3378_v49, %v3553_v20  ;;  %v526_v59 = vadd.f32 %v510_v32, %v474_v30  ;;  %v3672_v30 = vld [vmem:[#allocation2 + $0xb0] sm:$0xff] }
  0x5e   : > { %5530 = vst [vmem:[#allocation14_spill] sm:$0xff] %v3642_v15  ;;  %v768_v16 = vmul.f32 %v3378_v49, %v3560_v29  ;;  %v629_v47 = vadd.f32 %v613_v58, %v576_v53  ;;  %v459_v18 = vmul.f32 %v3215_v2, %v439_v50  ;;  %v614_v10 = vmul.f32 %v3301_v57, %v3582_v22 }
  0x5f   : > { %v3657_v17 = vadd.f32 %v767_v51, %v731_v19  ;;  %v3661_v40 = vmul.f32 %v3383_v25, %v3562_v35  ;;  %v3665_v20 = vmul.f32 %v3383_v25, %v3580_v12  ;;  %v562_v29 = vmul.f32 %v3262_v28, %v542_v54  ;;  %v3674_v35 = vld [vmem:[#allocation2 + $0xb1] sm:$0xff] }
  0x60   : > { %v665_v53 = vmul.f32 %v3363_v42, %v3569_v61  ;;  %v475_v41 = vadd.f32 %v459_v18, %v423_v13  ;;  %v630_v38 = vadd.f32 %v614_v10, %v577_v24  ;;  %v372_v19 = vmul.f32 %v3210_v1, %v3650_v43  ;;  %v441_v18 = vld [vmem:[#allocation2 + $0xb2] sm:$0xff]  ;;  %v543_v10 = vld [vmem:[#allocation2 + $0x9c] sm:$0xff] }
  0x61   : > { %5531 = vst [vmem:[#allocation15_spill] sm:$0xff] %v3657_v17  ;;  %5532 = vst [vmem:[#allocation16_spill] sm:$0xff] %v3661_v40  ;;  %v732_v32 = vadd.f32 %v716_v3, %v680_v34  ;;  %v3678_v12 = vmul.f32 %v3430_v46, %v3524_v45  ;;  %v578_v58 = vadd.f32 %v562_v29, %v526_v59 }
  0x62   : > { %5533 = vst [vmem:[#allocation17_spill] sm:$0xff] %v3665_v20  ;;  %v408_v51 = vmul.f32 %v3223_v6, %v388_v26  ;;  %v681_v20 = vadd.f32 %v665_v53, %v629_v47  ;;  %v511_v61 = vmul.f32 %v3235_v7, %v491_v44  ;;  %v666_v24 = vmul.f32 %v3363_v42, %v3584_v9  ;;  %v492_v53 = vld [vmem:[#allocation2 + $0xab] sm:$0xff] }
  0x63   : > { %5534 = vst [vmem:[#allocation18_spill] sm:$0xff] %v3678_v12  ;;  %v460_v13 = vmul.f32 %v3215_v2, %v440_v56  ;;  %v615_v34 = vmul.f32 %v3301_v57, %v3650_v43  ;;  %v373_v45 = vmul.f32 %v3210_v1, %v3672_v30  ;;  %v409_v3 = vmul.f32 %v3223_v6, %v3674_v35 }
  0x64   : > { %v424_v40 = vadd.f32 %v408_v51, %v372_v19  ;;  %v717_v59 = vmul.f32 %v3349_v36, %v3571_v11  ;;  %v3695_v9 = vmul.f32 %v3430_v46, %v3567_v27  ;;  %v527_v47 = vadd.f32 %v511_v61, %v475_v41  ;;  %v493_v11 = vld [vmem:[#allocation2 + $0xb3] sm:$0xff] }
  0x65   : > { %v682_v29 = vadd.f32 %v666_v24, %v630_v38  ;;  %v631_v51 = vadd.f32 %v615_v34, %v578_v58  ;;  %v425_v17 = vadd.f32 %v409_v3, %v373_v45  ;;  %v461_v12 = vmul.f32 %v3215_v2, %v441_v18 }
  0x66   : > { %5535 = vst [vmem:[#allocation19_spill] sm:$0xff] %v3695_v9  ;;  %v476_v19 = vadd.f32 %v460_v13, %v424_v40  ;;  %v3698_v15 = vadd.f32 %v768_v16, %v732_v32  ;;  %v733_v63 = vadd.f32 %v717_v59, %v681_v20  ;;  %v563_v33 = vmul.f32 %v3262_v28, %v543_v10  ;;  %v544_v20 = vld [vmem:[#allocation2 + $0xac] sm:$0xff]  ;;  %v3710_v32 = vld [vmem:[#allocation2 + $0xc0] sm:$0xff] }
  0x67   : > { %v718_v39 = vmul.f32 %v3349_v36, %v439_v50  ;;  %v769_v27 = vmul.f32 %v3378_v49, %v3595_v60  ;;  %v667_v41 = vmul.f32 %v3363_v42, %v388_v26  ;;  %v477_v38 = vadd.f32 %v461_v12, %v425_v17  ;;  %v649_v50 = vld [vmem:[#allocation2 + $0xc1] sm:$0xff]  ;;  %v545_v12 = vld [vmem:[#allocation2 + $0xb4] sm:$0xff] }
  0x68   : > { %5536 = vst [vmem:[#allocation20_spill] sm:$0xff] %v3698_v15  ;;  %v512_v40 = vmul.f32 %v3235_v7, %v492_v53  ;;  %v579_v58 = vadd.f32 %v563_v33, %v527_v47  ;;  %v770_v24 = vmul.f32 %v3378_v49, %v491_v44  ;;  %v3708_v16 = vmul.f32 %v3383_v25, %v542_v54  ;;  %v701_v44 = vld [vmem:[#allocation2 + $0xc2] sm:$0xff]  ;;  %v1689_v15 = vld [vmem:[#allocation2 + $0x171] sm:$0xff] }
  0x69   : > { %v734_v61 = vadd.f32 %v718_v39, %v682_v29  ;;  %v3713_v13 = vmul.f32 %v3383_v25, %v543_v10  ;;  %v683_v60 = vadd.f32 %v667_v41, %v631_v51  ;;  %v513_v26 = vmul.f32 %v3235_v7, %v493_v11  ;;  %v3737_v41 = vld [vmem:[#allocation2 + $0xc8] sm:$0xff] }
  0x6a   : > { %5537 = vst [vmem:[#allocation21_spill] sm:$0xff] %v3708_v16  ;;  %v528_v17 = vadd.f32 %v512_v40, %v476_v19  ;;  %v3716_v34 = vadd.f32 %v769_v27, %v733_v63  ;;  %v3720_v33 = vmul.f32 %v3430_v46, %v3582_v22  ;;  %v719_v39 = vmul.f32 %v3349_v36, %v440_v56 }
  0x6b   : > { %5538 = vst [vmem:[#allocation22_spill] sm:$0xff] %v3713_v13  ;;  %v616_v54 = vmul.f32 %v3301_v57, %v3672_v30  ;;  %v529_v45 = vadd.f32 %v513_v26, %v477_v38  ;;  %v564_v10 = vmul.f32 %v3262_v28, %v544_v20  ;;  %v1658_v3 = vmul.f32 %v3210_v1, %v3710_v32  ;;  %v650_v38 = vld [vmem:[#allocation2 + $0xc9] sm:$0xff] }
  0x6c   : > { %5539 = vst [vmem:[#allocation23_spill] sm:$0xff] %v3716_v34  ;;  %5540 = vst [vmem:[#allocation24_spill] sm:$0xff] %v3720_v33  ;;  %v1690_v59 = vmul.f32 %v3223_v6, %v649_v50  ;;  %v3729_v63 = vadd.f32 %v770_v24, %v734_v61  ;;  %v3733_v22 = vmul.f32 %v3430_v46, %v3650_v43  ;;  %v753_v26 = vld [vmem:[#allocation2 + $0xc3] sm:$0xff] }
  0x6d   : > { %v565_v56 = vmul.f32 %v3262_v28, %v545_v12  ;;  %v632_v47 = vadd.f32 %v616_v54, %v579_v58  ;;  %v735_v29 = vadd.f32 %v719_v39, %v683_v60  ;;  %v580_v19 = vadd.f32 %v564_v10, %v528_v17  ;;  %v702_v39 = vld [vmem:[#allocation2 + $0xca] sm:$0xff] }
  0x6e   : > { %5541 = vst [vmem:[#allocation25_spill] sm:$0xff] %v3729_v63  ;;  %5542 = vst [vmem:[#allocation26_spill] sm:$0xff] %v3733_v22  ;;  %v1706_v51 = vadd.f32 %v1690_v59, %v1658_v3  ;;  %v1738_v27 = vmul.f32 %v3215_v2, %v701_v44  ;;  %v668_v40 = vmul.f32 %v3363_v42, %v3674_v35  ;;  %v754_v59 = vld [vmem:[#allocation2 + $0xcb] sm:$0xff] }
  0x6f   : > { %v720_v61 = vmul.f32 %v3349_v36, %v441_v18  ;;  %v771_v24 = vmul.f32 %v3378_v49, %v492_v53  ;;  %v772_v43 = vmul.f32 %v3378_v49, %v493_v11  ;;  %v581_v13 = vadd.f32 %v565_v56, %v529_v45  ;;  %v3755_v53 = vld [vmem:[#allocation2 + $0xd8] sm:$0xff]  ;;  %v805_v56 = vld [vmem:[#allocation2 + $0xc4] sm:$0xff] }
  0x70   : > { %v3745_v58 = vmul.f32 %v3383_v25, %v544_v20  ;;  %v617_v60 = vmul.f32 %v3301_v57, %v3710_v32  ;;  %v1754_v17 = vadd.f32 %v1738_v27, %v1706_v51  ;;  %v684_v54 = vadd.f32 %v668_v40, %v632_v47  ;;  %v909_v11 = vld [vmem:[#allocation2 + $0xd9] sm:$0xff] }
  0x71   : > { %v3750_v10 = vmul.f32 %v3383_v25, %v545_v12  ;;  %v1659_v35 = vmul.f32 %v3210_v1, %v3737_v41  ;;  %v1691_v18 = vmul.f32 %v3223_v6, %v650_v38  ;;  %v3757_v45 = vadd.f32 %v771_v24, %v735_v29 }
  0x72   : > { %5543 = vst [vmem:[#allocation27_spill] sm:$0xff] %v3745_v58  ;;  %v633_v20 = vadd.f32 %v617_v60, %v580_v19  ;;  %v618_v3 = vmul.f32 %v3301_v57, %v3737_v41  ;;  %v1786_v47 = vmul.f32 %v3235_v7, %v753_v26  ;;  %v3764_v12 = vmul.f32 %v3430_v46, %v3672_v30  ;;  %v3773_v58 = vld [vmem:[#allocation2 + $0xe0] sm:$0xff]  ;;  %v806_v30 = vld [vmem:[#allocation2 + $0xcc] sm:$0xff] }
  0x73   : > { %5544 = vst [vmem:[#allocation28_spill] sm:$0xff] %v3750_v10  ;;  %5545 = vst [vmem:[#allocation29_spill] sm:$0xff] %v3757_v45  ;;  %v669_v51 = vmul.f32 %v3363_v42, %v649_v50  ;;  %v1707_v27 = vadd.f32 %v1691_v18, %v1659_v35  ;;  %v1739_v40 = vmul.f32 %v3215_v2, %v702_v39  ;;  %v3768_v10 = vld [vmem:[#allocation2 + $0xda] sm:$0xff] }
  0x74   : > { %5546 = vst [vmem:[#allocation30_spill] sm:$0xff] %v3764_v12  ;;  %v634_v29 = vadd.f32 %v618_v3, %v581_v13  ;;  %v1802_v19 = vadd.f32 %v1786_v47, %v1754_v17  ;;  %v1660_v24 = vmul.f32 %v3210_v1, %v3755_v53  ;;  %v1692_v60 = vmul.f32 %v3223_v6, %v909_v11  ;;  %v910_v45 = vld [vmem:[#allocation2 + $0xe1] sm:$0xff] }
  0x75   : > { %v736_v63 = vadd.f32 %v720_v61, %v684_v54  ;;  %v1755_v12 = vadd.f32 %v1739_v40, %v1707_v27  ;;  %v1787_v50 = vmul.f32 %v3235_v7, %v754_v59  ;;  %v1834_v35 = vmul.f32 %v3262_v28, %v805_v56  ;;  %v1772_v40 = vld [vmem:[#allocation2 + $0xdb] sm:$0xff] }
  0x76   : > { %v685_v18 = vadd.f32 %v669_v51, %v633_v20  ;;  %v670_v22 = vmul.f32 %v3363_v42, %v650_v38  ;;  %v1708_v13 = vadd.f32 %v1692_v60, %v1660_v24  ;;  %v1740_v17 = vmul.f32 %v3215_v2, %v3768_v10  ;;  %v1725_v51 = vld [vmem:[#allocation2 + $0xe2] sm:$0xff] }
  0x77   : > { %v1803_v3 = vadd.f32 %v1787_v50, %v1755_v12  ;;  %v1850_v47 = vadd.f32 %v1834_v35, %v1802_v19  ;;  %v1661_v16 = vmul.f32 %v3210_v1, %v3773_v58  ;;  %v1693_v61 = vmul.f32 %v3223_v6, %v910_v45 }
  0x78   : > { %v721_v54 = vmul.f32 %v3349_v36, %v701_v44  ;;  %v3786_v27 = vmul.f32 %v3430_v46, %v3710_v32  ;;  %v686_v20 = vadd.f32 %v670_v22, %v634_v29  ;;  %v1835_v38 = vmul.f32 %v3262_v28, %v806_v30  ;;  %v3795_v32 = vld [vmem:[#allocation2 + $0xf0] sm:$0xff] }
  0x79   : > { %v722_v24 = vmul.f32 %v3349_v36, %v702_v39  ;;  %v1756_v12 = vadd.f32 %v1740_v17, %v1708_v13  ;;  %v1883_v19 = vmul.f32 %v3301_v57, %v3755_v53  ;;  %v1709_v60 = vadd.f32 %v1693_v61, %v1661_v16  ;;  %v1678_v13 = vld [vmem:[#allocation2 + $0xf1] sm:$0xff] }
  0x7a   : > { %5547 = vst [vmem:[#allocation31_spill] sm:$0xff] %v3786_v27  ;;  %v3792_v50 = vadd.f32 %v772_v43, %v736_v63  ;;  %v737_v35 = vadd.f32 %v721_v54, %v685_v18  ;;  %v773_v44 = vmul.f32 %v3378_v49, %v753_v26  ;;  %v1851_v34 = vadd.f32 %v1835_v38, %v1803_v3  ;;  %v1773_v63 = vld [vmem:[#allocation2 + $0xe3] sm:$0xff] }
  0x7b   : > { %v774_v22 = vmul.f32 %v3378_v49, %v754_v59  ;;  %v1899_v29 = vadd.f32 %v1883_v19, %v1850_v47  ;;  %v1741_v27 = vmul.f32 %v3215_v2, %v1725_v51  ;;  %v1788_v39 = vmul.f32 %v3235_v7, %v1772_v40  ;;  %v1820_v43 = vld [vmem:[#allocation2 + $0xdc] sm:$0xff]  ;;  %v1726_v7 = vld [vmem:[#allocation2 + $0xf2] sm:$0xff] }
  0x7c   : > { %5548 = vst [vmem:[#allocation32_spill] sm:$0xff] %v3792_v50  ;;  %v738_v17 = vadd.f32 %v722_v24, %v686_v20  ;;  %v3801_v33 = vmul.f32 %v3383_v25, %v805_v56  ;;  %v3804_v16 = vmul.f32 %v3383_v25, %v806_v30  ;;  %v1884_v26 = vmul.f32 %v3301_v57, %v3773_v58  ;;  %v3811_v47 = vld [vmem:[#allocation2 + $0xf8] sm:$0xff]  ;;  %v1821_v24 = vld [vmem:[#allocation2 + $0xe4] sm:$0xff]  ;;  %v3843_v19 = vld [vmem:[%s5517_s1] ss:$0 sm:$0xff] }
  0x7d   : > { %v1931_v59 = vmul.f32 %v3363_v42, %v909_v11  ;;  %v1757_v18 = vadd.f32 %v1741_v27, %v1709_v60  ;;  %v1804_v3 = vadd.f32 %v1788_v39, %v1756_v12  ;;  %v1662_v2 = vmul.f32 %v3210_v1, %v3795_v32  ;;  %v3820_v20 = vld [vmem:[#allocation2 + $0xf9] sm:$0xff]  ;;  %v3829_v1 = vld [vmem:[%s5517_s1 + $0x3] ss:$0 sm:$0xff]  ;;  %v3837_v12 = vld [vmem:[%s5517_s1 + $0x2] ss:$0 sm:$0xff] }
  0x7e   : > { %5549 = vst [vmem:[#allocation33_spill] sm:$0xff] %v3801_v33  ;;  %5550 = vst [vmem:[#allocation34_spill] sm:$0xff] %v3804_v16  ;;  %v3813_v56 = vadd.f32 %v773_v44, %v737_v35  ;;  %v3817_v30 = vmul.f32 %v3430_v46, %v3737_v41  ;;  %v1900_v61 = vadd.f32 %v1884_v26, %v1851_v34  ;;  %v3847_v35 = vld [vmem:[#allocation2 + $0xfa] sm:$0xff]  ;;  %v1680_v33 = vld [vmem:[#allocation2 + $0x109] sm:$0xff] }
  0x7f   : > { %v1694_v54 = vmul.f32 %v3223_v6, %v1678_v13  ;;  %v3824_v11 = vmul.f32 %v3430_v46, %v3755_v53  ;;  %v1947_v27 = vadd.f32 %v1931_v59, %v1899_v29  ;;  %v1789_v38 = vmul.f32 %v3829_v1, %v1773_v63  ;;  %v3849_v44 = vld [vmem:[#allocation2 + $0xf3] sm:$0xff]  ;;  %v3856_v26 = vld [vmem:[%s5517_s1 + $0x1] ss:$0 sm:$0xff] }
  0x80   : > { %5551 = vst [vmem:[#allocation35_spill] sm:$0xff] %v3813_v56  ;;  %5552 = vst [vmem:[#allocation36_spill] sm:$0xff] %v3817_v30  ;;  %v1836_v41 = vmul.f32 %v3262_v28, %v1820_v43  ;;  %v1932_v34 = vmul.f32 %v3363_v42, %v910_v45  ;;  %v1742_v53 = vmul.f32 %v3837_v12, %v1726_v7 }
  0x81   : > { %5553 = vst [vmem:[#allocation37_spill] sm:$0xff] %v3824_v11  ;;  %v1710_v6 = vadd.f32 %v1694_v54, %v1662_v2  ;;  %v1663_v60 = vmul.f32 %v3843_v19, %v3811_v47  ;;  %v3851_v45 = vadd.f32 %v774_v22, %v738_v17  ;;  %v1805_v29 = vadd.f32 %v1789_v38, %v1757_v18 }
  0x82   : > { %v1852_v39 = vadd.f32 %v1836_v41, %v1804_v3  ;;  %v1695_v59 = vmul.f32 %v3856_v26, %v3820_v20  ;;  %v1979_v2 = vmul.f32 %v3349_v36, %v3768_v10  ;;  %v1837_v54 = vmul.f32 %v3262_v28, %v1821_v24 }
  0x83   : > { %5554 = vst [vmem:[#allocation38_spill] sm:$0xff] %v3851_v45  ;;  %v1948_v16 = vadd.f32 %v1932_v34, %v1900_v61  ;;  %v1758_v11 = vadd.f32 %v1742_v53, %v1710_v6  ;;  %v1885_v22 = vmul.f32 %v3301_v57, %v3795_v32  ;;  %v1743_v18 = vmul.f32 %v3837_v12, %v3847_v35  ;;  %v1775_v61 = vld [vmem:[#allocation2 + $0xfb] sm:$0xff]  ;;  %v3875_v6 = vld [vmem:[#allocation2 + $0x108] sm:$0xff] }
  0x84   : > { %v1711_v17 = vadd.f32 %v1695_v59, %v1663_v60  ;;  %v1790_v3 = vmul.f32 %v3829_v1, %v3849_v44  ;;  %v1995_v38 = vadd.f32 %v1979_v2, %v1947_v27  ;;  %v3871_v41 = vmul.f32 %v3430_v46, %v3773_v58  ;;  %v1822_v34 = vld [vmem:[#allocation2 + $0xf4] sm:$0xff] }
  0x85   : > { %v1980_v10 = vmul.f32 %v3349_v36, %v1725_v51  ;;  %v2027_v28 = vmul.f32 %v3378_v49, %v1772_v40  ;;  %v1853_v53 = vadd.f32 %v1837_v54, %v1805_v29  ;;  %v1901_v60 = vadd.f32 %v1885_v22, %v1852_v39  ;;  %v3886_v40 = vld [vmem:[%s5517_s1 + $0x4] ss:$0 sm:$0xff]  ;;  %v1681_v39 = vld [vmem:[#allocation2 + $0x111] sm:$0xff] }
  0x86   : > { %5555 = vst [vmem:[#allocation39_spill] sm:$0xff] %v3871_v41  ;;  %v1759_v59 = vadd.f32 %v1743_v18, %v1711_v17  ;;  %v1806_v45 = vadd.f32 %v1790_v3, %v1758_v11  ;;  %v2028_v27 = vmul.f32 %v3378_v49, %v1773_v63  ;;  %v3879_v2 = vmul.f32 %v3383_v25, %v1820_v43  ;;  %v1728_v63 = vld [vmem:[#allocation2 + $0x10a] sm:$0xff]  ;;  %v1823_v17 = vld [vmem:[#allocation2 + $0xfc] sm:$0xff] }
  0x87   : > { %v1996_v56 = vadd.f32 %v1980_v10, %v1948_v16  ;;  %v1933_v58 = vmul.f32 %v3363_v42, %v1678_v13  ;;  %v1791_v51 = vmul.f32 %v3829_v1, %v1775_v61  ;;  %v1838_v29 = vmul.f32 %v3886_v40, %v1822_v34  ;;  %v3893_v43 = vld [vmem:[#allocation2 + $0x110] sm:$0xff] }
  0x88   : > { %5556 = vst [vmem:[#allocation40_spill] sm:$0xff] %v3879_v2  ;;  %v1886_v11 = vmul.f32 %v3301_v57, %v3811_v47  ;;  %v1664_v16 = vmul.f32 %v3843_v19, %v3875_v6  ;;  %v3895_v13 = vadd.f32 %v2027_v28, %v1995_v38  ;;  %v3898_v54 = vmul.f32 %v3383_v25, %v1821_v24  ;;  %v3902_v41 = vld [vmem:[#allocation2 + $0x10b] sm:$0xff] }
  0x89   : > { %v1981_v22 = vmul.f32 %v3349_v36, %v1726_v7  ;;  %v1696_v18 = vmul.f32 %v3856_v26, %v1680_v33  ;;  %v1949_v3 = vadd.f32 %v1933_v58, %v1901_v60  ;;  %v1807_v10 = vadd.f32 %v1791_v51, %v1759_v59  ;;  %v1729_v28 = vld [vmem:[#allocation2 + $0x112] sm:$0xff] }
  0x8a   : > { %5557 = vst [vmem:[#allocation41_spill] sm:$0xff] %v3895_v13  ;;  %5558 = vst [vmem:[#allocation42_spill] sm:$0xff] %v3898_v54  ;;  %v1854_v57 = vadd.f32 %v1838_v29, %v1806_v45  ;;  %v1902_v2 = vadd.f32 %v1886_v11, %v1853_v53  ;;  %v1744_v50 = vmul.f32 %v3837_v12, %v1728_v63  ;;  %v3918_v53 = vld [vmem:[%s5517_s1 + $0x5] ss:$0 sm:$0xff]  ;;  %v1777_v13 = vld [vmem:[#allocation2 + $0x113] sm:$0xff] }
  0x8b   : > { %v1712_v30 = vadd.f32 %v1696_v18, %v1664_v16  ;;  %v1665_v38 = vmul.f32 %v3843_v19, %v3893_v43  ;;  %v1697_v24 = vmul.f32 %v3856_v26, %v1681_v39  ;;  %v3908_v54 = vadd.f32 %v2028_v27, %v1996_v56  ;;  %v1824_v16 = vld [vmem:[#allocation2 + $0x10c] sm:$0xff] }
  0x8c   : > { %v3912_v7 = vmul.f32 %v3430_v46, %v3795_v32  ;;  %v1839_v45 = vmul.f32 %v3886_v40, %v1823_v17  ;;  %v1887_v60 = vmul.f32 %v3918_v53, %v3875_v6  ;;  %v1934_v59 = vmul.f32 %v3363_v42, %v3820_v20 }
  0x8d   : > { %5559 = vst [vmem:[#allocation43_spill] sm:$0xff] %v3908_v54  ;;  %v1760_v58 = vadd.f32 %v1744_v50, %v1712_v30  ;;  %v1713_v56 = vadd.f32 %v1697_v24, %v1665_v38  ;;  %v1792_v27 = vmul.f32 %v3829_v1, %v3902_v41  ;;  %v1982_v32 = vmul.f32 %v3349_v36, %v3847_v35  ;;  %v3931_v50 = vld [vmem:[#allocation2 + $0x120] sm:$0xff] }
  0x8e   : > { %5560 = vst [vmem:[#allocation44_spill] sm:$0xff] %v3912_v7  ;;  %v2029_v51 = vmul.f32 %v3378_v49, %v3849_v44  ;;  %v1903_v29 = vadd.f32 %v1887_v60, %v1854_v57  ;;  %v1745_v11 = vmul.f32 %v3837_v12, %v1729_v28  ;;  %v1997_v18 = vadd.f32 %v1981_v22, %v1949_v3  ;;  %v1682_v30 = vld [vmem:[#allocation2 + $0x121] sm:$0xff]  ;;  %v1825_v60 = vld [vmem:[#allocation2 + $0x114] sm:$0xff] }
  0x8f   : > { %v1855_v54 = vadd.f32 %v1839_v45, %v1807_v10  ;;  %v1950_v7 = vadd.f32 %v1934_v59, %v1902_v2  ;;  %v1808_v20 = vadd.f32 %v1792_v27, %v1760_v58  ;;  %v2030_v38 = vmul.f32 %v3378_v49, %v1775_v61  ;;  %v1730_v10 = vld [vmem:[#allocation2 + $0x122] sm:$0xff] }
  0x90   : > { %v3935_v24 = vmul.f32 %v3383_v25, %v1822_v34  ;;  %v1935_v35 = vmul.f32 %v3363_v42, %v1680_v33  ;;  %v1761_v44 = vadd.f32 %v1745_v11, %v1713_v56  ;;  %v3939_v57 = vmul.f32 %v3383_v25, %v1823_v17  ;;  %v3948_v49 = vld [vmem:[#allocation2 + $0x128] sm:$0xff] }
  0x91   : > { %v3943_v22 = vmul.f32 %v3430_v46, %v3811_v47  ;;  %v1840_v2 = vmul.f32 %v3886_v40, %v1824_v16  ;;  %v1888_v3 = vmul.f32 %v3918_v53, %v3893_v43  ;;  %v1793_v34 = vmul.f32 %v3829_v1, %v1777_v13  ;;  %v1683_v17 = vld [vmem:[#allocation2 + $0x129] sm:$0xff] }
  0x92   : > { %5561 = vst [vmem:[#allocation45_spill] sm:$0xff] %v3935_v24  ;;  %5562 = vst [vmem:[#allocation46_spill] sm:$0xff] %v3939_v57  ;;  %v1951_v61 = vadd.f32 %v1935_v35, %v1903_v29  ;;  %v1666_v33 = vmul.f32 %v3843_v19, %v3931_v50  ;;  %v1698_v25 = vmul.f32 %v3856_v26, %v1682_v30 }
  0x93   : > { %5563 = vst [vmem:[#allocation47_spill] sm:$0xff] %v3943_v22  ;;  %v1998_v45 = vadd.f32 %v1982_v32, %v1950_v7  ;;  %v1983_v47 = vmul.f32 %v3349_v36, %v1728_v63  ;;  %v1856_v59 = vadd.f32 %v1840_v2, %v1808_v20  ;;  %v1904_v58 = vadd.f32 %v1888_v3, %v1855_v54  ;;  %v1778_v36 = vld [vmem:[#allocation2 + $0x123] sm:$0xff]  ;;  %v4131_v22 = vld [vmem:[#allocation2 + $0x170] sm:$0xff] }
  0x94   : > { %v1809_v56 = vadd.f32 %v1793_v34, %v1761_v44  ;;  %v1714_v27 = vadd.f32 %v1698_v25, %v1666_v33  ;;  %v1746_v11 = vmul.f32 %v3837_v12, %v1730_v10  ;;  %v1667_v29 = vmul.f32 %v3843_v19, %v3948_v49  ;;  %v1731_v44 = vld [vmem:[#allocation2 + $0x12a] sm:$0xff]  ;;  %v3974_v3 = vld [vmem:[%s5517_s1 + $0x7] ss:$0 sm:$0xff]  ;;  %v3991_v33 = vld [vmem:[%s5517_s1 + $0x9] ss:$0 sm:$0xff] }
  0x95   : > { %v3958_v35 = vadd.f32 %v2029_v51, %v1997_v18  ;;  %v1936_v57 = vmul.f32 %v3363_v42, %v1681_v39  ;;  %v1889_v24 = vmul.f32 %v3918_v53, %v3931_v50  ;;  %v1699_v7 = vmul.f32 %v3856_v26, %v1683_v17  ;;  %v3999_v25 = vld [vmem:[%s5517_s1 + $0x6] ss:$0 sm:$0xff] }
  0x96   : > { %v1999_v63 = vadd.f32 %v1983_v47, %v1951_v61  ;;  %v3966_v54 = vmul.f32 %v3430_v46, %v3875_v6  ;;  %v1841_v32 = vmul.f32 %v3886_v40, %v1825_v60  ;;  %v1762_v20 = vadd.f32 %v1746_v11, %v1714_v27  ;;  %v3980_v6 = vld [vmem:[%s5517_s1 + $0x8] ss:$0 sm:$0xff] }
  0x97   : > { %5564 = vst [vmem:[#allocation48_spill] sm:$0xff] %v3958_v35  ;;  %v3969_v2 = vadd.f32 %v2030_v38, %v1998_v45  ;;  %v1952_v51 = vadd.f32 %v1936_v57, %v1904_v58  ;;  %v1905_v18 = vadd.f32 %v1889_v24, %v1856_v59  ;;  %v1715_v42 = vadd.f32 %v1699_v7, %v1667_v29  ;;  %v3985_v24 = vld [vmem:[#allocation2 + $0x138] sm:$0xff]  ;;  %v1826_v47 = vld [vmem:[#allocation2 + $0x124] sm:$0xff] }
  0x98   : > { %5565 = vst [vmem:[#allocation49_spill] sm:$0xff] %v3966_v54  ;;  %v1857_v39 = vadd.f32 %v1841_v32, %v1809_v56  ;;  %v1984_v61 = vmul.f32 %v3974_v3, %v1729_v28  ;;  %v2031_v38 = vmul.f32 %v3980_v6, %v3902_v41  ;;  %v1794_v57 = vmul.f32 %v3829_v1, %v1778_v36  ;;  %v1684_v59 = vld [vmem:[#allocation2 + $0x139] sm:$0xff]  ;;  %v1779_v56 = vld [vmem:[#allocation2 + $0x12b] sm:$0xff] }
  0x99   : > { %5566 = vst [vmem:[#allocation50_spill] sm:$0xff] %v3969_v2  ;;  %v2032_v34 = vmul.f32 %v3980_v6, %v1777_v13  ;;  %v3994_v28 = vmul.f32 %v3991_v33, %v1824_v16  ;;  %v1937_v41 = vmul.f32 %v3999_v25, %v1682_v30  ;;  %v1747_v45 = vmul.f32 %v3837_v12, %v1731_v44  ;;  %v4012_v32 = vld [vmem:[#allocation2 + $0x140] sm:$0xff] }
  0x9a   : > { %v4003_v13 = vadd.f32 %v2031_v38, %v1999_v63  ;;  %v4006_v58 = vmul.f32 %v3991_v33, %v1825_v60  ;;  %v1810_v27 = vadd.f32 %v1794_v57, %v1762_v20  ;;  %v1890_v16 = vmul.f32 %v3918_v53, %v3948_v49  ;;  %v1732_v57 = vld [vmem:[#allocation2 + $0x13a] sm:$0xff] }
  0x9b   : > { %5567 = vst [vmem:[#allocation51_spill] sm:$0xff] %v3994_v28  ;;  %v2000_v11 = vadd.f32 %v1984_v61, %v1952_v51  ;;  %v1953_v29 = vadd.f32 %v1937_v41, %v1905_v18  ;;  %v1763_v7 = vadd.f32 %v1747_v45, %v1715_v42  ;;  %v1668_v30 = vmul.f32 %v3843_v19, %v3985_v24  ;;  %v4014_v28 = vld [vmem:[#allocation2 + $0x141] sm:$0xff] }
  0x9c   : > { %5568 = vst [vmem:[#allocation52_spill] sm:$0xff] %v4003_v13  ;;  %5569 = vst [vmem:[#allocation53_spill] sm:$0xff] %v4006_v58  ;;  %v4018_v63 = vmul.f32 %v3430_v46, %v3893_v43  ;;  %v1842_v60 = vmul.f32 %v3886_v40, %v1826_v47  ;;  %v1906_v20 = vadd.f32 %v1890_v16, %v1857_v39  ;;  %v4029_v41 = vld [vmem:[#allocation2 + $0x142] sm:$0xff]  ;;  %v1827_v43 = vld [vmem:[#allocation2 + $0x12c] sm:$0xff] }
  0x9d   : > { %v1700_v38 = vmul.f32 %v3856_v26, %v1684_v59  ;;  %v1985_v51 = vmul.f32 %v3974_v3, %v1730_v10  ;;  %v4025_v18 = vmul.f32 %v3430_v46, %v3931_v50  ;;  %v1795_v42 = vmul.f32 %v3829_v1, %v1779_v56  ;;  %v4091_v2 = vld [vmem:[#allocation2 + $0x15a] sm:$0xff] }
  0x9e   : > { %5570 = vst [vmem:[#allocation54_spill] sm:$0xff] %v4018_v63  ;;  %v1938_v61 = vmul.f32 %v3999_v25, %v1683_v17  ;;  %v1858_v45 = vadd.f32 %v1842_v60, %v1810_v27  ;;  %v1669_v39 = vmul.f32 %v3843_v19, %v4012_v32  ;;  %v1701_v16 = vmul.f32 %v3856_v26, %v4014_v28 }
  0x9f   : > { %5571 = vst [vmem:[#allocation55_spill] sm:$0xff] %v4025_v18  ;;  %v1716_v58 = vadd.f32 %v1700_v38, %v1668_v30  ;;  %v4035_v10 = vadd.f32 %v2032_v34, %v2000_v11  ;;  %v2001_v13 = vadd.f32 %v1985_v51, %v1953_v29  ;;  %v1811_v46 = vadd.f32 %v1795_v42, %v1763_v7  ;;  %v4042_v30 = vld [vmem:[#allocation2 + $0x13b] sm:$0xff]  ;;  %v1781_v29 = vld [vmem:[#allocation2 + $0x143] sm:$0xff] }
  0xa0   : > { %v1748_v50 = vmul.f32 %v3837_v12, %v1732_v57  ;;  %v1954_v18 = vadd.f32 %v1938_v61, %v1906_v20  ;;  %v1891_v17 = vmul.f32 %v3918_v53, %v3985_v24  ;;  %v1717_v63 = vadd.f32 %v1701_v16, %v1669_v39  ;;  %v4051_v61 = vld [vmem:[#allocation2 + $0x150] sm:$0xff] }
  0xa1   : > { %5572 = vst [vmem:[#allocation56_spill] sm:$0xff] %v4035_v10  ;;  %v1749_v27 = vmul.f32 %v3837_v12, %v4029_v41  ;;  %v1843_v60 = vmul.f32 %v3886_v40, %v1827_v43  ;;  %v1986_v38 = vmul.f32 %v3974_v3, %v1731_v44  ;;  %v2033_v34 = vmul.f32 %v3980_v6, %v1778_v36  ;;  %v4053_v39 = vld [vmem:[#allocation2 + $0x151] sm:$0xff]  ;;  %v4061_v36 = vld [vmem:[%s5517_s1 + $0xa] ss:$0 sm:$0xff] }
  0xa2   : > { %v1764_v11 = vadd.f32 %v1748_v50, %v1716_v58  ;;  %v2034_v7 = vmul.f32 %v3980_v6, %v1779_v56  ;;  %v4049_v20 = vmul.f32 %v3991_v33, %v1826_v47  ;;  %v1907_v51 = vadd.f32 %v1891_v17, %v1858_v45  ;;  %v1828_v58 = vld [vmem:[#allocation2 + $0x13c] sm:$0xff] }
  0xa3   : > { %v1765_v42 = vadd.f32 %v1749_v27, %v1717_v63  ;;  %v1859_v16 = vadd.f32 %v1843_v60, %v1811_v46  ;;  %v4056_v10 = vmul.f32 %v3991_v33, %v1827_v43  ;;  %v4065_v44 = vmul.f32 %v4061_v36, %v3948_v49  ;;  %v4073_v46 = vld [vmem:[#allocation2 + $0x152] sm:$0xff]  ;;  %v1829_v27 = vld [vmem:[#allocation2 + $0x144] sm:$0xff] }
  0xa4   : > { %5573 = vst [vmem:[#allocation57_spill] sm:$0xff] %v4049_v20  ;;  %v1796_v47 = vmul.f32 %v3829_v1, %v4042_v30  ;;  %v2002_v56 = vadd.f32 %v1986_v38, %v1954_v18  ;;  %v4069_v63 = vadd.f32 %v2033_v34, %v2001_v13  ;;  %v1939_v45 = vmul.f32 %v3999_v25, %v1684_v59  ;;  %v4075_v50 = vld [vmem:[#allocation2 + $0x158] sm:$0xff] }
  0xa5   : > { %5574 = vst [vmem:[#allocation58_spill] sm:$0xff] %v4056_v10  ;;  %5575 = vst [vmem:[#allocation59_spill] sm:$0xff] %v4065_v44  ;;  %v1797_v43 = vmul.f32 %v3829_v1, %v1781_v29  ;;  %v1892_v49 = vmul.f32 %v3918_v53, %v4012_v32  ;;  %v1670_v60 = vmul.f32 %v3843_v19, %v4051_v61  ;;  %v1687_v18 = vld [vmem:[#allocation2 + $0x159] sm:$0xff] }
  0xa6   : > { %5576 = vst [vmem:[#allocation60_spill] sm:$0xff] %v4069_v63  ;;  %v1812_v17 = vadd.f32 %v1796_v47, %v1764_v11  ;;  %v1702_v13 = vmul.f32 %v3856_v26, %v4053_v39  ;;  %v1955_v38 = vadd.f32 %v1939_v45, %v1907_v51  ;;  %v1987_v59 = vmul.f32 %v3974_v3, %v1732_v57  ;;  %v4085_v20 = vld [vmem:[#allocation2 + $0x153] sm:$0xff] }
  0xa7   : > { %v1813_v34 = vadd.f32 %v1797_v43, %v1765_v42  ;;  %v1844_v10 = vmul.f32 %v3886_v40, %v1828_v58  ;;  %v1908_v11 = vadd.f32 %v1892_v49, %v1859_v16  ;;  %v1750_v63 = vmul.f32 %v3837_v12, %v4073_v46  ;;  %v4103_v49 = vld [vmem:[#allocation2 + $0x15b] sm:$0xff] }
  0xa8   : > { %v1718_v47 = vadd.f32 %v1702_v13, %v1670_v60  ;;  %v1671_v44 = vmul.f32 %v3843_v19, %v4075_v50  ;;  %v4093_v54 = vadd.f32 %v2034_v7, %v2002_v56  ;;  %v4097_v57 = vmul.f32 %v4061_v36, %v3985_v24  ;;  %v4107_v7 = vld [vmem:[#allocation2 + $0x154] sm:$0xff] }
  0xa9   : > { %v1845_v51 = vmul.f32 %v3886_v40, %v1829_v27  ;;  %v1703_v42 = vmul.f32 %v3856_v26, %v1687_v18  ;;  %v1860_v16 = vadd.f32 %v1844_v10, %v1812_v17  ;;  %v1940_v45 = vmul.f32 %v3999_v25, %v4014_v28 }
  0xaa   : > { %5577 = vst [vmem:[#allocation61_spill] sm:$0xff] %v4093_v54  ;;  %5578 = vst [vmem:[#allocation62_spill] sm:$0xff] %v4097_v57  ;;  %v1766_v43 = vadd.f32 %v1750_v63, %v1718_v47  ;;  %v1798_v60 = vmul.f32 %v3829_v1, %v4085_v20  ;;  %v1988_v24 = vmul.f32 %v3974_v3, %v4029_v41  ;;  %v4115_v47 = vld [vmem:[#allocation2 + $0x168] sm:$0xff] }
  0xab   : > { %v1861_v56 = vadd.f32 %v1845_v51, %v1813_v34  ;;  %v1719_v13 = vadd.f32 %v1703_v42, %v1671_v44  ;;  %v1751_v54 = vmul.f32 %v3837_v12, %v4091_v2  ;;  %v2003_v10 = vadd.f32 %v1987_v59, %v1955_v38  ;;  %v1688_v44 = vld [vmem:[#allocation2 + $0x169] sm:$0xff] }
  0xac   : > { %v1956_v17 = vadd.f32 %v1940_v45, %v1908_v11  ;;  %v1893_v28 = vmul.f32 %v3918_v53, %v4051_v61  ;;  %v1814_v63 = vadd.f32 %v1798_v60, %v1766_v43  ;;  %v1799_v35 = vmul.f32 %v3829_v1, %v4103_v49 }
  0xad   : > { %v1767_v57 = vadd.f32 %v1751_v54, %v1719_v13  ;;  %v1846_v34 = vmul.f32 %v3886_v40, %v4107_v7  ;;  %v1894_v41 = vmul.f32 %v3918_v53, %v4075_v50  ;;  %v2035_v38 = vmul.f32 %v3980_v6, %v4042_v30  ;;  %v1831_v54 = vld [vmem:[#allocation2 + $0x15c] sm:$0xff]  ;;  %v1736_v13 = vld [vmem:[#allocation2 + $0x16a] sm:$0xff] }
  0xae   : > { %v2036_v59 = vmul.f32 %v3980_v6, %v1781_v29  ;;  %v4127_v11 = vmul.f32 %v3991_v33, %v1828_v58  ;;  %v1909_v51 = vadd.f32 %v1893_v28, %v1860_v16  ;;  %v1672_v60 = vmul.f32 %v3843_v19, %v4115_v47  ;;  %v1737_v28 = vld [vmem:[#allocation2 + $0x172] sm:$0xff] }
  0xaf   : > { %v1815_v42 = vadd.f32 %v1799_v35, %v1767_v57  ;;  %v1862_v45 = vadd.f32 %v1846_v34, %v1814_v63  ;;  %v1910_v43 = vadd.f32 %v1894_v41, %v1861_v56  ;;  %v4133_v9 = vadd.f32 %v2035_v38, %v2003_v10  ;;  %v1784_v63 = vld [vmem:[#allocation2 + $0x16b] sm:$0xff] }
  0xb0   : > { %5579 = vst [vmem:[#allocation63_spill] sm:$0xff] %v4127_v11  ;;  %v4136_v30 = vmul.f32 %v3991_v33, %v1829_v27  ;;  %v1941_v29 = vmul.f32 %v3999_v25, %v4053_v39  ;;  %v1704_v58 = vmul.f32 %v3856_v26, %v1688_v44  ;;  %v2004_v35 = vadd.f32 %v1988_v24, %v1956_v17 }
  0xb1   : > { %5580 = vst [vmem:[#allocation64_spill] sm:$0xff] %v4133_v9  ;;  %v1847_v57 = vmul.f32 %v3886_v40, %v1831_v54  ;;  %v1942_v16 = vmul.f32 %v3999_v25, %v1687_v18  ;;  %v1895_v56 = vmul.f32 %v3918_v53, %v4115_v47  ;;  %v1752_v34 = vmul.f32 %v3837_v12, %v1736_v13  ;;  %v1785_v9 = vld [vmem:[#allocation2 + $0x173] sm:$0xff] }
  0xb2   : > { %5581 = vst [vmem:[#allocation65_spill] sm:$0xff] %v4136_v30  ;;  %v1720_v10 = vadd.f32 %v1704_v58, %v1672_v60  ;;  %v1673_v27 = vmul.f32 %v3843_v19, %v4131_v22  ;;  %v1705_v39 = vmul.f32 %v3856_v26, %v1689_v15  ;;  %v1957_v41 = vadd.f32 %v1941_v29, %v1909_v51  ;;  %v1832_v51 = vld [vmem:[#allocation2 + $0x16c] sm:$0xff] }
  0xb3   : > { %v1863_v38 = vadd.f32 %v1847_v57, %v1815_v42  ;;  %v1958_v24 = vadd.f32 %v1942_v16, %v1910_v43  ;;  %v1911_v17 = vadd.f32 %v1895_v56, %v1862_v45  ;;  %v1753_v18 = vmul.f32 %v3837_v12, %v1737_v28 }
  0xb4   : > { %v1768_v30 = vadd.f32 %v1752_v34, %v1720_v10  ;;  %v1721_v11 = vadd.f32 %v1705_v39, %v1673_v27  ;;  %v1800_v21 = vmul.f32 %v3829_v1, %v1784_v63  ;;  %v4153_v60 = vmul.f32 %v4061_v36, %v4012_v32  ;;  %v1833_v34 = vld [vmem:[#allocation2 + $0x174] sm:$0xff]  ;;  %v1882_v27 = vld [vmem:[#allocation2 + $0x188] sm:$0xff] }
  0xb5   : > { %v1989_v19 = vmul.f32 %v3974_v3, %v4073_v46  ;;  %v1943_v26 = vmul.f32 %v3999_v25, %v1688_v44  ;;  %v1896_v42 = vmul.f32 %v3918_v53, %v4131_v22  ;;  %v4162_v45 = vmul.f32 %v4061_v36, %v4051_v61  ;;  %v1881_v44 = vld [vmem:[#allocation2 + $0x180] sm:$0xff] }
  0xb6   : > { %5582 = vst [vmem:[#allocation66_spill] sm:$0xff] %v4153_v60  ;;  %v1990_v12 = vmul.f32 %v3974_v3, %v4091_v2  ;;  %v1769_v43 = vadd.f32 %v1753_v18, %v1721_v11  ;;  %v1816_v29 = vadd.f32 %v1800_v21, %v1768_v30  ;;  %v4166_v32 = vadd.f32 %v2036_v59, %v2004_v35 }
  0xb7   : > { %5583 = vst [vmem:[#allocation67_spill] sm:$0xff] %v4162_v45  ;;  %v1959_v58 = vadd.f32 %v1943_v26, %v1911_v17  ;;  %v1801_v46 = vmul.f32 %v3829_v1, %v1785_v9  ;;  %v1912_v57 = vadd.f32 %v1896_v42, %v1863_v38  ;;  %v2005_v16 = vadd.f32 %v1989_v19, %v1957_v41  ;;  %v1977_v19 = vld [vmem:[#allocation2 + $0x182] sm:$0xff]  ;;  %v4204_v26 = vld [vmem:[%s5517_s1 + $0xb] ss:$0 sm:$0xff] }
  0xb8   : > { %5584 = vst [vmem:[#allocation68_spill] sm:$0xff] %v4166_v32  ;;  %v2006_v56 = vadd.f32 %v1990_v12, %v1958_v24  ;;  %v2037_v10 = vmul.f32 %v3980_v6, %v4085_v20  ;;  %v1848_v61 = vmul.f32 %v3886_v40, %v1832_v51  ;;  %v2038_v2 = vmul.f32 %v3980_v6, %v4103_v49  ;;  %v1929_v24 = vld [vmem:[#allocation2 + $0x181] sm:$0xff]  ;;  %v1930_v12 = vld [vmem:[#allocation2 + $0x189] sm:$0xff] }
  0xb9   : > { %v1991_v21 = vmul.f32 %v3974_v3, %v1736_v13  ;;  %v1817_v59 = vadd.f32 %v1801_v46, %v1769_v43  ;;  %v1944_v11 = vmul.f32 %v3999_v25, %v1689_v15  ;;  %v4178_v1 = vmul.f32 %v3991_v33, %v4107_v7  ;;  %v1978_v43 = vld [vmem:[#allocation2 + $0x18a] sm:$0xff] }
  0xba   : > { %v4181_v30 = vmul.f32 %v3991_v33, %v1831_v54  ;;  %v1864_v35 = vadd.f32 %v1848_v61, %v1816_v29  ;;  %v1897_v20 = vmul.f32 %v3918_v53, %v1881_v44  ;;  %v4186_v39 = vmul.f32 %v4061_v36, %v4075_v50  ;;  %v2026_v46 = vld [vmem:[#allocation2 + $0x18b] sm:$0xff]  ;;  %v3037_v61 = vld [vmem:[#allocation2 + $0x39] sm:$0xff] }
  0xbb   : > { %5585 = vst [vmem:[#allocation69_spill] sm:$0xff] %v4178_v1  ;;  %v2007_v49 = vadd.f32 %v1991_v21, %v1959_v58  ;;  %v1849_v13 = vmul.f32 %v3886_v40, %v1833_v34  ;;  %v1960_v41 = vadd.f32 %v1944_v11, %v1912_v57  ;;  %v4189_v15 = vadd.f32 %v2037_v10, %v2005_v16  ;;  %v4224_v57 = vld [vmem:[%s5517_s1 + $0xc] ss:$0 sm:$0xff]  ;;  %v948_v16 = vld [vmem:[#allocation2 + $0x3a] sm:$0xff] }
  0xbc   : > { %5586 = vst [vmem:[#allocation70_spill] sm:$0xff] %v4181_v30  ;;  %5587 = vst [vmem:[#allocation71_spill] sm:$0xff] %v4186_v39  ;;  %v4191_v38 = vadd.f32 %v2038_v2, %v2006_v56  ;;  %v4195_v7 = vmul.f32 %v4061_v36, %v4115_v47  ;;  %v1992_v54 = vmul.f32 %v3974_v3, %v1737_v28  ;;  %v2074_v10 = vld [vmem:[#allocation2 + $0x18c] sm:$0xff] }
  0xbd   : > { %5588 = vst [vmem:[#allocation72_spill] sm:$0xff] %v4189_v15  ;;  %v1865_v17 = vadd.f32 %v1849_v13, %v1817_v59  ;;  %v2039_v18 = vmul.f32 %v3980_v6, %v1784_v63  ;;  %v2040_v50 = vmul.f32 %v3980_v6, %v1785_v9  ;;  %v1898_v40 = vmul.f32 %v3918_v53, %v1882_v27  ;;  %v2025_v63 = vld [vmem:[#allocation2 + $0x183] sm:$0xff] }
  0xbe   : > { %5589 = vst [vmem:[#allocation73_spill] sm:$0xff] %v4191_v38  ;;  %5590 = vst [vmem:[#allocation74_spill] sm:$0xff] %v4195_v7  ;;  %v4207_v42 = vmul.f32 %v3991_v33, %v1832_v51  ;;  %v4210_v47 = vmul.f32 %v3991_v33, %v1833_v34  ;;  %v1913_v28 = vadd.f32 %v1897_v20, %v1864_v35  ;;  %v2122_v35 = vld [vmem:[#allocation2 + $0x198] sm:$0xff]  ;;  %v4247_v20 = vld [vmem:[%s5517_s1 + $0xe] ss:$0 sm:$0xff] }
  0xbf   : > { %v828_v9 = vadd.f32 %v3425_v31, %v3450_v0  ;;  %v2008_v29 = vadd.f32 %v1992_v54, %v1960_v41  ;;  %v4214_v53 = vadd.f32 %v2039_v18, %v2007_v49  ;;  %v4218_v58 = vmul.f32 %v4061_v36, %v4131_v22  ;;  %v2073_v0 = vld [vmem:[#allocation2 + $0x184] sm:$0xff]  ;;  %v4233_v22 = vld [vmem:[%s5517_s1 + $0xd] ss:$0 sm:$0xff]  ;;  %v1000_v49 = vld [vmem:[#allocation2 + $0x3b] sm:$0xff] }
  0xc0   : > { %5591 = vst [vmem:[#allocation75_spill] sm:$0xff] %v4207_v42  ;;  %5592 = vst [vmem:[#allocation76_spill] sm:$0xff] %v4210_v47  ;;  %v1945_v51 = vmul.f32 %v3999_v25, %v1929_v24  ;;  %v1993_v56 = vmul.f32 %v3974_v3, %v1977_v19  ;;  %v4228_v31 = vmul.f32 %v4061_v36, %v1881_v44  ;;  %v4260_v41 = vld [vmem:[%s5517_s1 + $0x10] ss:$0 sm:$0xff]  ;;  %v4265_v54 = vld [vmem:[%s5517_s1 + $0x11] ss:$0 sm:$0xff] }
  0xc1   : > { %5593 = vst [vmem:[#allocation77_spill] sm:$0xff] %v4214_v53  ;;  %5594 = vst [vmem:[#allocation78_spill] sm:$0xff] %v4218_v58  ;;  %v880_v34 = vadd.f32 %v3488_v55, %v828_v9  ;;  %v916_v2 = vmul.f32 %v3037_v61, %v4204_v26  ;;  %v1914_v21 = vadd.f32 %v1898_v40, %v1865_v17  ;;  %v4252_v55 = vld [vmem:[%s5517_s1 + $0xf] ss:$0 sm:$0xff]  ;;  %v4279_v40 = vld [vmem:[%s5517_s1 + $0x12] ss:$0 sm:$0xff] }
  0xc2   : > { %5595 = vst [vmem:[#allocation79_spill] sm:$0xff] %v4228_v31  ;;  %v1946_v59 = vmul.f32 %v3999_v25, %v1930_v12  ;;  %v4239_v11 = vmul.f32 %v3974_v3, %v1978_v43  ;;  %v4242_v44 = vmul.f32 %v3980_v6, %v2025_v63  ;;  %v1961_v13 = vadd.f32 %v1945_v51, %v1913_v28  ;;  %v2123_v3 = vld [vmem:[#allocation2 + $0x1a0] sm:$0xff]  ;;  %v4284_v28 = vld [vmem:[%s5517_s1 + $0x13] ss:$0 sm:$0xff]  ;;  %v4297_v9 = vld [vmem:[%s5517_s1 + $0x14] ss:$0 sm:$0xff] }
  0xc3   : > { %v4255_v25 = vmul.f32 %v3980_v6, %v2026_v46  ;;  %v932_v24 = vadd.f32 %v916_v2, %v880_v34  ;;  %v968_v17 = vmul.f32 %v4224_v57, %v948_v16  ;;  %v4268_v18 = vadd.f32 %v2040_v50, %v2008_v29  ;;  %v1052_v12 = vld [vmem:[#allocation2 + $0x3c] sm:$0xff]  ;;  %v1105_v43 = vld [vmem:[#allocation2 + $0x50] sm:$0xff]  ;;  %v4389_v38 = vld [vmem:[#allocation2 + $0x84] sm:$0xff] }
  0xc4   : > { %v4271_v19 = vmul.f32 %v3991_v33, %v2073_v0  ;;  %v4274_v6 = vmul.f32 %v3991_v33, %v2074_v10  ;;  %v830_v50 = vadd.f32 %v3470_v48, %v3498_v14  ;;  %v4289_v63 = vmul.f32 %v4061_v36, %v1882_v27  ;;  %v1157_v46 = vld [vmem:[#allocation2 + $0x51] sm:$0xff]  ;;  %v4365_v47 = vld [vmem:[#allocation2 + $0x80] sm:$0xff]  ;;  %v3040_v15 = vld [vmem:[#allocation2 + $0x49] sm:$0xff] }
  0xc5   : > { %5596 = vst [vmem:[#allocation80_spill] sm:$0xff] %v4255_v25  ;;  %5597 = vst [vmem:[#allocation81_spill] sm:$0xff] %v4268_v18  ;;  %v4292_v33 = vmul.f32 %v4061_v36, %v2122_v35  ;;  %v984_v29 = vadd.f32 %v968_v17, %v932_v24  ;;  %v1020_v51 = vmul.f32 %v4233_v22, %v1000_v49  ;;  %v1209_v16 = vld [vmem:[#allocation2 + $0x52] sm:$0xff]  ;;  %v1418_v24 = vld [vmem:[#allocation2 + $0x69] sm:$0xff] }
  0xc6   : > { %5598 = vst [vmem:[#allocation82_spill] sm:$0xff] %v4271_v19  ;;  %5599 = vst [vmem:[#allocation83_spill] sm:$0xff] %v4274_v6  ;;  %v4300_v0 = vadd.f32 %v1946_v59, %v1914_v21  ;;  %v4303_v48 = vmul.f32 %v4061_v36, %v2123_v3  ;;  %v4308_v14 = vld [vmem:[%s5517_s1 + $0x15] ss:$0 sm:$0xff]  ;;  %v882_v34 = vadd.f32 %v3530_v4, %v830_v50  ;;  %v4317_v21 = vld [vmem:[%s5517_s1 + $0x16] ss:$0 sm:$0xff] }
  0xc7   : > { %5600 = vst [vmem:[#allocation84_spill] sm:$0xff] %v4289_v63  ;;  %5601 = vst [vmem:[#allocation85_spill] sm:$0xff] %v4292_v33  ;;  %v1261_v27 = vld [vmem:[#allocation2 + $0x53] sm:$0xff]  ;;  %v4312_v35 = vadd.f32 %v1993_v56, %v1961_v13  ;;  %v1036_v36 = vadd.f32 %v1020_v51, %v984_v29  ;;  %v1072_v59 = vmul.f32 %v4247_v20, %v1052_v12  ;;  %v1366_v3 = vld [vmem:[#allocation2 + $0x68] sm:$0xff] }
  0xc8   : > { %5602 = vst [vmem:[#allocation86_spill] sm:$0xff] %v4303_v48  ;;  %v1313_v10 = vld [vmem:[#allocation2 + $0x54] sm:$0xff]  ;;  %v1125_v49 = vmul.f32 %v4252_v55, %v1105_v43  ;;  %v1177_v56 = vmul.f32 %v4260_v41, %v1157_v46  ;;  %v1229_v13 = vmul.f32 %v4265_v54, %v1209_v16  ;;  %v4328_v17 = vld [vmem:[#allocation2 + $0x6a] sm:$0xff]  ;;  %v970_v12 = vmul.f32 %v4224_v57, %v1209_v16  ;;  %v4367_v18 = vld [vmem:[#allocation2 + $0x81] sm:$0xff] }
  0xc9   : > { %v3038_v61 = vld [vmem:[#allocation2 + $0x51] sm:$0xff]  ;;  %v1088_v51 = vadd.f32 %v1072_v59, %v1036_v36  ;;  %v1333_v48 = vmul.f32 %v4284_v28, %v1313_v10  ;;  %v775_v6 = vadd.f32 %v3399_v5, %v3441_v62  ;;  %v1386_v33 = vmul.f32 %v4297_v9, %v1366_v3  ;;  %v5603_v7 = vld [vmem:[#allocation3_spill] sm:$0xff] }
  0xca   : > { %v918_v2 = vmul.f32 %v3038_v61, %v4204_v26  ;;  %v4324_v4 = vld [vmem:[%s5517_s1 + $0x17] ss:$0 sm:$0xff]  ;;  %v4330_v50 = vld [vmem:[#allocation2 + $0x6b] sm:$0xff]  ;;  %v4336_v43 = vld [vmem:[%s5517_s1 + $0x18] ss:$0 sm:$0xff]  ;;  %v1281_v61 = vmul.f32 %v4279_v40, %v1261_v27  ;;  %v4351_v36 = vmul.f32 %v4317_v21, %v4328_v17  ;;  %v1440_v58 = vmul.f32 %v4308_v14, %v4367_v18 }
  0xcb   : > { %v4340_v46 = vld [vmem:[#allocation2 + $0x6c] sm:$0xff]  ;;  %v1141_v19 = vadd.f32 %v1125_v49, %v1088_v51  ;;  %v4355_v59 = vmul.f32 %v4324_v4, %v4330_v50  ;;  %v827_v63 = vadd.f32 %v3403_v8, %v775_v6  ;;  %v1179_v51 = vmul.f32 %v4260_v41, %v1418_v24  ;;  %v1469_v25 = vld [vmem:[#allocation2 + $0x62] sm:$0xff] }
  0xcc   : > { %v934_v29 = vadd.f32 %v918_v2, %v882_v34  ;;  %v4346_v34 = vmul.f32 %v4308_v14, %v1418_v24  ;;  %v1022_v2 = vmul.f32 %v4233_v22, %v1261_v27  ;;  %v4360_v5 = vmul.f32 %v4336_v43, %v4340_v46  ;;  %v947_v49 = vld [vmem:[#allocation2 + $0x32] sm:$0xff] }
  0xcd   : > { %v1127_v27 = vmul.f32 %v4252_v55, %v1366_v3  ;;  %v879_v31 = vadd.f32 %v3445_v52, %v827_v63  ;;  %v3039_v8 = vld [vmem:[#allocation2 + $0x31] sm:$0xff]  ;;  %v1283_v3 = vmul.f32 %v4279_v40, %v4330_v50  ;;  %v967_v63 = vmul.f32 %v4224_v57, %v947_v49  ;;  %v1156_v49 = vld [vmem:[#allocation2 + $0x49] sm:$0xff] }
  0xce   : > { %v986_v16 = vadd.f32 %v970_v12, %v934_v29  ;;  %v1074_v29 = vmul.f32 %v4247_v20, %v1313_v10  ;;  %v1193_v12 = vadd.f32 %v1177_v56, %v1141_v19  ;;  %v915_v6 = vmul.f32 %v3039_v8, %v4204_v26  ;;  %v999_v42 = vld [vmem:[#allocation2 + $0x33] sm:$0xff]  ;;  %v4377_v56 = vld [vmem:[#allocation2 + $0x82] sm:$0xff] }
  0xcf   : > { %v1231_v10 = vmul.f32 %v4265_v54, %v4328_v17  ;;  %v1335_v19 = vmul.f32 %v4284_v28, %v4340_v46  ;;  %v1388_v8 = vmul.f32 %v4297_v9, %v4365_v47 }
  0xd0   : > { %v1038_v62 = vadd.f32 %v1022_v2, %v986_v16  ;;  %v1245_v24 = vadd.f32 %v1229_v13, %v1193_v12  ;;  %v4379_v16 = vld [vmem:[#allocation2 + $0x83] sm:$0xff]  ;;  %v931_v52 = vadd.f32 %v915_v6, %v879_v31  ;;  %v1051_v2 = vld [vmem:[#allocation2 + $0x34] sm:$0xff]  ;;  %v1019_v13 = vmul.f32 %v4233_v22, %v999_v42 }
  0xd1   : > { %v1208_v12 = vld [vmem:[#allocation2 + $0x4a] sm:$0xff]  ;;  %v1071_v42 = vmul.f32 %v4247_v20, %v1051_v2 }
  0xd2   : > { %v1090_v53 = vadd.f32 %v1074_v29, %v1038_v62  ;;  %v829_v62 = vadd.f32 %v3463_v37, %v3467_v23  ;;  %v1297_v30 = vadd.f32 %v1281_v61, %v1245_v24  ;;  %v983_v31 = vadd.f32 %v967_v63, %v931_v52  ;;  %v1104_v6 = vld [vmem:[#allocation2 + $0x48] sm:$0xff] }
  0xd3   : > { %v917_v37 = vmul.f32 %v3040_v15, %v4204_v26  ;;  %v1260_v61 = vld [vmem:[#allocation2 + $0x4b] sm:$0xff]  ;;  %v969_v39 = vmul.f32 %v4224_v57, %v1208_v12  ;;  %v4403_v15 = vmul.f32 %v4336_v43, %v4389_v38 }
  0xd4   : > { %v1143_v29 = vadd.f32 %v1127_v27, %v1090_v53  ;;  %v881_v1 = vadd.f32 %v5603_v7, %v829_v62  ;;  %v1492_v53 = vmul.f32 %v4317_v21, %v4377_v56  ;;  %v4397_v27 = vmul.f32 %v4324_v4, %v4379_v16 }
  0xd5   : > { %v1349_v24 = vadd.f32 %v1333_v48, %v1297_v30  ;;  %v1035_v52 = vadd.f32 %v1019_v13, %v983_v31  ;;  %v1176_v62 = vmul.f32 %v4260_v41, %v1156_v49  ;;  %v1021_v2 = vmul.f32 %v4233_v22, %v1260_v61  ;;  %v5604_v13 = vld [vmem:[#allocation5_spill] sm:$0xff]  ;;  %v5605_v31 = vld [vmem:[#allocation4_spill] sm:$0xff] }
  0xd6   : > { %v1195_v23 = vadd.f32 %v1179_v51, %v1143_v29  ;;  %v933_v63 = vadd.f32 %v917_v37, %v881_v1  ;;  %v1124_v51 = vmul.f32 %v4252_v55, %v1104_v6  ;;  %v1312_v29 = vld [vmem:[#allocation2 + $0x4c] sm:$0xff]  ;;  %v1228_v1 = vmul.f32 %v4265_v54, %v1208_v12  ;;  %v3041_v12 = vld [vmem:[#allocation2 + $0x61] sm:$0xff] }
  0xd7   : > { %v1402_v32 = vadd.f32 %v1386_v33, %v1349_v24  ;;  %v1087_v45 = vadd.f32 %v1071_v42, %v1035_v52  ;;  %v1280_v48 = vmul.f32 %v4279_v40, %v1260_v61  ;;  %v831_v37 = vadd.f32 %v5605_v31, %v5604_v13  ;;  %v1417_v24 = vld [vmem:[#allocation2 + $0x61] sm:$0xff] }
  0xd8   : > { %v1247_v7 = vadd.f32 %v1231_v10, %v1195_v23  ;;  %v985_v60 = vadd.f32 %v969_v39, %v933_v63  ;;  %v1365_v10 = vld [vmem:[#allocation2 + $0x60] sm:$0xff]  ;;  %v1073_v33 = vmul.f32 %v4247_v20, %v1312_v29  ;;  %v1332_v39 = vmul.f32 %v4284_v28, %v1312_v29 }
  0xd9   : > { %v1454_v23 = vadd.f32 %v4346_v34, %v1402_v32  ;;  %v1140_v6 = vadd.f32 %v1124_v51, %v1087_v45  ;;  %v919_v61 = vmul.f32 %v3041_v12, %v4204_v26  ;;  %v1521_v13 = vld [vmem:[#allocation2 + $0x63] sm:$0xff]  ;;  %v1126_v45 = vmul.f32 %v4252_v55, %v1365_v10 }
  0xda   : > { %v1299_v30 = vadd.f32 %v1283_v3, %v1247_v7  ;;  %v1037_v49 = vadd.f32 %v1021_v2, %v985_v60  ;;  %v5606_v3 = vld [vmem:[#allocation7_spill] sm:$0xff]  ;;  %v1385_v34 = vmul.f32 %v4297_v9, %v1365_v10  ;;  %v971_v51 = vmul.f32 %v4224_v57, %v1469_v25 }
  0xdb   : > { %v883_v52 = vadd.f32 %v5606_v3, %v831_v37  ;;  %v1506_v63 = vadd.f32 %v4351_v36, %v1454_v23  ;;  %v1192_v7 = vadd.f32 %v1176_v62, %v1140_v6  ;;  %v1178_v37 = vmul.f32 %v4260_v41, %v1417_v24  ;;  %v1419_v3 = vld [vmem:[#allocation2 + $0x79] sm:$0xff] }
  0xdc   : > { %v1351_v42 = vadd.f32 %v1335_v19, %v1299_v30  ;;  %v1089_v32 = vadd.f32 %v1073_v33, %v1037_v49  ;;  %v1573_v30 = vld [vmem:[#allocation2 + $0x64] sm:$0xff]  ;;  %v1023_v10 = vmul.f32 %v4233_v22, %v1521_v13  ;;  %v1230_v6 = vmul.f32 %v4265_v54, %v1469_v25  ;;  %v1367_v49 = vld [vmem:[#allocation2 + $0x78] sm:$0xff] }
  0xdd   : > { %v935_v19 = vadd.f32 %v919_v61, %v883_v52  ;;  %v1558_v29 = vadd.f32 %v4355_v59, %v1506_v63  ;;  %v1244_v2 = vadd.f32 %v1228_v1, %v1192_v7  ;;  %v1075_v12 = vmul.f32 %v4247_v20, %v1573_v30 }
  0xde   : > { %v1404_v60 = vadd.f32 %v1388_v8, %v1351_v42  ;;  %v1142_v31 = vadd.f32 %v1126_v45, %v1089_v32  ;;  %v1437_v8 = vmul.f32 %v4308_v14, %v1417_v24  ;;  %v1489_v42 = vmul.f32 %v4317_v21, %v1469_v25  ;;  %v5608_v32 = vld [vmem:[#allocation6_spill] sm:$0xff] }
  0xdf   : > { %v987_v62 = vadd.f32 %v971_v51, %v935_v19  ;;  %v1610_v59 = vadd.f32 %v4360_v5, %v1558_v29  ;;  %v1296_v1 = vadd.f32 %v1280_v48, %v1244_v2  ;;  %v1541_v24 = vmul.f32 %v4324_v4, %v1521_v13  ;;  %v1471_v51 = vld [vmem:[#allocation2 + $0x7a] sm:$0xff] }
  0xe0   : > { %v1456_v36 = vadd.f32 %v1440_v58, %v1404_v60  ;;  %v1194_v23 = vadd.f32 %v1178_v37, %v1142_v31  ;;  %v1282_v5 = vmul.f32 %v4279_v40, %v1521_v13  ;;  %v1128_v7 = vmul.f32 %v4252_v55, %v1367_v49  ;;  %v5609_v13 = vld [vmem:[#allocation12_spill] sm:$0xff] }
  0xe1   : > { %v1039_v52 = vadd.f32 %v1023_v10, %v987_v62  ;;  %1626 = vst.msk [vmem:[%s4428_s22 + $0x8] sm:$0xff] %vm192_vm0, %v1610_v59  ;;  %v1348_v58 = vadd.f32 %v1332_v39, %v1296_v1  ;;  %v1334_v19 = vmul.f32 %v4284_v28, %v1573_v30  ;;  %v1180_v39 = vmul.f32 %v4260_v41, %v1419_v3  ;;  %v1523_v59 = vld [vmem:[#allocation2 + $0x7b] sm:$0xff] }
  0xe2   : > { %v1508_v33 = vadd.f32 %v1492_v53, %v1456_v36  ;;  %v1246_v61 = vadd.f32 %v1230_v6, %v1194_v23  ;;  %v5607_v53 = vld [vmem:[#allocation8_spill] sm:$0xff]  ;;  %v1593_v62 = vmul.f32 %v4336_v43, %v1573_v30  ;;  %v1575_v1 = vld [vmem:[#allocation2 + $0x7c] sm:$0xff]  ;;  %v1232_v6 = vmul.f32 %v4265_v54, %v1471_v51 }
  0xe3   : > { %v1091_v63 = vadd.f32 %v1075_v12, %v1039_v52  ;;  %v832_v25 = vadd.f32 %v5608_v32, %v5607_v53  ;;  %v1401_v45 = vadd.f32 %v1385_v34, %v1348_v58  ;;  %v1387_v34 = vmul.f32 %v4297_v9, %v1367_v49  ;;  %v4463_v32 = vld [vmem:[#allocation2 + $0x91] sm:$0xff] }
  0xe4   : > { %v1560_v48 = vadd.f32 %v4397_v27, %v1508_v33  ;;  %v1298_v60 = vadd.f32 %v1282_v5, %v1246_v61  ;;  %v3042_v27 = vld [vmem:[#allocation2 + $0x69] sm:$0xff]  ;;  %v972_v33 = vmul.f32 %v4224_v57, %v4328_v17  ;;  %v1491_v30 = vmul.f32 %v4317_v21, %v1471_v51 }
  0xe5   : > { %v1144_v2 = vadd.f32 %v1128_v7, %v1091_v63  ;;  %v884_v31 = vadd.f32 %v5609_v13, %v832_v25  ;;  %v920_v37 = vmul.f32 %v3042_v27, %v4204_v26  ;;  %v1453_v36 = vadd.f32 %v1437_v8, %v1401_v45  ;;  %v1369_v61 = vld [vmem:[#allocation2 + $0x90] sm:$0xff]  ;;  %v5610_v45 = vld [vmem:[#allocation11_spill] sm:$0xff] }
  0xe6   : > { %v1612_v29 = vadd.f32 %v4403_v15, %v1560_v48  ;;  %v1350_v10 = vadd.f32 %v1334_v19, %v1298_v60  ;;  %v1439_v8 = vmul.f32 %v4308_v14, %v1419_v3  ;;  %v1284_v49 = vmul.f32 %v4279_v40, %v1523_v59  ;;  %v5611_v60 = vld [vmem:[#allocation9_spill] sm:$0xff] }
  0xe7   : > { %v1196_v23 = vadd.f32 %v1180_v39, %v1144_v2  ;;  %v936_v15 = vadd.f32 %v920_v37, %v884_v31  ;;  %v1505_v52 = vadd.f32 %v1489_v42, %v1453_v36  ;;  %v1024_v48 = vmul.f32 %v4233_v22, %v4330_v50  ;;  %v4472_v13 = vld [vmem:[#allocation2 + $0x92] sm:$0xff] }
  0xe8   : > { %1628 = vst.msk [vmem:[%s4428_s22 + $0x18] sm:$0xff] %vm192_vm0, %v1612_v29  ;;  %v1403_v12 = vadd.f32 %v1387_v34, %v1350_v10  ;;  %v1543_v53 = vmul.f32 %v4324_v4, %v1523_v59  ;;  %v1336_v17 = vmul.f32 %v4284_v28, %v1575_v1  ;;  %v1076_v25 = vmul.f32 %v4247_v20, %v4340_v46  ;;  %v5612_v27 = vld [vmem:[#allocation13_spill] sm:$0xff]  ;;  %v3043_v36 = vld [vmem:[#allocation2 + $0x79] sm:$0xff] }
  0xe9   : > { %v1248_v58 = vadd.f32 %v1232_v6, %v1196_v23  ;;  %v988_v5 = vadd.f32 %v972_v33, %v936_v15  ;;  %v1557_v63 = vadd.f32 %v1541_v24, %v1505_v52  ;;  %v833_v19 = vadd.f32 %v5611_v60, %v5610_v45  ;;  %v4483_v6 = vld [vmem:[#allocation2 + $0x93] sm:$0xff] }
  0xea   : > { %v1455_v7 = vadd.f32 %v1439_v8, %v1403_v12  ;;  %v1389_v50 = vmul.f32 %v4297_v9, %v1369_v61  ;;  %v1129_v24 = vmul.f32 %v4252_v55, %v4365_v47  ;;  %v921_v10 = vmul.f32 %v3043_v36, %v4204_v26  ;;  %v1422_v45 = vld [vmem:[#allocation2 + $0x99] sm:$0xff] }
  0xeb   : > { %v1300_v42 = vadd.f32 %v1284_v49, %v1248_v58  ;;  %v1040_v3 = vadd.f32 %v1024_v48, %v988_v5  ;;  %v1609_v39 = vadd.f32 %v1593_v62, %v1557_v63  ;;  %v885_v37 = vadd.f32 %v5612_v27, %v833_v19  ;;  %v4494_v49 = vld [vmem:[#allocation2 + $0x94] sm:$0xff] }
  0xec   : > { %v1507_v29 = vadd.f32 %v1491_v30, %v1455_v7  ;;  %v1595_v62 = vmul.f32 %v4336_v43, %v1575_v1  ;;  %v1441_v34 = vmul.f32 %v4308_v14, %v4463_v32  ;;  %v1181_v47 = vmul.f32 %v4260_v41, %v4367_v18  ;;  %v5613_v7 = vld [vmem:[#allocation14_spill] sm:$0xff] }
  0xed   : > { %v1352_v2 = vadd.f32 %v1336_v17, %v1300_v42  ;;  %v1092_v31 = vadd.f32 %v1076_v25, %v1040_v3  ;;  %1625 = vst.msk [vmem:[%s4428_s22] sm:$0xff] %vm192_vm0, %v1609_v39  ;;  %v937_v33 = vadd.f32 %v921_v10, %v885_v37  ;;  %v973_v52 = vmul.f32 %v4224_v57, %v1471_v51  ;;  %v1370_v25 = vld [vmem:[#allocation2 + $0x98] sm:$0xff] }
  0xee   : > { %v1559_v46 = vadd.f32 %v1543_v53, %v1507_v29  ;;  %v4488_v12 = vadd.f32 %v4239_v11, %v4300_v0  ;;  %v1493_v30 = vmul.f32 %v4317_v21, %v4472_v13  ;;  %v1233_v58 = vmul.f32 %v4265_v54, %v4377_v56  ;;  %v5614_v53 = vld [vmem:[#allocation10_spill] sm:$0xff]  ;;  %v3044_v29 = vld [vmem:[#allocation2 + $0x81] sm:$0xff] }
  0xef   : > { %v1405_v23 = vadd.f32 %v1389_v50, %v1352_v2  ;;  %v1145_v15 = vadd.f32 %v1129_v24, %v1092_v31  ;;  %v989_v48 = vadd.f32 %v973_v52, %v937_v33  ;;  %v1025_v63 = vmul.f32 %v4233_v22, %v1523_v59  ;;  %v5615_v19 = vld [vmem:[#allocation18_spill] sm:$0xff] }
  0xf0   : > { %v1611_v8 = vadd.f32 %v1595_v62, %v1559_v46  ;;  %v4499_v51 = vadd.f32 %v4242_v44, %v4312_v35  ;;  %v1545_v11 = vmul.f32 %v4324_v4, %v4483_v6  ;;  %v1285_v0 = vmul.f32 %v4279_v40, %v4379_v16  ;;  %v4516_v31 = vld [vmem:[#allocation2 + $0x9a] sm:$0xff] }
  0xf1   : > { %v1457_v18 = vadd.f32 %v1441_v34, %v1405_v23  ;;  %v1197_v5 = vadd.f32 %v1181_v47, %v1145_v15  ;;  %v834_v17 = vadd.f32 %v5614_v53, %v5613_v7  ;;  %v1041_v59 = vadd.f32 %v1025_v63, %v989_v48  ;;  %v4518_v27 = vld [vmem:[#allocation2 + $0x9b] sm:$0xff] }
  0xf2   : > { %1627 = vst.msk [vmem:[%s4428_s22 + $0x10] sm:$0xff] %vm192_vm0, %v1611_v8  ;;  %v1077_v60 = vmul.f32 %v4247_v20, %v1575_v1  ;;  %v1597_v44 = vmul.f32 %v4336_v43, %v4494_v49  ;;  %v1337_v35 = vmul.f32 %v4284_v28, %v4389_v38  ;;  %v922_v50 = vmul.f32 %v3044_v29, %v4204_v26  ;;  %v4525_v23 = vld [vmem:[#allocation2 + $0x9c] sm:$0xff] }
  0xf3   : > { %v1509_v42 = vadd.f32 %v1493_v30, %v1457_v18  ;;  %v1249_v3 = vadd.f32 %v1233_v58, %v1197_v5  ;;  %v886_v39 = vadd.f32 %v5615_v19, %v834_v17  ;;  %v1130_v1 = vmul.f32 %v4252_v55, %v1369_v61  ;;  %v1371_v5 = vld [vmem:[#allocation2 + $0xa8] sm:$0xff]  ;;  %v5616_v48 = vld [vmem:[#allocation15_spill] sm:$0xff] }
  0xf4   : > { %v1093_v37 = vadd.f32 %v1077_v60, %v1041_v59  ;;  %v1390_v36 = vmul.f32 %v4297_v9, %v1370_v25  ;;  %v1442_v10 = vmul.f32 %v4308_v14, %v1422_v45  ;;  %v974_v62 = vmul.f32 %v4224_v57, %v4377_v56  ;;  %v5618_v59 = vld [vmem:[#allocation19_spill] sm:$0xff] }
  0xf5   : > { %v1561_v24 = vadd.f32 %v1545_v11, %v1509_v42  ;;  %v1301_v2 = vadd.f32 %v1285_v0, %v1249_v3  ;;  %v938_v46 = vadd.f32 %v922_v50, %v886_v39  ;;  %v1182_v33 = vmul.f32 %v4260_v41, %v4463_v32  ;;  %v5617_v32 = vld [vmem:[#allocation16_spill] sm:$0xff] }
  0xf6   : > { %v1146_v15 = vadd.f32 %v1130_v1, %v1093_v37  ;;  %v1494_v52 = vmul.f32 %v4317_v21, %v4516_v31  ;;  %v1546_v61 = vmul.f32 %v4324_v4, %v4518_v27  ;;  %v1026_v30 = vmul.f32 %v4233_v22, %v4379_v16  ;;  %v1423_v42 = vld [vmem:[#allocation2 + $0xa9] sm:$0xff] }
  0xf7   : > { %v1613_v34 = vadd.f32 %v1597_v44, %v1561_v24  ;;  %v1353_v47 = vadd.f32 %v1337_v35, %v1301_v2  ;;  %v990_v8 = vadd.f32 %v974_v62, %v938_v46  ;;  %v1234_v18 = vmul.f32 %v4265_v54, %v4472_v13  ;;  %v4547_v3 = vld [vmem:[#allocation2 + $0xaa] sm:$0xff] }
  0xf8   : > { %v1198_v58 = vadd.f32 %v1182_v33, %v1146_v15  ;;  %v835_v63 = vadd.f32 %v5617_v32, %v5616_v48  ;;  %v1598_v11 = vmul.f32 %v4336_v43, %v4525_v23  ;;  %v1286_v0 = vmul.f32 %v4279_v40, %v4483_v6  ;;  %v3045_v44 = vld [vmem:[#allocation2 + $0x91] sm:$0xff] }
  0xf9   : > { %1629 = vst.msk [vmem:[%s4428_s22 + $0x20] sm:$0xff] %vm192_vm0, %v1613_v34  ;;  %v1406_v56 = vadd.f32 %v1390_v36, %v1353_v47  ;;  %v1042_v7 = vadd.f32 %v1026_v30, %v990_v8  ;;  %v1078_v16 = vmul.f32 %v4247_v20, %v4389_v38  ;;  %v923_v35 = vmul.f32 %v3045_v44, %v4204_v26  ;;  %v4555_v2 = vld [vmem:[#allocation2 + $0xab] sm:$0xff] }
  0xfa   : > { %v1250_v17 = vadd.f32 %v1234_v18, %v1198_v58  ;;  %v887_v60 = vadd.f32 %v5618_v59, %v835_v63  ;;  %v1338_v19 = vmul.f32 %v4284_v28, %v4494_v49  ;;  %v1391_v39 = vmul.f32 %v4297_v9, %v1371_v5  ;;  %v5619_v30 = vld [vmem:[#allocation20_spill] sm:$0xff]  ;;  %v1372_v63 = vld [vmem:[#allocation2 + $0xb0] sm:$0xff] }
  0xfb   : > { %v1458_v53 = vadd.f32 %v1442_v10, %v1406_v56  ;;  %v1094_v29 = vadd.f32 %v1078_v16, %v1042_v7  ;;  %v1131_v50 = vmul.f32 %v4252_v55, %v1370_v25  ;;  %v975_v1 = vmul.f32 %v4224_v57, %v4472_v13  ;;  %v5620_v56 = vld [vmem:[#allocation17_spill] sm:$0xff]  ;;  %v3046_v16 = vld [vmem:[#allocation2 + $0x99] sm:$0xff] }
  0xfc   : > { %v1302_v38 = vadd.f32 %v1286_v0, %v1250_v17  ;;  %v939_v37 = vadd.f32 %v923_v35, %v887_v60  ;;  %v1443_v36 = vmul.f32 %v4308_v14, %v1423_v42  ;;  %v1495_v10 = vmul.f32 %v4317_v21, %v4547_v3  ;;  %v5621_v0 = vld [vmem:[#allocation24_spill] sm:$0xff]  ;;  %v1424_v59 = vld [vmem:[#allocation2 + $0xb1] sm:$0xff] }
  0xfd   : > { %v1510_v24 = vadd.f32 %v1494_v52, %v1458_v53  ;;  %v1147_v46 = vadd.f32 %v1131_v50, %v1094_v29  ;;  %v1183_v62 = vmul.f32 %v4260_v41, %v1422_v45  ;;  %v1027_v25 = vmul.f32 %v4233_v22, %v4483_v6  ;;  %v4567_v52 = vld [vmem:[#allocation2 + $0xac] sm:$0xff] }
  0xfe   : > { %v1354_v47 = vadd.f32 %v1338_v19, %v1302_v38  ;;  %v991_v15 = vadd.f32 %v975_v1, %v939_v37  ;;  %v1547_v33 = vmul.f32 %v4324_v4, %v4555_v2  ;;  %v1235_v8 = vmul.f32 %v4265_v54, %v4516_v31  ;;  %v4586_v19 = vld [vmem:[#allocation2 + $0xb2] sm:$0xff] }
  0xff   : > { %v1562_v34 = vadd.f32 %v1546_v61, %v1510_v24  ;;  %v1199_v13 = vadd.f32 %v1183_v62, %v1147_v46  ;;  %v836_v58 = vadd.f32 %v5620_v56, %v5619_v30  ;;  %v1079_v48 = vmul.f32 %v4247_v20, %v4494_v49 }
 0x100   : > { %v1407_v61 = vadd.f32 %v1391_v39, %v1354_v47  ;;  %v1043_v18 = vadd.f32 %v1027_v25, %v991_v15  ;;  %v1287_v32 = vmul.f32 %v4279_v40, %v4518_v27  ;;  %v924_v53 = vmul.f32 %v3046_v16, %v4204_v26  ;;  %v4599_v15 = vld [vmem:[#allocation2 + $0xb3] sm:$0xff] }
 0x101   : > { %v1614_v45 = vadd.f32 %v1598_v11, %v1562_v34  ;;  %v1251_v6 = vadd.f32 %v1235_v8, %v1199_v13  ;;  %v888_v7 = vadd.f32 %v5621_v0, %v836_v58  ;;  %v1599_v11 = vmul.f32 %v4336_v43, %v4567_v52  ;;  %v5622_v13 = vld [vmem:[#allocation23_spill] sm:$0xff]  ;;  %v5623_v8 = vld [vmem:[#allocation21_spill] sm:$0xff] }
 0x102   : > { %v1459_v17 = vadd.f32 %v1443_v36, %v1407_v61  ;;  %v1095_v60 = vadd.f32 %v1079_v48, %v1043_v18  ;;  %v1132_v49 = vmul.f32 %v4252_v55, %v1371_v5  ;;  %v1339_v35 = vmul.f32 %v4284_v28, %v4525_v23  ;;  %v4608_v61 = vld [vmem:[#allocation2 + $0xb4] sm:$0xff]  ;;  %v1373_v18 = vld [vmem:[#allocation2 + $0xc0] sm:$0xff]  ;;  %v3047_v0 = vld [vmem:[#allocation2 + $0xa9] sm:$0xff] }
 0x103   : > { %1630 = vst.msk [vmem:[%s4428_s22 + $0x28] sm:$0xff] %vm192_vm0, %v1614_v45  ;;  %v1303_v44 = vadd.f32 %v1287_v32, %v1251_v6  ;;  %v940_v39 = vadd.f32 %v924_v53, %v888_v7  ;;  %v976_v29 = vmul.f32 %v4224_v57, %v4516_v31  ;;  %v1392_v24 = vmul.f32 %v4297_v9, %v1372_v63  ;;  %v5624_v6 = vld [vmem:[#allocation26_spill] sm:$0xff] }
 0x104   : > { %v1511_v50 = vadd.f32 %v1495_v10, %v1459_v17  ;;  %v1148_v38 = vadd.f32 %v1132_v49, %v1095_v60  ;;  %v1184_v37 = vmul.f32 %v4260_v41, %v1423_v42  ;;  %v1444_v36 = vmul.f32 %v4308_v14, %v1424_v59 }
 0x105   : > { %v1355_v1 = vadd.f32 %v1339_v35, %v1303_v44  ;;  %v992_v5 = vadd.f32 %v976_v29, %v940_v39  ;;  %v1028_v46 = vmul.f32 %v4233_v22, %v4518_v27  ;;  %v1496_v34 = vmul.f32 %v4317_v21, %v4586_v19 }
 0x106   : > { %v1563_v62 = vadd.f32 %v1547_v33, %v1511_v50  ;;  %v1200_v47 = vadd.f32 %v1184_v37, %v1148_v38  ;;  %v1236_v31 = vmul.f32 %v4265_v54, %v4547_v3  ;;  %v1080_v25 = vmul.f32 %v4247_v20, %v4525_v23  ;;  %v4626_v38 = vld [vmem:[#allocation2 + $0xc2] sm:$0xff] }
 0x107   : > { %v1408_v10 = vadd.f32 %v1392_v24, %v1355_v1  ;;  %v1044_v42 = vadd.f32 %v1028_v46, %v992_v5  ;;  %v837_v30 = vadd.f32 %v5623_v8, %v5622_v13  ;;  %v1288_v56 = vmul.f32 %v4279_v40, %v4555_v2 }
 0x108   : > { %v1615_v27 = vadd.f32 %v1599_v11, %v1563_v62  ;;  %v1252_v33 = vadd.f32 %v1236_v31, %v1200_v47  ;;  %v1133_v58 = vmul.f32 %v4252_v55, %v1372_v63  ;;  %v925_v23 = vmul.f32 %v3047_v0, %v4204_v26  ;;  %v1425_v11 = vld [vmem:[#allocation2 + $0xc1] sm:$0xff] }
 0x109   : > { %v1460_v45 = vadd.f32 %v1444_v36, %v1408_v10  ;;  %v1096_v48 = vadd.f32 %v1080_v25, %v1044_v42  ;;  %v889_v32 = vadd.f32 %v5624_v6, %v837_v30  ;;  %v1548_v7 = vmul.f32 %v4324_v4, %v4599_v15  ;;  %v1374_v31 = vld [vmem:[#allocation2 + $0xc8] sm:$0xff]  ;;  %v5625_v42 = vld [vmem:[#allocation25_spill] sm:$0xff]  ;;  %v5626_v25 = vld [vmem:[#allocation22_spill] sm:$0xff] }
 0x10a   : > { %1631 = vst.msk [vmem:[%s4428_s22 + $0x30] sm:$0xff] %vm192_vm0, %v1615_v27  ;;  %v1304_v16 = vadd.f32 %v1288_v56, %v1252_v33  ;;  %v1340_v53 = vmul.f32 %v4284_v28, %v4567_v52  ;;  %v1185_v63 = vmul.f32 %v4260_v41, %v1424_v59  ;;  %v977_v44 = vmul.f32 %v4224_v57, %v4547_v3  ;;  %v1426_v56 = vld [vmem:[#allocation2 + $0xc9] sm:$0xff]  ;;  %v3048_v6 = vld [vmem:[#allocation2 + $0xb1] sm:$0xff] }
 0x10b   : > { %v1512_v17 = vadd.f32 %v1496_v34, %v1460_v45  ;;  %v1149_v60 = vadd.f32 %v1133_v58, %v1096_v48  ;;  %v941_v49 = vadd.f32 %v925_v23, %v889_v32  ;;  %v1600_v35 = vmul.f32 %v4336_v43, %v4608_v61  ;;  %v4635_v34 = vld [vmem:[#allocation2 + $0xc3] sm:$0xff]  ;;  %v5627_v45 = vld [vmem:[#allocation30_spill] sm:$0xff] }
 0x10c   : > { %v1356_v39 = vadd.f32 %v1340_v53, %v1304_v16  ;;  %v1393_v29 = vmul.f32 %v4297_v9, %v1373_v18  ;;  %v1237_v50 = vmul.f32 %v4265_v54, %v4586_v19  ;;  %v1029_v1 = vmul.f32 %v4233_v22, %v4555_v2  ;;  %v4654_v53 = vld [vmem:[#allocation2 + $0xca] sm:$0xff] }
 0x10d   : > { %v1564_v24 = vadd.f32 %v1548_v7, %v1512_v17  ;;  %v1201_v59 = vadd.f32 %v1185_v63, %v1149_v60  ;;  %v993_v37 = vadd.f32 %v977_v44, %v941_v49  ;;  %v1445_v3 = vmul.f32 %v4308_v14, %v1425_v11 }
 0x10e   : > { %v1409_v36 = vadd.f32 %v1393_v29, %v1356_v39  ;;  %v1289_v5 = vmul.f32 %v4279_v40, %v4599_v15  ;;  %v1081_v46 = vmul.f32 %v4247_v20, %v4567_v52  ;;  %v838_v13 = vadd.f32 %v5626_v25, %v5625_v42  ;;  %v4646_v52 = vld [vmem:[#allocation2 + $0xc4] sm:$0xff] }
 0x10f   : > { %v1616_v62 = vadd.f32 %v1600_v35, %v1564_v24  ;;  %v1253_v47 = vadd.f32 %v1237_v50, %v1201_v59  ;;  %v1045_v10 = vadd.f32 %v1029_v1, %v993_v37  ;;  %v1497_v2 = vmul.f32 %v4317_v21, %v4626_v38 }
 0x110   : > { %v1461_v8 = vadd.f32 %v1445_v3, %v1409_v36  ;;  %v1341_v30 = vmul.f32 %v4284_v28, %v4608_v61  ;;  %v1134_v27 = vmul.f32 %v4252_v55, %v1373_v18  ;;  %v890_v48 = vadd.f32 %v5627_v45, %v838_v13  ;;  %v5628_v36 = vld [vmem:[#allocation29_spill] sm:$0xff]  ;;  %v5629_v3 = vld [vmem:[#allocation27_spill] sm:$0xff] }
 0x111   : > { %1632 = vst.msk [vmem:[%s4428_s22 + $0x38] sm:$0xff] %vm192_vm0, %v1616_v62  ;;  %v1305_v33 = vadd.f32 %v1289_v5, %v1253_v47  ;;  %v1097_v58 = vadd.f32 %v1081_v46, %v1045_v10  ;;  %v926_v32 = vmul.f32 %v3048_v6, %v4204_v26  ;;  %v1549_v23 = vmul.f32 %v4324_v4, %v4635_v34  ;;  %v4673_v62 = vld [vmem:[#allocation2 + $0xcc] sm:$0xff]  ;;  %v1375_v10 = vld [vmem:[#allocation2 + $0xd8] sm:$0xff] }
 0x112   : > { %v1513_v0 = vadd.f32 %v1497_v2, %v1461_v8  ;;  %v1394_v7 = vmul.f32 %v4297_v9, %v1374_v31  ;;  %v1186_v18 = vmul.f32 %v4260_v41, %v1425_v11  ;;  %v978_v60 = vmul.f32 %v4224_v57, %v4586_v19  ;;  %v4663_v11 = vld [vmem:[#allocation2 + $0xcb] sm:$0xff]  ;;  %v5630_v8 = vld [vmem:[#allocation31_spill] sm:$0xff] }
 0x113   : > { %v1357_v16 = vadd.f32 %v1341_v30, %v1305_v33  ;;  %v1150_v63 = vadd.f32 %v1134_v27, %v1097_v58  ;;  %v942_v17 = vadd.f32 %v926_v32, %v890_v48  ;;  %v1601_v44 = vmul.f32 %v4336_v43, %v4646_v52  ;;  %v3049_v30 = vld [vmem:[#allocation2 + $0xc1] sm:$0xff]  ;;  %v1427_v45 = vld [vmem:[#allocation2 + $0xd9] sm:$0xff] }
 0x114   : > { %v1565_v49 = vadd.f32 %v1549_v23, %v1513_v0  ;;  %v1446_v35 = vmul.f32 %v4308_v14, %v1426_v56  ;;  %v1238_v39 = vmul.f32 %v4265_v54, %v4626_v38  ;;  %v1030_v59 = vmul.f32 %v4233_v22, %v4599_v15 }
 0x115   : > { %v1410_v29 = vadd.f32 %v1394_v7, %v1357_v16  ;;  %v1202_v50 = vadd.f32 %v1186_v18, %v1150_v63  ;;  %v994_v24 = vadd.f32 %v978_v60, %v942_v17  ;;  %v1498_v19 = vmul.f32 %v4317_v21, %v4654_v53  ;;  %v4691_v16 = vld [vmem:[#allocation2 + $0xda] sm:$0xff]  ;;  %v5631_v60 = vld [vmem:[#allocation80_spill] sm:$0xff] }
 0x116   : > { %v1617_v37 = vadd.f32 %v1601_v44, %v1565_v49  ;;  %v1290_v1 = vmul.f32 %v4279_v40, %v4635_v34  ;;  %v839_v5 = vadd.f32 %v5629_v3, %v5628_v36  ;;  %v1082_v25 = vmul.f32 %v4247_v20, %v4608_v61  ;;  %v4699_v44 = vld [vmem:[#allocation2 + $0xdb] sm:$0xff] }
 0x117   : > { %v1462_v46 = vadd.f32 %v1446_v35, %v1410_v29  ;;  %v1254_v47 = vadd.f32 %v1238_v39, %v1202_v50  ;;  %v1046_v42 = vadd.f32 %v1030_v59, %v994_v24  ;;  %v1550_v15 = vmul.f32 %v4324_v4, %v4663_v11  ;;  %v4707_v59 = vld [vmem:[#allocation2 + $0xdc] sm:$0xff] }
 0x118   : > { %1633 = vst.msk [vmem:[%s4428_s22 + $0x40] sm:$0xff] %vm192_vm0, %v1617_v37  ;;  %v1342_v13 = vmul.f32 %v4284_v28, %v4646_v52  ;;  %v891_v2 = vadd.f32 %v5630_v8, %v839_v5  ;;  %v927_v27 = vmul.f32 %v3049_v30, %v4204_v26  ;;  %v1135_v6 = vmul.f32 %v4252_v55, %v1374_v31  ;;  %v3050_v8 = vld [vmem:[#allocation2 + $0xc9] sm:$0xff] }
 0x119   : > { %v1514_v33 = vadd.f32 %v1498_v19, %v1462_v46  ;;  %v1306_v58 = vadd.f32 %v1290_v1, %v1254_v47  ;;  %v1098_v48 = vadd.f32 %v1082_v25, %v1046_v42  ;;  %v1602_v61 = vmul.f32 %v4336_v43, %v4673_v62  ;;  %v5632_v19 = vld [vmem:[#allocation32_spill] sm:$0xff]  ;;  %v1376_v47 = vld [vmem:[#allocation2 + $0xe0] sm:$0xff] }
 0x11a   : > { %v1395_v32 = vmul.f32 %v4297_v9, %v1375_v10  ;;  %v943_v0 = vadd.f32 %v927_v27, %v891_v2  ;;  %v979_v23 = vmul.f32 %v4224_v57, %v4626_v38  ;;  %v1187_v17 = vmul.f32 %v4260_v41, %v1426_v56  ;;  %v5633_v1 = vld [vmem:[#allocation28_spill] sm:$0xff] }
 0x11b   : > { %v1566_v7 = vadd.f32 %v1550_v15, %v1514_v33  ;;  %v1358_v18 = vadd.f32 %v1342_v13, %v1306_v58  ;;  %v1151_v63 = vadd.f32 %v1135_v6, %v1098_v48  ;;  %v4696_v31 = vadd.f32 %v5631_v60, %v4488_v12  ;;  %v1428_v42 = vld [vmem:[#allocation2 + $0xe1] sm:$0xff] }
 0x11c   : > { %v1447_v49 = vmul.f32 %v4308_v14, %v1427_v45  ;;  %v995_v35 = vadd.f32 %v979_v23, %v943_v0  ;;  %v1031_v38 = vmul.f32 %v4233_v22, %v4635_v34  ;;  %v1239_v24 = vmul.f32 %v4265_v54, %v4654_v53  ;;  %v5634_v13 = vld [vmem:[#allocation36_spill] sm:$0xff] }
 0x11d   : > { %v1618_v39 = vadd.f32 %v1602_v61, %v1566_v7  ;;  %v1411_v29 = vadd.f32 %v1395_v32, %v1358_v18  ;;  %v1203_v50 = vadd.f32 %v1187_v17, %v1151_v63  ;;  %v1499_v56 = vmul.f32 %v4317_v21, %v4691_v16  ;;  %v4726_v48 = vld [vmem:[#allocation2 + $0xe2] sm:$0xff] }
 0x11e   : > { %v1047_v12 = vadd.f32 %v1031_v38, %v995_v35  ;;  %v1083_v37 = vmul.f32 %v4247_v20, %v4646_v52  ;;  %v840_v36 = vadd.f32 %v5633_v1, %v5632_v19  ;;  %v1551_v3 = vmul.f32 %v4324_v4, %v4699_v44  ;;  %v4733_v18 = vld [vmem:[#allocation2 + $0xe3] sm:$0xff]  ;;  %v5636_v38 = vld [vmem:[#allocation33_spill] sm:$0xff] }
 0x11f   : > { %1634 = vst.msk [vmem:[%s4428_s22 + $0x48] sm:$0xff] %vm192_vm0, %v1618_v39  ;;  %v1463_v34 = vadd.f32 %v1447_v49, %v1411_v29  ;;  %v1255_v5 = vadd.f32 %v1239_v24, %v1203_v50  ;;  %v1291_v46 = vmul.f32 %v4279_v40, %v4663_v11  ;;  %v1136_v15 = vmul.f32 %v4252_v55, %v1375_v10  ;;  %v4743_v29 = vld [vmem:[#allocation2 + $0xe4] sm:$0xff]  ;;  %v5637_v19 = vld [vmem:[#allocation37_spill] sm:$0xff] }
 0x120   : > { %v1099_v25 = vadd.f32 %v1083_v37, %v1047_v12  ;;  %v892_v52 = vadd.f32 %v5634_v13, %v840_v36  ;;  %v928_v2 = vmul.f32 %v3050_v8, %v4204_v26  ;;  %v1603_v27 = vmul.f32 %v4336_v43, %v4707_v59  ;;  %v1377_v37 = vld [vmem:[#allocation2 + $0xf0] sm:$0xff]  ;;  %v3051_v36 = vld [vmem:[#allocation2 + $0xd9] sm:$0xff]  ;;  %v4770_v8 = vld [vmem:[%s5517_s1 + $0xc] ss:$0 sm:$0xff] }
 0x121   : > { %v1515_v30 = vadd.f32 %v1499_v56, %v1463_v34  ;;  %v1307_v33 = vadd.f32 %v1291_v46, %v1255_v5  ;;  %v1343_v58 = vmul.f32 %v4284_v28, %v4673_v62  ;;  %v1188_v61 = vmul.f32 %v4260_v41, %v1427_v45  ;;  %v4757_v34 = vld [vmem:[%s5517_s1 + $0xb] ss:$0 sm:$0xff]  ;;  %v4765_v13 = vld [vmem:[#allocation2 + $0xf2] sm:$0xff] }
 0x122   : > { %v1152_v6 = vadd.f32 %v1136_v15, %v1099_v25  ;;  %v944_v32 = vadd.f32 %v928_v2, %v892_v52  ;;  %v980_v10 = vmul.f32 %v4224_v57, %v4654_v53  ;;  %v1396_v26 = vmul.f32 %v4297_v9, %v1376_v47  ;;  %v5635_v53 = vld [vmem:[#allocation35_spill] sm:$0xff] }
 0x123   : > { %v1567_v0 = vadd.f32 %v1551_v3, %v1515_v30  ;;  %v1359_v23 = vadd.f32 %v1343_v58, %v1307_v33  ;;  %v1448_v7 = vmul.f32 %v4308_v14, %v1428_v42  ;;  %v1240_v17 = vmul.f32 %v4265_v54, %v4691_v16  ;;  %v4777_v58 = vld [vmem:[#allocation2 + $0xf3] sm:$0xff] }
 0x124   : > { %v1204_v63 = vadd.f32 %v1188_v61, %v1152_v6  ;;  %v996_v60 = vadd.f32 %v980_v10, %v944_v32  ;;  %v1032_v45 = vmul.f32 %v4233_v22, %v4663_v11  ;;  %v1500_v57 = vmul.f32 %v4317_v21, %v4726_v48  ;;  %v4782_v61 = vld [vmem:[%s5517_s1 + $0xd] ss:$0 sm:$0xff]  ;;  %v4790_v10 = vld [vmem:[#allocation2 + $0xf4] sm:$0xff] }
 0x125   : > { %v1619_v49 = vadd.f32 %v1603_v27, %v1567_v0  ;;  %v1412_v35 = vadd.f32 %v1396_v26, %v1359_v23  ;;  %v841_v39 = vadd.f32 %v5636_v38, %v5635_v53  ;;  %v1292_v24 = vmul.f32 %v4279_v40, %v4699_v44  ;;  %v4795_v23 = vld [vmem:[%s5517_s1 + $0xe] ss:$0 sm:$0xff]  ;;  %v5638_v26 = vld [vmem:[#allocation38_spill] sm:$0xff]  ;;  %v5640_v53 = vld [vmem:[#allocation39_spill] sm:$0xff] }
 0x126   : > { %v1256_v50 = vadd.f32 %v1240_v17, %v1204_v63  ;;  %v1048_v56 = vadd.f32 %v1032_v45, %v996_v60  ;;  %v1084_v12 = vmul.f32 %v4247_v20, %v4673_v62  ;;  %v1552_v11 = vmul.f32 %v4324_v4, %v4733_v18  ;;  %v1429_v62 = vld [vmem:[#allocation2 + $0xf1] sm:$0xff] }
 0x127   : > { %1635 = vst.msk [vmem:[%s4428_s22 + $0x50] sm:$0xff] %vm192_vm0, %v1619_v49  ;;  %v1464_v22 = vadd.f32 %v1448_v7, %v1412_v35  ;;  %v893_v1 = vadd.f32 %v5637_v19, %v841_v39  ;;  %v929_v40 = vmul.f32 %v4757_v34, %v3051_v36  ;;  %v1344_v20 = vmul.f32 %v4284_v28, %v4707_v59  ;;  %v5639_v7 = vld [vmem:[#allocation34_spill] sm:$0xff]  ;;  %v4806_v60 = vld [vmem:[%s5517_s1 + $0x12] ss:$0 sm:$0xff]  ;;  %v3058_v39 = vld [vmem:[#allocation2 + $0xe1] sm:$0xff] }
 0x128   : > { %v1308_v3 = vadd.f32 %v1292_v24, %v1256_v50  ;;  %v1100_v5 = vadd.f32 %v1084_v12, %v1048_v56  ;;  %v1137_v46 = vmul.f32 %v4252_v55, %v1376_v47  ;;  %v1604_v15 = vmul.f32 %v4336_v43, %v4743_v29  ;;  %v1378_v49 = vld [vmem:[#allocation2 + $0xf8] sm:$0xff] }
 0x129   : > { %v1516_v25 = vadd.f32 %v1500_v57, %v1464_v22  ;;  %v945_v52 = vadd.f32 %v929_v40, %v893_v1  ;;  %v981_v2 = vmul.f32 %v4770_v8, %v4691_v16  ;;  %v1397_v30 = vmul.f32 %v4297_v9, %v1377_v37  ;;  %v4815_v57 = vld [vmem:[%s5517_s1 + $0xf] ss:$0 sm:$0xff]  ;;  %v4825_v22 = vld [vmem:[%s5517_s1 + $0x13] ss:$0 sm:$0xff]  ;;  %v4829_v19 = vld [vmem:[#allocation2 + $0xfa] sm:$0xff] }
 0x12a   : > { %v1360_v28 = vadd.f32 %v1344_v20, %v1308_v3  ;;  %v1153_v27 = vadd.f32 %v1137_v46, %v1100_v5  ;;  %v1189_v55 = vmul.f32 %v4260_v41, %v1428_v42  ;;  %v1449_v33 = vmul.f32 %v4308_v14, %v1429_v62  ;;  %v4834_v1 = vld [vmem:[%s5517_s1 + $0x10] ss:$0 sm:$0xff]  ;;  %v4842_v5 = vld [vmem:[%s5517_s1 + $0x14] ss:$0 sm:$0xff] }
 0x12b   : > { %v1568_v47 = vadd.f32 %v1552_v11, %v1516_v25  ;;  %v997_v6 = vadd.f32 %v981_v2, %v945_v52  ;;  %v1033_v16 = vmul.f32 %v4782_v61, %v4699_v44  ;;  %v1501_v9 = vmul.f32 %v4317_v21, %v4765_v13  ;;  %v4848_v25 = vld [vmem:[%s5517_s1 + $0x15] ss:$0 sm:$0xff]  ;;  %v4856_v52 = vld [vmem:[%s5517_s1 + $0x11] ss:$0 sm:$0xff] }
 0x12c   : > { %v1413_v32 = vadd.f32 %v1397_v30, %v1360_v28  ;;  %v1205_v41 = vadd.f32 %v1189_v55, %v1153_v27  ;;  %v1241_v14 = vmul.f32 %v4265_v54, %v4726_v48  ;;  %v1085_v44 = vmul.f32 %v4795_v23, %v4707_v59  ;;  %v1430_v59 = vld [vmem:[#allocation2 + $0xf9] sm:$0xff] }
 0x12d   : > { %v1620_v42 = vadd.f32 %v1604_v15, %v1568_v47  ;;  %v1049_v0 = vadd.f32 %v1033_v16, %v997_v6  ;;  %v842_v63 = vadd.f32 %v5639_v7, %v5638_v26  ;;  %v1553_v17 = vmul.f32 %v4324_v4, %v4777_v58  ;;  %v4851_v15 = vld [vmem:[#allocation2 + $0xfb] sm:$0xff]  ;;  %v4865_v47 = vld [vmem:[%s5517_s1 + $0x16] ss:$0 sm:$0xff]  ;;  %v5642_v16 = vld [vmem:[#allocation40_spill] sm:$0xff] }
 0x12e   : > { %v1465_v21 = vadd.f32 %v1449_v33, %v1413_v32  ;;  %v1257_v54 = vadd.f32 %v1241_v14, %v1205_v41  ;;  %v1293_v45 = vmul.f32 %v4806_v60, %v4733_v18  ;;  %v1138_v4 = vmul.f32 %v4815_v57, %v1377_v37  ;;  %v5641_v6 = vld [vmem:[#allocation41_spill] sm:$0xff]  ;;  %v1379_v7 = vld [vmem:[#allocation2 + $0x108] sm:$0xff] }
 0x12f   : > { %1636 = vst.msk [vmem:[%s4428_s22 + $0x58] sm:$0xff] %vm192_vm0, %v1620_v42  ;;  %v1101_v35 = vadd.f32 %v1085_v44, %v1049_v0  ;;  %v894_v38 = vadd.f32 %v5640_v53, %v842_v63  ;;  %v930_v50 = vmul.f32 %v3058_v39, %v4757_v34  ;;  %v1605_v56 = vmul.f32 %v4336_v43, %v4790_v10  ;;  %v4882_v44 = vld [vmem:[%s5517_s1 + $0x17] ss:$0 sm:$0xff]  ;;  %v5643_v63 = vld [vmem:[#allocation44_spill] sm:$0xff]  ;;  %v4894_v39 = vld [vmem:[%s5517_s1 + $0x18] ss:$0 sm:$0xff] }
 0x130   : > { %v1517_v24 = vadd.f32 %v1501_v9, %v1465_v21  ;;  %v1309_v12 = vadd.f32 %v1293_v45, %v1257_v54  ;;  %v1345_v11 = vmul.f32 %v4825_v22, %v4743_v29  ;;  %v1190_v36 = vmul.f32 %v4834_v1, %v1429_v62  ;;  %v4871_v9 = vld [vmem:[#allocation2 + $0xfc] sm:$0xff] }
 0x131   : > { %v1154_v37 = vadd.f32 %v1138_v4, %v1101_v35  ;;  %v946_v43 = vadd.f32 %v930_v50, %v894_v38  ;;  %v982_v40 = vmul.f32 %v4770_v8, %v4726_v48  ;;  %v1398_v46 = vmul.f32 %v4842_v5, %v1378_v49  ;;  %v1431_v35 = vld [vmem:[#allocation2 + $0x109] sm:$0xff] }
 0x132   : > { %v1569_v3 = vadd.f32 %v1553_v17, %v1517_v24  ;;  %v1361_v20 = vadd.f32 %v1345_v11, %v1309_v12  ;;  %v1450_v62 = vmul.f32 %v4848_v25, %v1430_v59  ;;  %v1242_v2 = vmul.f32 %v4856_v52, %v4765_v13  ;;  %v3066_v17 = vld [vmem:[#allocation2 + $0xf1] sm:$0xff] }
 0x133   : > { %v1206_v48 = vadd.f32 %v1190_v36, %v1154_v37  ;;  %v998_v28 = vadd.f32 %v982_v40, %v946_v43  ;;  %v1034_v30 = vmul.f32 %v4782_v61, %v4733_v18  ;;  %v1502_v33 = vmul.f32 %v4865_v47, %v4829_v19  ;;  %v4898_v24 = vld [vmem:[#allocation2 + $0x10a] sm:$0xff] }
 0x134   : > { %v1621_v27 = vadd.f32 %v1605_v56, %v1569_v3  ;;  %v1414_v55 = vadd.f32 %v1398_v46, %v1361_v20  ;;  %v2091_v32 = vadd.f32 %v5642_v16, %v5641_v6  ;;  %v1294_v14 = vmul.f32 %v4806_v60, %v4777_v58  ;;  %v4905_v3 = vld [vmem:[#allocation2 + $0x10b] sm:$0xff] }
 0x135   : > { %v1258_v41 = vadd.f32 %v1242_v2, %v1206_v48  ;;  %v1050_v18 = vadd.f32 %v1034_v30, %v998_v28  ;;  %v1086_v42 = vmul.f32 %v4795_v23, %v4743_v29  ;;  %v1554_v26 = vmul.f32 %v4882_v44, %v4851_v15 }
 0x136   : > { %1637 = vst.msk [vmem:[%s4428_s22 + $0x60] sm:$0xff] %vm192_vm0, %v1621_v27  ;;  %v1466_v0 = vadd.f32 %v1450_v62, %v1414_v55  ;;  %v2140_v21 = vadd.f32 %v5643_v63, %v2091_v32  ;;  %v2172_v54 = vmul.f32 %v3066_v17, %v4757_v34  ;;  %v1346_v29 = vmul.f32 %v4825_v22, %v4790_v10  ;;  %v5644_v55 = vld [vmem:[#allocation43_spill] sm:$0xff] }
 0x137   : > { %v1310_v45 = vadd.f32 %v1294_v14, %v1258_v41  ;;  %v1102_v4 = vadd.f32 %v1086_v42, %v1050_v18  ;;  %v1139_v53 = vmul.f32 %v4815_v57, %v1378_v49  ;;  %v1606_v50 = vmul.f32 %v4894_v39, %v4871_v9  ;;  %v1380_v14 = vld [vmem:[#allocation2 + $0x110] sm:$0xff]  ;;  %v3068_v63 = vld [vmem:[#allocation2 + $0xf9] sm:$0xff] }
 0x138   : > { %v1518_v38 = vadd.f32 %v1502_v33, %v1466_v0  ;;  %v2188_v56 = vadd.f32 %v2172_v54, %v2140_v21  ;;  %v2220_v12 = vmul.f32 %v4770_v8, %v4765_v13  ;;  %v1399_v37 = vmul.f32 %v4842_v5, %v1379_v7  ;;  %v5645_v33 = vld [vmem:[#allocation42_spill] sm:$0xff] }
 0x139   : > { %v1362_v11 = vadd.f32 %v1346_v29, %v1310_v45  ;;  %v1155_v36 = vadd.f32 %v1139_v53, %v1102_v4  ;;  %v1191_v49 = vmul.f32 %v4834_v1, %v1430_v59  ;;  %v1451_v40 = vmul.f32 %v4848_v25, %v1431_v35  ;;  %v4913_v59 = vld [vmem:[#allocation2 + $0x10c] sm:$0xff] }
 0x13a   : > { %v1570_v43 = vadd.f32 %v1554_v26, %v1518_v38  ;;  %v2236_v20 = vadd.f32 %v2220_v12, %v2188_v56  ;;  %v2268_v46 = vmul.f32 %v4782_v61, %v4777_v58  ;;  %v1503_v13 = vmul.f32 %v4865_v47, %v4898_v24  ;;  %v1432_v18 = vld [vmem:[#allocation2 + $0x111] sm:$0xff]  ;;  %v5646_v26 = vld [vmem:[#allocation47_spill] sm:$0xff] }
 0x13b   : > { %v1415_v62 = vadd.f32 %v1399_v37, %v1362_v11  ;;  %v1207_v48 = vadd.f32 %v1191_v49, %v1155_v36  ;;  %v1243_v2 = vmul.f32 %v4856_v52, %v4829_v19  ;;  %v2316_v27 = vmul.f32 %v4795_v23, %v4790_v10  ;;  %v4932_v4 = vld [vmem:[#allocation2 + $0x112] sm:$0xff] }
 0x13c   : > { %v1622_v28 = vadd.f32 %v1606_v50, %v1570_v43  ;;  %v2284_v30 = vadd.f32 %v2268_v46, %v2236_v20  ;;  %v2092_v6 = vadd.f32 %v5645_v33, %v5644_v55  ;;  %v1555_v58 = vmul.f32 %v4882_v44, %v4905_v3  ;;  %v4939_v36 = vld [vmem:[#allocation2 + $0x113] sm:$0xff] }
 0x13d   : > { %v1467_v16 = vadd.f32 %v1451_v40, %v1415_v62  ;;  %v1259_v32 = vadd.f32 %v1243_v2, %v1207_v48  ;;  %v1295_v41 = vmul.f32 %v4806_v60, %v4851_v15  ;;  %v2365_v0 = vmul.f32 %v4815_v57, %v1379_v7  ;;  %v5647_v62 = vld [vmem:[#allocation48_spill] sm:$0xff]  ;;  %v4949_v2 = vld [vmem:[#allocation2 + $0x114] sm:$0xff] }
 0x13e   : > { %1638 = vst.msk [vmem:[%s4428_s22 + $0x68] sm:$0xff] %vm192_vm0, %v1622_v28  ;;  %v2332_v42 = vadd.f32 %v2316_v27, %v2284_v30  ;;  %v2141_v10 = vadd.f32 %v5646_v26, %v2092_v6  ;;  %v2173_v21 = vmul.f32 %v3068_v63, %v4757_v34  ;;  %v1607_v54 = vmul.f32 %v4894_v39, %v4913_v59  ;;  %v2590_v6 = vld [vmem:[#allocation2 + $0x120] sm:$0xff] }
 0x13f   : > { %v1519_v17 = vadd.f32 %v1503_v13, %v1467_v16  ;;  %v1311_v45 = vadd.f32 %v1295_v41, %v1259_v32  ;;  %v1347_v29 = vmul.f32 %v4825_v22, %v4871_v9  ;;  %v2413_v38 = vmul.f32 %v4834_v1, %v1431_v35  ;;  %v5648_v13 = vld [vmem:[#allocation45_spill] sm:$0xff]  ;;  %v2638_v26 = vld [vmem:[#allocation2 + $0x121] sm:$0xff] }
 0x140   : > { %v2381_v53 = vadd.f32 %v2365_v0, %v2332_v42  ;;  %v2189_v50 = vadd.f32 %v2173_v21, %v2141_v10  ;;  %v2221_v7 = vmul.f32 %v4770_v8, %v4829_v19  ;;  %v1400_v11 = vmul.f32 %v4842_v5, %v1380_v14  ;;  %v5649_v16 = vld [vmem:[#allocation49_spill] sm:$0xff] }
 0x141   : > { %v1571_v56 = vadd.f32 %v1555_v58, %v1519_v17  ;;  %v1363_v12 = vadd.f32 %v1347_v29, %v1311_v45  ;;  %v1452_v37 = vmul.f32 %v4848_v25, %v1432_v18  ;;  %v2461_v43 = vmul.f32 %v4856_v52, %v4898_v24  ;;  %v3069_v32 = vld [vmem:[#allocation2 + $0x109] sm:$0xff] }
 0x142   : > { %v2429_v49 = vadd.f32 %v2413_v38, %v2381_v53  ;;  %v2237_v40 = vadd.f32 %v2221_v7, %v2189_v50  ;;  %v2269_v35 = vmul.f32 %v4782_v61, %v4851_v15  ;;  %v1504_v19 = vmul.f32 %v4865_v47, %v4932_v4  ;;  %v4966_v17 = vld [vmem:[#allocation2 + $0x122] sm:$0xff] }
 0x143   : > { %v1623_v20 = vadd.f32 %v1607_v54, %v1571_v56  ;;  %v1416_v46 = vadd.f32 %v1400_v11, %v1363_v12  ;;  %v2093_v48 = vadd.f32 %v5648_v13, %v5647_v62  ;;  %v2509_v30 = vmul.f32 %v4806_v60, %v4905_v3 }
 0x144   : > { %v2477_v28 = vadd.f32 %v2461_v43, %v2429_v49  ;;  %v2285_v27 = vadd.f32 %v2269_v35, %v2237_v40  ;;  %v2317_v55 = vmul.f32 %v4795_v23, %v4871_v9  ;;  %v1556_v33 = vmul.f32 %v4882_v44, %v4939_v36 }
 0x145   : > { %1639 = vst.msk [vmem:[%s4428_s22 + $0x70] sm:$0xff] %vm192_vm0, %v1623_v20  ;;  %v1468_v15 = vadd.f32 %v1452_v37, %v1416_v46  ;;  %v2142_v58 = vadd.f32 %v5649_v16, %v2093_v48  ;;  %v2174_v41 = vmul.f32 %v3069_v32, %v4757_v34  ;;  %v2557_v0 = vmul.f32 %v4825_v22, %v4913_v59  ;;  %v5650_v46 = vld [vmem:[#allocation50_spill] sm:$0xff] }
 0x146   : > { %v2525_v42 = vadd.f32 %v2509_v30, %v2477_v28  ;;  %v2333_v10 = vadd.f32 %v2317_v55, %v2285_v27  ;;  %v2366_v9 = vmul.f32 %v4815_v57, %v1380_v14  ;;  %v1608_v21 = vmul.f32 %v4894_v39, %v4949_v2  ;;  %v4973_v14 = vld [vmem:[#allocation2 + $0x123] sm:$0xff]  ;;  %v3070_v16 = vld [vmem:[#allocation2 + $0x111] sm:$0xff] }
 0x147   : > { %v1520_v63 = vadd.f32 %v1504_v19, %v1468_v15  ;;  %v2190_v54 = vadd.f32 %v2174_v41, %v2142_v58  ;;  %v2222_v45 = vmul.f32 %v4770_v8, %v4898_v24  ;;  %v2606_v53 = vmul.f32 %v4842_v5, %v2590_v6  ;;  %v5651_v19 = vld [vmem:[#allocation46_spill] sm:$0xff]  ;;  %v2591_v30 = vld [vmem:[#allocation2 + $0x128] sm:$0xff] }
 0x148   : > { %v2573_v29 = vadd.f32 %v2557_v0, %v2525_v42  ;;  %v2382_v38 = vadd.f32 %v2366_v9, %v2333_v10  ;;  %v2414_v50 = vmul.f32 %v4834_v1, %v1432_v18  ;;  %v2654_v56 = vmul.f32 %v4848_v25, %v2638_v26  ;;  %v4981_v18 = vld [vmem:[#allocation2 + $0x124] sm:$0xff] }
 0x149   : > { %v1572_v7 = vadd.f32 %v1556_v33, %v1520_v63  ;;  %v2238_v12 = vadd.f32 %v2222_v45, %v2190_v54  ;;  %v2270_v11 = vmul.f32 %v4782_v61, %v4905_v3  ;;  %v2702_v24 = vmul.f32 %v4865_v47, %v4966_v17  ;;  %v2639_v27 = vld [vmem:[#allocation2 + $0x129] sm:$0xff]  ;;  %v5652_v33 = vld [vmem:[#allocation54_spill] sm:$0xff] }
 0x14a   : > { %v2622_v37 = vadd.f32 %v2606_v53, %v2573_v29  ;;  %v2430_v49 = vadd.f32 %v2414_v50, %v2382_v38  ;;  %v2462_v43 = vmul.f32 %v4856_v52, %v4932_v4  ;;  %v2318_v20 = vmul.f32 %v4795_v23, %v4913_v59  ;;  %v5000_v10 = vld [vmem:[#allocation2 + $0x12a] sm:$0xff] }
 0x14b   : > { %v1624_v40 = vadd.f32 %v1608_v21, %v1572_v7  ;;  %v2286_v35 = vadd.f32 %v2270_v11, %v2238_v12  ;;  %v2094_v62 = vadd.f32 %v5651_v19, %v5650_v46  ;;  %v2750_v3 = vmul.f32 %v4882_v44, %v4973_v14  ;;  %v5007_v38 = vld [vmem:[#allocation2 + $0x12b] sm:$0xff] }
 0x14c   : > { %v2670_v13 = vadd.f32 %v2654_v56, %v2622_v37  ;;  %v2478_v48 = vadd.f32 %v2462_v43, %v2430_v49  ;;  %v2510_v28 = vmul.f32 %v4806_v60, %v4939_v36  ;;  %v2367_v15 = vmul.f32 %v4815_v57, %v2590_v6  ;;  %v5653_v37 = vld [vmem:[#allocation52_spill] sm:$0xff] }
 0x14d   : > { %1640 = vst.msk [vmem:[%s4428_s22 + $0x78] sm:$0xff] %vm192_vm0, %v1624_v40  ;;  %v2334_v55 = vadd.f32 %v2318_v20, %v2286_v35  ;;  %v2143_v59 = vadd.f32 %v5652_v33, %v2094_v62  ;;  %v2175_v58 = vmul.f32 %v3070_v16, %v4757_v34  ;;  %v2798_v41 = vmul.f32 %v4894_v39, %v4981_v18  ;;  %v5017_v43 = vld [vmem:[#allocation2 + $0x12c] sm:$0xff]  ;;  %v2592_v62 = vld [vmem:[#allocation2 + $0x138] sm:$0xff] }
 0x14e   : > { %v2718_v32 = vadd.f32 %v2702_v24, %v2670_v13  ;;  %v2526_v42 = vadd.f32 %v2510_v28, %v2478_v48  ;;  %v2558_v0 = vmul.f32 %v4825_v22, %v4949_v2  ;;  %v2415_v63 = vmul.f32 %v4834_v1, %v2638_v26  ;;  %v5654_v24 = vld [vmem:[#allocation51_spill] sm:$0xff] }
 0x14f   : > { %v2383_v9 = vadd.f32 %v2367_v15, %v2334_v55  ;;  %v2191_v21 = vadd.f32 %v2175_v58, %v2143_v59  ;;  %v2223_v6 = vmul.f32 %v4770_v8, %v4932_v4  ;;  %v2607_v29 = vmul.f32 %v4842_v5, %v2591_v30  ;;  %v5655_v13 = vld [vmem:[#allocation55_spill] sm:$0xff] }
 0x150   : > { %v2766_v54 = vadd.f32 %v2750_v3, %v2718_v32  ;;  %v2574_v45 = vadd.f32 %v2558_v0, %v2526_v42  ;;  %v2655_v53 = vmul.f32 %v4848_v25, %v2639_v27  ;;  %v2463_v7 = vmul.f32 %v4856_v52, %v4966_v17  ;;  %v3071_v48 = vld [vmem:[#allocation2 + $0x121] sm:$0xff]  ;;  %v2640_v33 = vld [vmem:[#allocation2 + $0x139] sm:$0xff] }
 0x151   : > { %v2431_v50 = vadd.f32 %v2415_v63, %v2383_v9  ;;  %v2239_v56 = vadd.f32 %v2223_v6, %v2191_v21  ;;  %v2271_v26 = vmul.f32 %v4782_v61, %v4939_v36  ;;  %v2703_v4 = vmul.f32 %v4865_v47, %v5000_v10  ;;  %v5034_v32 = vld [vmem:[#allocation2 + $0x13a] sm:$0xff] }
 0x152   : > { %v2814_v12 = vadd.f32 %v2798_v41, %v2766_v54  ;;  %v2623_v11 = vadd.f32 %v2607_v29, %v2574_v45  ;;  %v2095_v49 = vadd.f32 %v5654_v24, %v5653_v37  ;;  %v2511_v35 = vmul.f32 %v4806_v60, %v4973_v14 }
 0x153   : > { %v2479_v40 = vadd.f32 %v2463_v7, %v2431_v50  ;;  %v2287_v20 = vadd.f32 %v2271_v26, %v2239_v56  ;;  %v2319_v46 = vmul.f32 %v4795_v23, %v4949_v2  ;;  %v2751_v19 = vmul.f32 %v4882_v44, %v5007_v38 }
 0x154   : > { %2981 = vst.msk [vmem:[%s4428_s22 + $0x80] sm:$0xff] %vm192_vm0, %v2814_v12  ;;  %v2671_v36 = vadd.f32 %v2655_v53, %v2623_v11  ;;  %v2144_v3 = vadd.f32 %v5655_v13, %v2095_v49  ;;  %v2176_v28 = vmul.f32 %v3071_v48, %v4757_v34  ;;  %v2559_v15 = vmul.f32 %v4825_v22, %v4981_v18  ;;  %v5656_v11 = vld [vmem:[#allocation56_spill] sm:$0xff] }
 0x155   : > { %v2527_v55 = vadd.f32 %v2511_v35, %v2479_v40  ;;  %v2335_v59 = vadd.f32 %v2319_v46, %v2287_v20  ;;  %v2368_v2 = vmul.f32 %v4815_v57, %v2591_v30  ;;  %v2799_v58 = vmul.f32 %v4894_v39, %v5017_v43  ;;  %v5041_v30 = vld [vmem:[#allocation2 + $0x13b] sm:$0xff]  ;;  %v3072_v13 = vld [vmem:[#allocation2 + $0x129] sm:$0xff] }
 0x156   : > { %v2719_v16 = vadd.f32 %v2703_v4, %v2671_v36  ;;  %v2192_v41 = vadd.f32 %v2176_v28, %v2144_v3  ;;  %v2224_v42 = vmul.f32 %v4770_v8, %v4966_v17  ;;  %v2608_v9 = vmul.f32 %v4842_v5, %v2592_v62  ;;  %v5657_v4 = vld [vmem:[#allocation53_spill] sm:$0xff]  ;;  %v2593_v35 = vld [vmem:[#allocation2 + $0x140] sm:$0xff] }
 0x157   : > { %v2575_v0 = vadd.f32 %v2559_v15, %v2527_v55  ;;  %v2384_v63 = vadd.f32 %v2368_v2, %v2335_v59  ;;  %v2416_v21 = vmul.f32 %v4834_v1, %v2639_v27  ;;  %v2656_v54 = vmul.f32 %v4848_v25, %v2640_v33  ;;  %v5049_v27 = vld [vmem:[#allocation2 + $0x13c] sm:$0xff] }
 0x158   : > { %v2767_v6 = vadd.f32 %v2751_v19, %v2719_v16  ;;  %v2240_v45 = vadd.f32 %v2224_v42, %v2192_v41  ;;  %v2272_v29 = vmul.f32 %v4782_v61, %v4973_v14  ;;  %v2704_v17 = vmul.f32 %v4865_v47, %v5034_v32  ;;  %v2641_v20 = vld [vmem:[#allocation2 + $0x141] sm:$0xff] }
 0x159   : > { %v2624_v53 = vadd.f32 %v2608_v9, %v2575_v0  ;;  %v2432_v50 = vadd.f32 %v2416_v21, %v2384_v63  ;;  %v2464_v7 = vmul.f32 %v4856_v52, %v5000_v10  ;;  %v2320_v12 = vmul.f32 %v4795_v23, %v4981_v18  ;;  %v5658_v19 = vld [vmem:[#allocation59_spill] sm:$0xff] }
 0x15a   : > { %v2815_v56 = vadd.f32 %v2799_v58, %v2767_v6  ;;  %v2288_v26 = vadd.f32 %v2272_v29, %v2240_v45  ;;  %v2096_v37 = vadd.f32 %v5657_v4, %v5656_v11  ;;  %v2752_v14 = vmul.f32 %v4882_v44, %v5041_v30  ;;  %v5068_v59 = vld [vmem:[#allocation2 + $0x142] sm:$0xff] }
 0x15b   : > { %v2672_v24 = vadd.f32 %v2656_v54, %v2624_v53  ;;  %v2480_v49 = vadd.f32 %v2464_v7, %v2432_v50  ;;  %v2512_v40 = vmul.f32 %v4806_v60, %v5007_v38  ;;  %v2369_v36 = vmul.f32 %v4815_v57, %v2592_v62  ;;  %v5075_v63 = vld [vmem:[#allocation2 + $0x143] sm:$0xff] }
 0x15c   : > { %2982 = vst.msk [vmem:[%s4428_s22 + $0x88] sm:$0xff] %vm192_vm0, %v2815_v56  ;;  %v2336_v46 = vadd.f32 %v2320_v12, %v2288_v26  ;;  %v2145_v18 = vadd.f32 %v5658_v19, %v2096_v37  ;;  %v2177_v3 = vmul.f32 %v3072_v13, %v4757_v34  ;;  %v2800_v28 = vmul.f32 %v4894_v39, %v5049_v27  ;;  %v5659_v53 = vld [vmem:[#allocation60_spill] sm:$0xff]  ;;  %v2594_v37 = vld [vmem:[#allocation2 + $0x150] sm:$0xff] }
 0x15d   : > { %v2720_v48 = vadd.f32 %v2704_v17, %v2672_v24  ;;  %v2528_v55 = vadd.f32 %v2512_v40, %v2480_v49  ;;  %v2560_v15 = vmul.f32 %v4825_v22, %v5017_v43  ;;  %v2417_v16 = vmul.f32 %v4834_v1, %v2640_v33  ;;  %v5660_v17 = vld [vmem:[#allocation57_spill] sm:$0xff]  ;;  %v5085_v7 = vld [vmem:[#allocation2 + $0x144] sm:$0xff]  ;;  %v5661_v24 = vld [vmem:[#allocation62_spill] sm:$0xff] }
 0x15e   : > { %v2385_v2 = vadd.f32 %v2369_v36, %v2336_v46  ;;  %v2193_v58 = vadd.f32 %v2177_v3, %v2145_v18  ;;  %v2225_v62 = vmul.f32 %v4770_v8, %v5000_v10  ;;  %v2609_v0 = vmul.f32 %v4842_v5, %v2593_v35  ;;  %v3073_v49 = vld [vmem:[#allocation2 + $0x139] sm:$0xff]  ;;  %v2642_v19 = vld [vmem:[#allocation2 + $0x151] sm:$0xff] }
 0x15f   : > { %v2768_v41 = vadd.f32 %v2752_v14, %v2720_v48  ;;  %v2576_v42 = vadd.f32 %v2560_v15, %v2528_v55  ;;  %v2657_v9 = vmul.f32 %v4848_v25, %v2641_v20  ;;  %v2465_v6 = vmul.f32 %v4856_v52, %v5034_v32  ;;  %v5102_v48 = vld [vmem:[#allocation2 + $0x152] sm:$0xff] }
 0x160   : > { %v2433_v21 = vadd.f32 %v2417_v16, %v2385_v2  ;;  %v2241_v54 = vadd.f32 %v2225_v62, %v2193_v58  ;;  %v2273_v33 = vmul.f32 %v4782_v61, %v5007_v38  ;;  %v2705_v10 = vmul.f32 %v4865_v47, %v5068_v59 }
 0x161   : > { %v2816_v45 = vadd.f32 %v2800_v28, %v2768_v41  ;;  %v2625_v29 = vadd.f32 %v2609_v0, %v2576_v42  ;;  %v2097_v50 = vadd.f32 %v5660_v17, %v5659_v53  ;;  %v2513_v26 = vmul.f32 %v4806_v60, %v5041_v30 }
 0x162   : > { %v2481_v56 = vadd.f32 %v2465_v6, %v2433_v21  ;;  %v2289_v12 = vadd.f32 %v2273_v33, %v2241_v54  ;;  %v2321_v11 = vmul.f32 %v4795_v23, %v5017_v43  ;;  %v2753_v4 = vmul.f32 %v4882_v44, %v5075_v63 }
 0x163   : > { %2983 = vst.msk [vmem:[%s4428_s22 + $0x90] sm:$0xff] %vm192_vm0, %v2816_v45  ;;  %v2673_v38 = vadd.f32 %v2657_v9, %v2625_v29  ;;  %v2146_v14 = vadd.f32 %v5661_v24, %v2097_v50  ;;  %v2178_v40 = vmul.f32 %v3073_v49, %v4757_v34  ;;  %v2561_v36 = vmul.f32 %v4825_v22, %v5049_v27  ;;  %v5662_v29 = vld [vmem:[#allocation61_spill] sm:$0xff]  ;;  %v3074_v24 = vld [vmem:[#allocation2 + $0x141] sm:$0xff] }
 0x164   : > { %v2529_v46 = vadd.f32 %v2513_v26, %v2481_v56  ;;  %v2337_v18 = vadd.f32 %v2321_v11, %v2289_v12  ;;  %v2370_v43 = vmul.f32 %v4815_v57, %v2593_v35  ;;  %v2801_v3 = vmul.f32 %v4894_v39, %v5085_v7  ;;  %v5109_v35 = vld [vmem:[#allocation2 + $0x153] sm:$0xff] }
 0x165   : > { %v2721_v13 = vadd.f32 %v2705_v10, %v2673_v38  ;;  %v2194_v28 = vadd.f32 %v2178_v40, %v2146_v14  ;;  %v2226_v55 = vmul.f32 %v4770_v8, %v5034_v32  ;;  %v2610_v2 = vmul.f32 %v4842_v5, %v2594_v37  ;;  %v5663_v10 = vld [vmem:[#allocation58_spill] sm:$0xff] }
 0x166   : > { %v2577_v15 = vadd.f32 %v2561_v36, %v2529_v46  ;;  %v2386_v16 = vadd.f32 %v2370_v43, %v2337_v18  ;;  %v2418_v58 = vmul.f32 %v4834_v1, %v2641_v20  ;;  %v2658_v41 = vmul.f32 %v4848_v25, %v2642_v19  ;;  %v5117_v20 = vld [vmem:[#allocation2 + $0x154] sm:$0xff] }
 0x167   : > { %v2769_v62 = vadd.f32 %v2753_v4, %v2721_v13  ;;  %v2242_v42 = vadd.f32 %v2226_v55, %v2194_v28  ;;  %v2274_v0 = vmul.f32 %v4782_v61, %v5041_v30  ;;  %v2706_v32 = vmul.f32 %v4865_v47, %v5102_v48  ;;  %v2595_v26 = vld [vmem:[#allocation2 + $0x158] sm:$0xff] }
 0x168   : > { %v2626_v9 = vadd.f32 %v2610_v2, %v2577_v15  ;;  %v2434_v21 = vadd.f32 %v2418_v58, %v2386_v16  ;;  %v2466_v6 = vmul.f32 %v4856_v52, %v5068_v59  ;;  %v2322_v45 = vmul.f32 %v4795_v23, %v5049_v27  ;;  %v2643_v12 = vld [vmem:[#allocation2 + $0x159] sm:$0xff] }
 0x169   : > { %v2817_v54 = vadd.f32 %v2801_v3, %v2769_v62  ;;  %v2290_v33 = vadd.f32 %v2274_v0, %v2242_v42  ;;  %v2098_v53 = vadd.f32 %v5663_v10, %v5662_v29  ;;  %v2754_v30 = vmul.f32 %v4882_v44, %v5109_v35  ;;  %v5664_v4 = vld [vmem:[#allocation66_spill] sm:$0xff] }
 0x16a   : > { %v2674_v17 = vadd.f32 %v2658_v41, %v2626_v9  ;;  %v2482_v50 = vadd.f32 %v2466_v6, %v2434_v21  ;;  %v2514_v56 = vmul.f32 %v4806_v60, %v5075_v63  ;;  %v2371_v38 = vmul.f32 %v4815_v57, %v2594_v37  ;;  %v5136_v18 = vld [vmem:[#allocation2 + $0x15a] sm:$0xff]  ;;  %v5665_v9 = vld [vmem:[#allocation64_spill] sm:$0xff] }
 0x16b   : > { %2984 = vst.msk [vmem:[%s4428_s22 + $0x98] sm:$0xff] %vm192_vm0, %v2817_v54  ;;  %v2338_v11 = vadd.f32 %v2322_v45, %v2290_v33  ;;  %v2147_v27 = vadd.f32 %v5664_v4, %v2098_v53  ;;  %v2179_v14 = vmul.f32 %v3074_v24, %v4757_v34  ;;  %v2802_v40 = vmul.f32 %v4894_v39, %v5117_v20  ;;  %v5143_v16 = vld [vmem:[#allocation2 + $0x15b] sm:$0xff]  ;;  %v2596_v53 = vld [vmem:[#allocation2 + $0x168] sm:$0xff] }
 0x16c   : > { %v2722_v49 = vadd.f32 %v2706_v32, %v2674_v17  ;;  %v2530_v46 = vadd.f32 %v2514_v56, %v2482_v50  ;;  %v2562_v36 = vmul.f32 %v4825_v22, %v5085_v7  ;;  %v2419_v13 = vmul.f32 %v4834_v1, %v2642_v19  ;;  %v5666_v32 = vld [vmem:[#allocation63_spill] sm:$0xff]  ;;  %v3075_v50 = vld [vmem:[#allocation2 + $0x151] sm:$0xff]  ;;  %v2644_v4 = vld [vmem:[#allocation2 + $0x169] sm:$0xff] }
 0x16d   : > { %v2387_v43 = vadd.f32 %v2371_v38, %v2338_v11  ;;  %v2195_v3 = vadd.f32 %v2179_v14, %v2147_v27  ;;  %v2227_v37 = vmul.f32 %v4770_v8, %v5068_v59  ;;  %v2611_v15 = vmul.f32 %v4842_v5, %v2595_v26  ;;  %v5153_v6 = vld [vmem:[#allocation2 + $0x15c] sm:$0xff] }
 0x16e   : > { %v2770_v28 = vadd.f32 %v2754_v30, %v2722_v49  ;;  %v2578_v55 = vadd.f32 %v2562_v36, %v2530_v46  ;;  %v2659_v2 = vmul.f32 %v4848_v25, %v2643_v12  ;;  %v2467_v62 = vmul.f32 %v4856_v52, %v5102_v48  ;;  %v5667_v17 = vld [vmem:[#allocation67_spill] sm:$0xff]  ;;  %v5170_v49 = vld [vmem:[#allocation2 + $0x16a] sm:$0xff] }
 0x16f   : > { %v2435_v58 = vadd.f32 %v2419_v13, %v2387_v43  ;;  %v2243_v41 = vadd.f32 %v2227_v37, %v2195_v3  ;;  %v2275_v19 = vmul.f32 %v4782_v61, %v5075_v63  ;;  %v2707_v59 = vmul.f32 %v4865_v47, %v5136_v18 }
 0x170   : > { %v2818_v42 = vadd.f32 %v2802_v40, %v2770_v28  ;;  %v2627_v0 = vadd.f32 %v2611_v15, %v2578_v55  ;;  %v2099_v21 = vadd.f32 %v5666_v32, %v5665_v9  ;;  %v2515_v33 = vmul.f32 %v4806_v60, %v5109_v35 }
 0x171   : > { %v2483_v54 = vadd.f32 %v2467_v62, %v2435_v58  ;;  %v2291_v45 = vadd.f32 %v2275_v19, %v2243_v41  ;;  %v2323_v29 = vmul.f32 %v4795_v23, %v5085_v7  ;;  %v2755_v10 = vmul.f32 %v4882_v44, %v5143_v16 }
 0x172   : > { %2985 = vst.msk [vmem:[%s4428_s22 + $0xa0] sm:$0xff] %vm192_vm0, %v2818_v42  ;;  %v2675_v63 = vadd.f32 %v2659_v2, %v2627_v0  ;;  %v2148_v30 = vadd.f32 %v5667_v17, %v2099_v21  ;;  %v2180_v56 = vmul.f32 %v3075_v50, %v4757_v34  ;;  %v2563_v38 = vmul.f32 %v4825_v22, %v5117_v20  ;;  %v5668_v0 = vld [vmem:[#allocation68_spill] sm:$0xff]  ;;  %v3076_v17 = vld [vmem:[#allocation2 + $0x159] sm:$0xff] }
 0x173   : > { %v2531_v11 = vadd.f32 %v2515_v33, %v2483_v54  ;;  %v2339_v27 = vadd.f32 %v2323_v29, %v2291_v45  ;;  %v2372_v7 = vmul.f32 %v4815_v57, %v2595_v26  ;;  %v2803_v14 = vmul.f32 %v4894_v39, %v5153_v6  ;;  %v5177_v26 = vld [vmem:[#allocation2 + $0x16b] sm:$0xff] }
 0x174   : > { %v2723_v24 = vadd.f32 %v2707_v59, %v2675_v63  ;;  %v2196_v40 = vadd.f32 %v2180_v56, %v2148_v30  ;;  %v2228_v46 = vmul.f32 %v4770_v8, %v5102_v48  ;;  %v2612_v43 = vmul.f32 %v4842_v5, %v2596_v53  ;;  %v5669_v59 = vld [vmem:[#allocation65_spill] sm:$0xff] }
 0x175   : > { %v2579_v36 = vadd.f32 %v2563_v38, %v2531_v11  ;;  %v2388_v13 = vadd.f32 %v2372_v7, %v2339_v27  ;;  %v2420_v3 = vmul.f32 %v4834_v1, %v2643_v12  ;;  %v2660_v28 = vmul.f32 %v4848_v25, %v2644_v4  ;;  %v5185_v12 = vld [vmem:[#allocation2 + $0x16c] sm:$0xff] }
 0x176   : > { %v2771_v37 = vadd.f32 %v2755_v10, %v2723_v24  ;;  %v2244_v55 = vadd.f32 %v2228_v46, %v2196_v40  ;;  %v2276_v15 = vmul.f32 %v4782_v61, %v5109_v35  ;;  %v2708_v48 = vmul.f32 %v4865_v47, %v5170_v49  ;;  %v2597_v33 = vld [vmem:[#allocation2 + $0x170] sm:$0xff]  ;;  %v5670_v10 = vld [vmem:[#allocation71_spill] sm:$0xff] }
 0x177   : > { %v2628_v2 = vadd.f32 %v2612_v43, %v2579_v36  ;;  %v2436_v58 = vadd.f32 %v2420_v3, %v2388_v13  ;;  %v2468_v62 = vmul.f32 %v4856_v52, %v5136_v18  ;;  %v2324_v42 = vmul.f32 %v4795_v23, %v5117_v20  ;;  %v2645_v45 = vld [vmem:[#allocation2 + $0x171] sm:$0xff] }
 0x178   : > { %v2819_v41 = vadd.f32 %v2803_v14, %v2771_v37  ;;  %v2292_v19 = vadd.f32 %v2276_v15, %v2244_v55  ;;  %v2100_v9 = vadd.f32 %v5669_v59, %v5668_v0  ;;  %v2756_v35 = vmul.f32 %v4882_v44, %v5177_v26  ;;  %v5204_v27 = vld [vmem:[#allocation2 + $0x172] sm:$0xff] }
 0x179   : > { %v2676_v32 = vadd.f32 %v2660_v28, %v2628_v2  ;;  %v2484_v21 = vadd.f32 %v2468_v62, %v2436_v58  ;;  %v2516_v54 = vmul.f32 %v4806_v60, %v5143_v16  ;;  %v2373_v63 = vmul.f32 %v4815_v57, %v2596_v53  ;;  %v5211_v13 = vld [vmem:[#allocation2 + $0x173] sm:$0xff]  ;;  %v5671_v2 = vld [vmem:[#allocation72_spill] sm:$0xff] }
 0x17a   : > { %2986 = vst.msk [vmem:[%s4428_s22 + $0xa8] sm:$0xff] %vm192_vm0, %v2819_v41  ;;  %v2340_v29 = vadd.f32 %v2324_v42, %v2292_v19  ;;  %v2149_v20 = vadd.f32 %v5670_v10, %v2100_v9  ;;  %v2181_v30 = vmul.f32 %v3076_v17, %v4757_v34  ;;  %v2804_v56 = vmul.f32 %v4894_v39, %v5185_v12  ;;  %v5221_v62 = vld [vmem:[#allocation2 + $0x174] sm:$0xff]  ;;  %v2598_v9 = vld [vmem:[#allocation2 + $0x180] sm:$0xff] }
 0x17b   : > { %v2724_v50 = vadd.f32 %v2708_v48, %v2676_v32  ;;  %v2532_v11 = vadd.f32 %v2516_v54, %v2484_v21  ;;  %v2564_v38 = vmul.f32 %v4825_v22, %v5153_v6  ;;  %v2421_v24 = vmul.f32 %v4834_v1, %v2644_v4  ;;  %v5672_v48 = vld [vmem:[#allocation69_spill] sm:$0xff]  ;;  %v5673_v32 = vld [vmem:[#allocation74_spill] sm:$0xff]  ;;  %v2646_v10 = vld [vmem:[#allocation2 + $0x181] sm:$0xff] }
 0x17c   : > { %v2389_v7 = vadd.f32 %v2373_v63, %v2340_v29  ;;  %v2197_v14 = vadd.f32 %v2181_v30, %v2149_v20  ;;  %v2229_v53 = vmul.f32 %v4770_v8, %v5136_v18  ;;  %v2613_v36 = vmul.f32 %v4842_v5, %v2597_v33  ;;  %v3077_v21 = vld [vmem:[#allocation2 + $0x169] sm:$0xff] }
 0x17d   : > { %v2772_v40 = vadd.f32 %v2756_v35, %v2724_v50  ;;  %v2580_v46 = vadd.f32 %v2564_v38, %v2532_v11  ;;  %v2661_v43 = vmul.f32 %v4848_v25, %v2645_v45  ;;  %v2469_v37 = vmul.f32 %v4856_v52, %v5170_v49  ;;  %v5238_v50 = vld [vmem:[#allocation2 + $0x182] sm:$0xff] }
 0x17e   : > { %v2437_v3 = vadd.f32 %v2421_v24, %v2389_v7  ;;  %v2245_v28 = vadd.f32 %v2229_v53, %v2197_v14  ;;  %v2277_v4 = vmul.f32 %v4782_v61, %v5143_v16  ;;  %v2709_v18 = vmul.f32 %v4865_v47, %v5204_v27 }
 0x17f   : > { %v2820_v55 = vadd.f32 %v2804_v56, %v2772_v40  ;;  %v2629_v15 = vadd.f32 %v2613_v36, %v2580_v46  ;;  %v2101_v58 = vadd.f32 %v5672_v48, %v5671_v2  ;;  %v2517_v19 = vmul.f32 %v4806_v60, %v5177_v26 }
 0x180   : > { %v2485_v41 = vadd.f32 %v2469_v37, %v2437_v3  ;;  %v2293_v42 = vadd.f32 %v2277_v4, %v2245_v28  ;;  %v2325_v0 = vmul.f32 %v4795_v23, %v5153_v6  ;;  %v2757_v59 = vmul.f32 %v4882_v44, %v5211_v13 }
 0x181   : > { %2987 = vst.msk [vmem:[%s4428_s22 + $0xb0] sm:$0xff] %vm192_vm0, %v2820_v55  ;;  %v2677_v16 = vadd.f32 %v2661_v43, %v2629_v15  ;;  %v2150_v35 = vadd.f32 %v5673_v32, %v2101_v58  ;;  %v2182_v54 = vmul.f32 %v3077_v21, %v4757_v34  ;;  %v2565_v63 = vmul.f32 %v4825_v22, %v5185_v12  ;;  %v5674_v15 = vld [vmem:[#allocation73_spill] sm:$0xff] }
 0x182   : > { %v2533_v29 = vadd.f32 %v2517_v19, %v2485_v41  ;;  %v2341_v20 = vadd.f32 %v2325_v0, %v2293_v42  ;;  %v2374_v6 = vmul.f32 %v4815_v57, %v2597_v33  ;;  %v2805_v30 = vmul.f32 %v4894_v39, %v5221_v62  ;;  %v5245_v33 = vld [vmem:[#allocation2 + $0x183] sm:$0xff]  ;;  %v3078_v32 = vld [vmem:[#allocation2 + $0x171] sm:$0xff] }
 0x183   : > { %v2725_v17 = vadd.f32 %v2709_v18, %v2677_v16  ;;  %v2198_v56 = vadd.f32 %v2182_v54, %v2150_v35  ;;  %v2230_v11 = vmul.f32 %v4770_v8, %v5170_v49  ;;  %v2614_v7 = vmul.f32 %v4842_v5, %v2598_v9  ;;  %v5675_v18 = vld [vmem:[#allocation70_spill] sm:$0xff]  ;;  %v2599_v19 = vld [vmem:[#allocation2 + $0x188] sm:$0xff] }
 0x184   : > { %v2581_v38 = vadd.f32 %v2565_v63, %v2533_v29  ;;  %v2390_v24 = vadd.f32 %v2374_v6, %v2341_v20  ;;  %v2422_v14 = vmul.f32 %v4834_v1, %v2645_v45  ;;  %v2662_v40 = vmul.f32 %v4848_v25, %v2646_v10  ;;  %v5253_v45 = vld [vmem:[#allocation2 + $0x184] sm:$0xff] }
 0x185   : > { %v2773_v53 = vadd.f32 %v2757_v59, %v2725_v17  ;;  %v2246_v46 = vadd.f32 %v2230_v11, %v2198_v56  ;;  %v2278_v36 = vmul.f32 %v4782_v61, %v5177_v26  ;;  %v2710_v49 = vmul.f32 %v4865_v47, %v5238_v50  ;;  %v2647_v42 = vld [vmem:[#allocation2 + $0x189] sm:$0xff]  ;;  %v5676_v59 = vld [vmem:[#allocation78_spill] sm:$0xff] }
 0x186   : > { %v2630_v43 = vadd.f32 %v2614_v7, %v2581_v38  ;;  %v2438_v3 = vadd.f32 %v2422_v14, %v2390_v24  ;;  %v2470_v37 = vmul.f32 %v4856_v52, %v5204_v27  ;;  %v2326_v55 = vmul.f32 %v4795_v23, %v5185_v12  ;;  %v5272_v20 = vld [vmem:[#allocation2 + $0x18a] sm:$0xff] }
 0x187   : > { %v2821_v28 = vadd.f32 %v2805_v30, %v2773_v53  ;;  %v2294_v4 = vadd.f32 %v2278_v36, %v2246_v46  ;;  %v2102_v2 = vadd.f32 %v5675_v18, %v5674_v15  ;;  %v2758_v26 = vmul.f32 %v4882_v44, %v5245_v33  ;;  %v5279_v24 = vld [vmem:[#allocation2 + $0x18b] sm:$0xff] }
 0x188   : > { %v2678_v48 = vadd.f32 %v2662_v40, %v2630_v43  ;;  %v2486_v58 = vadd.f32 %v2470_v37, %v2438_v3  ;;  %v2518_v41 = vmul.f32 %v4806_v60, %v5211_v13  ;;  %v2375_v16 = vmul.f32 %v4815_v57, %v2598_v9  ;;  %v5677_v43 = vld [vmem:[#allocation77_spill] sm:$0xff] }
 0x189   : > { %2988 = vst.msk [vmem:[%s4428_s22 + $0xb8] sm:$0xff] %vm192_vm0, %v2821_v28  ;;  %v2342_v0 = vadd.f32 %v2326_v55, %v2294_v4  ;;  %v2151_v12 = vadd.f32 %v5676_v59, %v2102_v2  ;;  %v2183_v35 = vmul.f32 %v3078_v32, %v4757_v34  ;;  %v2806_v54 = vmul.f32 %v4894_v39, %v5253_v45  ;;  %v5289_v37 = vld [vmem:[#allocation2 + $0x18c] sm:$0xff]  ;;  %v2600_v2 = vld [vmem:[#allocation2 + $0x198] sm:$0xff] }
 0x18a   : > { %v2726_v21 = vadd.f32 %v2710_v49, %v2678_v48  ;;  %v2534_v29 = vadd.f32 %v2518_v41, %v2486_v58  ;;  %v2566_v63 = vmul.f32 %v4825_v22, %v5221_v62  ;;  %v2423_v17 = vmul.f32 %v4834_v1, %v2646_v10  ;;  %v5678_v49 = vld [vmem:[#allocation75_spill] sm:$0xff] }
 0x18b   : > { %v2391_v6 = vadd.f32 %v2375_v16, %v2342_v0  ;;  %v2199_v30 = vadd.f32 %v2183_v35, %v2151_v12  ;;  %v2231_v9 = vmul.f32 %v4770_v8, %v5204_v27  ;;  %v2615_v38 = vmul.f32 %v4842_v5, %v2599_v19  ;;  %v5679_v48 = vld [vmem:[#allocation79_spill] sm:$0xff] }
 0x18c   : > { %v2774_v56 = vadd.f32 %v2758_v26, %v2726_v21  ;;  %v2582_v11 = vadd.f32 %v2566_v63, %v2534_v29  ;;  %v2663_v7 = vmul.f32 %v4848_v25, %v2647_v42  ;;  %v2471_v53 = vmul.f32 %v4856_v52, %v5238_v50  ;;  %v3079_v58 = vld [vmem:[#allocation2 + $0x181] sm:$0xff]  ;;  %v2648_v59 = vld [vmem:[#allocation2 + $0x199] sm:$0xff] }
 0x18d   : > { %v2439_v14 = vadd.f32 %v2423_v17, %v2391_v6  ;;  %v2247_v40 = vadd.f32 %v2231_v9, %v2199_v30  ;;  %v2279_v10 = vmul.f32 %v4782_v61, %v5211_v13  ;;  %v2711_v27 = vmul.f32 %v4865_v47, %v5272_v20  ;;  %v5306_v21 = vld [vmem:[#allocation2 + $0x19a] sm:$0xff] }
 0x18e   : > { %v2822_v46 = vadd.f32 %v2806_v54, %v2774_v56  ;;  %v2631_v36 = vadd.f32 %v2615_v38, %v2582_v11  ;;  %v2103_v3 = vadd.f32 %v5678_v49, %v5677_v43  ;;  %v2519_v4 = vmul.f32 %v4806_v60, %v5245_v33  ;;  %v2601_v49 = vld [vmem:[#allocation2 + $0x1a0] sm:$0xff] }
 0x18f   : > { %v2487_v28 = vadd.f32 %v2471_v53, %v2439_v14  ;;  %v2295_v55 = vadd.f32 %v2279_v10, %v2247_v40  ;;  %v2327_v15 = vmul.f32 %v4795_v23, %v5221_v62  ;;  %v2759_v18 = vmul.f32 %v4882_v44, %v5279_v24  ;;  %v5680_v10 = vld [vmem:[#allocation81_spill] sm:$0xff] }
 0x190   : > { %2989 = vst.msk [vmem:[%s4428_s22 + $0xc0] sm:$0xff] %vm192_vm0, %v2822_v46  ;;  %v2679_v13 = vadd.f32 %v2663_v7, %v2631_v36  ;;  %v2152_v26 = vadd.f32 %v5679_v48, %v2103_v3  ;;  %v2184_v41 = vmul.f32 %v3079_v58, %v4757_v34  ;;  %v2567_v16 = vmul.f32 %v4825_v22, %v5253_v45  ;;  %v5681_v46 = vld [vmem:[#allocation76_spill] sm:$0xff] }
 0x191   : > { %v2535_v0 = vadd.f32 %v2519_v4, %v2487_v28  ;;  %v2343_v12 = vadd.f32 %v2327_v15, %v2295_v55  ;;  %v2376_v62 = vmul.f32 %v4815_v57, %v2599_v19  ;;  %v2807_v35 = vmul.f32 %v4894_v39, %v5289_v37  ;;  %v5313_v19 = vld [vmem:[#allocation2 + $0x19b] sm:$0xff]  ;;  %v5682_v55 = vld [vmem:[#allocation84_spill] sm:$0xff] }
 0x192   : > { %v2727_v32 = vadd.f32 %v2711_v27, %v2679_v13  ;;  %v2200_v54 = vadd.f32 %v2184_v41, %v2152_v26  ;;  %v2232_v29 = vmul.f32 %v4770_v8, %v5238_v50  ;;  %v2616_v34 = vmul.f32 %v4842_v5, %v2600_v2  ;;  %v2649_v3 = vld [vmem:[#allocation2 + $0x1a1] sm:$0xff]  ;;  %v3081_v15 = vld [vmem:[#allocation2 + $0x189] sm:$0xff] }
 0x193   : > { %v2583_v63 = vadd.f32 %v2567_v16, %v2535_v0  ;;  %v2392_v6 = vadd.f32 %v2376_v62, %v2343_v12  ;;  %v2424_v17 = vmul.f32 %v4834_v1, %v2647_v42  ;;  %v2664_v9 = vmul.f32 %v4848_v25, %v2648_v59  ;;  %v5321_v42 = vld [vmem:[#allocation2 + $0x19c] sm:$0xff]  ;;  %v5351_v0 = vld [vmem:[%s5517_s1 + $0xc] ss:$0 sm:$0xff] }
 0x194   : > { %v2775_v30 = vadd.f32 %v2759_v18, %v2727_v32  ;;  %v2248_v56 = vadd.f32 %v2232_v29, %v2200_v54  ;;  %v2280_v11 = vmul.f32 %v4782_v61, %v5245_v33  ;;  %v2712_v8 = vmul.f32 %v4865_v47, %v5306_v21  ;;  %v5345_v58 = vld [vmem:[#allocation2 + $0x1a2] sm:$0xff] }
 0x195   : > { %v2632_v38 = vadd.f32 %v2616_v34, %v2583_v63  ;;  %v2440_v50 = vadd.f32 %v2424_v17, %v2392_v6  ;;  %v2472_v7 = vmul.f32 %v4856_v52, %v5272_v20  ;;  %v2328_v40 = vmul.f32 %v4795_v23, %v5253_v45  ;;  %v5338_v45 = vld [vmem:[%s5517_s1 + $0xb] ss:$0 sm:$0xff]  ;;  %v5357_v54 = vld [vmem:[#allocation2 + $0x1a3] sm:$0xff]  ;;  %v5364_v63 = vld [vmem:[%s5517_s1 + $0xd] ss:$0 sm:$0xff] }
 0x196   : > { %v2823_v14 = vadd.f32 %v2807_v35, %v2775_v30  ;;  %v2296_v53 = vadd.f32 %v2280_v11, %v2248_v56  ;;  %v2104_v36 = vadd.f32 %v5681_v46, %v5680_v10  ;;  %v2760_v61 = vmul.f32 %v4882_v44, %v5313_v19  ;;  %v2170_v35 = vld [vmem:[#allocation2 + $0x199] sm:$0xff]  ;;  %v5372_v30 = vld [vmem:[#allocation2 + $0x1a4] sm:$0xff]  ;;  %v5384_v11 = vld [vmem:[%s5517_s1 + $0xe] ss:$0 sm:$0xff] }
 0x197   : > { %v2680_v27 = vadd.f32 %v2664_v9, %v2632_v38  ;;  %v2488_v33 = vadd.f32 %v2472_v7, %v2440_v50  ;;  %v2520_v43 = vmul.f32 %v4806_v60, %v5279_v24  ;;  %v2377_v4 = vmul.f32 %v4815_v57, %v2600_v2  ;;  %v5683_v6 = vld [vmem:[#allocation82_spill] sm:$0xff]  ;;  %v5377_v9 = vld [vmem:[%s5517_s1 + $0x12] ss:$0 sm:$0xff] }
 0x198   : > { %2990 = vst.msk [vmem:[%s4428_s22 + $0xc8] sm:$0xff] %vm192_vm0, %v2823_v14  ;;  %v2344_v28 = vadd.f32 %v2328_v40, %v2296_v53  ;;  %v2153_v23 = vadd.f32 %v5682_v55, %v2104_v36  ;;  %v2185_v13 = vmul.f32 %v3081_v15, %v5338_v45  ;;  %v2808_v60 = vmul.f32 %v4894_v39, %v5321_v42  ;;  %v5684_v50 = vld [vmem:[#allocation85_spill] sm:$0xff] }
 0x199   : > { %v2728_v18 = vadd.f32 %v2712_v8, %v2680_v27  ;;  %v2536_v48 = vadd.f32 %v2520_v43, %v2488_v33  ;;  %v2568_v26 = vmul.f32 %v4825_v22, %v5289_v37  ;;  %v2425_v2 = vmul.f32 %v4834_v1, %v2648_v59  ;;  %v2602_v8 = vld [vmem:[#allocation2 + $0x1b0] sm:$0xff] }
 0x19a   : > { %v2393_v57 = vadd.f32 %v2377_v4, %v2344_v28  ;;  %v2201_v41 = vadd.f32 %v2185_v13, %v2153_v23  ;;  %v2233_v16 = vmul.f32 %v5351_v0, %v5272_v20  ;;  %v2617_v32 = vmul.f32 %v4842_v5, %v2601_v49  ;;  %v5397_v40 = vld [vmem:[%s5517_s1 + $0x13] ss:$0 sm:$0xff]  ;;  %v5414_v4 = vld [vmem:[%s5517_s1 + $0x14] ss:$0 sm:$0xff] }
 0x19b   : > { %v2776_v12 = vadd.f32 %v2760_v61, %v2728_v18  ;;  %v2584_v62 = vadd.f32 %v2568_v26, %v2536_v48  ;;  %v2665_v22 = vmul.f32 %v4848_v25, %v2649_v3  ;;  %v2473_v1 = vmul.f32 %v4856_v52, %v5306_v21  ;;  %v2650_v10 = vld [vmem:[#allocation2 + $0x1b1] sm:$0xff]  ;;  %v2171_v26 = vld [vmem:[#allocation2 + $0x1a1] sm:$0xff] }
 0x19c   : > { %v2441_v29 = vadd.f32 %v2425_v2, %v2393_v57  ;;  %v2249_v59 = vadd.f32 %v2233_v16, %v2201_v41  ;;  %v2281_v20 = vmul.f32 %v5364_v63, %v5279_v24  ;;  %v2713_v25 = vmul.f32 %v4865_v47, %v5345_v58  ;;  %v2698_v18 = vld [vmem:[#allocation2 + $0x1b2] sm:$0xff] }
 0x19d   : > { %v2824_v5 = vadd.f32 %v2808_v60, %v2776_v12  ;;  %v2633_v34 = vadd.f32 %v2617_v32, %v2584_v62  ;;  %v2105_v17 = vadd.f32 %v5683_v6, %v4499_v51  ;;  %v2521_v56 = vmul.f32 %v5377_v9, %v5313_v19  ;;  %v2746_v62 = vld [vmem:[#allocation2 + $0x1b3] sm:$0xff] }
 0x19e   : > { %v2489_v52 = vadd.f32 %v2473_v1, %v2441_v29  ;;  %v2297_v24 = vadd.f32 %v2281_v20, %v2249_v59  ;;  %v2329_v51 = vmul.f32 %v5384_v11, %v5289_v37  ;;  %v2761_v38 = vmul.f32 %v4882_v44, %v5357_v54  ;;  %v5404_v44 = vld [vmem:[%s5517_s1 + $0xf] ss:$0 sm:$0xff]  ;;  %v5446_v1 = vld [vmem:[%s5517_s1 + $0x16] ss:$0 sm:$0xff]  ;;  %v5686_v6 = vld [vmem:[#allocation86_spill] sm:$0xff] }
 0x19f   : > { %2991 = vst.msk [vmem:[%s4428_s22 + $0xd0] sm:$0xff] %vm192_vm0, %v2824_v5  ;;  %v2681_v47 = vadd.f32 %v2665_v22, %v2633_v34  ;;  %v2154_v7 = vadd.f32 %v5684_v50, %v2105_v17  ;;  %v2186_v14 = vmul.f32 %v5338_v45, %v2170_v35  ;;  %v2569_v37 = vmul.f32 %v5397_v40, %v5321_v42  ;;  %v5685_v22 = vld [vmem:[#allocation83_spill] sm:$0xff]  ;;  %v2794_v5 = vld [vmem:[#allocation2 + $0x1b4] sm:$0xff] }
 0x1a0   : > { %v2537_v53 = vadd.f32 %v2521_v56, %v2489_v52  ;;  %v2345_v46 = vadd.f32 %v2329_v51, %v2297_v24  ;;  %v2378_v36 = vmul.f32 %v5404_v44, %v2601_v49  ;;  %v2809_v61 = vmul.f32 %v4894_v39, %v5372_v30  ;;  %v5420_v49 = vld [vmem:[%s5517_s1 + $0x10] ss:$0 sm:$0xff]  ;;  %v2603_v34 = vld [vmem:[#allocation2 + $0x1b8] sm:$0xff]  ;;  %v5458_v56 = vld [vmem:[%s5517_s1 + $0x17] ss:$0 sm:$0xff] }
 0x1a1   : > { %v2729_v27 = vadd.f32 %v2713_v25, %v2681_v47  ;;  %v2202_v33 = vadd.f32 %v2186_v14, %v2154_v7  ;;  %v2234_v43 = vmul.f32 %v5351_v0, %v5306_v21  ;;  %v2618_v55 = vmul.f32 %v5414_v4, %v2602_v8  ;;  %v5426_v21 = vld [vmem:[%s5517_s1 + $0x15] ss:$0 sm:$0xff] }
 0x1a2   : > { %v2585_v28 = vadd.f32 %v2569_v37, %v2537_v53  ;;  %v2394_v23 = vadd.f32 %v2378_v36, %v2345_v46  ;;  %v2426_v39 = vmul.f32 %v5420_v49, %v2649_v3  ;;  %v2666_v13 = vmul.f32 %v5426_v21, %v2650_v10  ;;  %v5434_v3 = vld [vmem:[%s5517_s1 + $0x11] ss:$0 sm:$0xff]  ;;  %v5469_v53 = vld [vmem:[%s5517_s1 + $0x18] ss:$0 sm:$0xff] }
 0x1a3   : > { %v2777_v15 = vadd.f32 %v2761_v38, %v2729_v27  ;;  %v2250_v60 = vadd.f32 %v2234_v43, %v2202_v33  ;;  %v2282_v48 = vmul.f32 %v5364_v63, %v5313_v19  ;;  %v2474_v41 = vmul.f32 %v5434_v3, %v5345_v58  ;;  %v2651_v38 = vld [vmem:[#allocation2 + $0x1b9] sm:$0xff] }
 0x1a4   : > { %v2634_v57 = vadd.f32 %v2618_v55, %v2585_v28  ;;  %v2442_v2 = vadd.f32 %v2426_v39, %v2394_v23  ;;  %v2330_v16 = vmul.f32 %v5384_v11, %v5321_v42  ;;  %v2379_v19 = vmul.f32 %v5404_v44, %v2602_v8  ;;  %v2699_v27 = vld [vmem:[#allocation2 + $0x1ba] sm:$0xff]  ;;  %v2604_v23 = vld [vmem:[#allocation2 + $0x1c8] sm:$0xff] }
 0x1a5   : > { %v2825_v12 = vadd.f32 %v2809_v61, %v2777_v15  ;;  %v2298_v32 = vadd.f32 %v2282_v48, %v2250_v60  ;;  %v2106_v35 = vadd.f32 %v5685_v22, %v4696_v31  ;;  %v2714_v59 = vmul.f32 %v5446_v1, %v2698_v18  ;;  %v2747_v39 = vld [vmem:[#allocation2 + $0x1bb] sm:$0xff]  ;;  %v2700_v22 = vld [vmem:[#allocation2 + $0x1ca] sm:$0xff] }
 0x1a6   : > { %v2682_v29 = vadd.f32 %v2666_v13, %v2634_v57  ;;  %v2490_v20 = vadd.f32 %v2474_v41, %v2442_v2  ;;  %v2522_v42 = vmul.f32 %v5377_v9, %v5357_v54  ;;  %v2187_v31 = vmul.f32 %v5338_v45, %v2171_v26 }
 0x1a7   : > { %2992 = vst.msk [vmem:[%s4428_s22 + $0xd8] sm:$0xff] %vm192_vm0, %v2825_v12  ;;  %v2346_v25 = vadd.f32 %v2330_v16, %v2298_v32  ;;  %v2155_v17 = vadd.f32 %v5686_v6, %v2106_v35  ;;  %v2762_v24 = vmul.f32 %v5458_v56, %v2746_v62  ;;  %v2570_v47 = vmul.f32 %v5397_v40, %v5372_v30 }
 0x1a8   : > { %v2730_v52 = vadd.f32 %v2714_v59, %v2682_v29  ;;  %v2538_v51 = vadd.f32 %v2522_v42, %v2490_v20  ;;  %v2427_v50 = vmul.f32 %v5420_v49, %v2650_v10  ;;  %v2235_v45 = vmul.f32 %v5351_v0, %v5345_v58  ;;  %v2748_v59 = vld [vmem:[#allocation2 + $0x1cb] sm:$0xff] }
 0x1a9   : > { %v2395_v8 = vadd.f32 %v2379_v19, %v2346_v25  ;;  %v2203_v7 = vadd.f32 %v2187_v31, %v2155_v17  ;;  %v2810_v37 = vmul.f32 %v5469_v53, %v2794_v5  ;;  %v2619_v36 = vmul.f32 %v5414_v4, %v2603_v34 }
 0x1aa   : > { %v2778_v14 = vadd.f32 %v2762_v24, %v2730_v52  ;;  %v2586_v46 = vadd.f32 %v2570_v47, %v2538_v51  ;;  %v2475_v10 = vmul.f32 %v5434_v3, %v2698_v18  ;;  %v2283_v58 = vmul.f32 %v5364_v63, %v5357_v54  ;;  %v2795_v63 = vld [vmem:[#allocation2 + $0x1bc] sm:$0xff]  ;;  %v2796_v52 = vld [vmem:[#allocation2 + $0x1cc] sm:$0xff] }
 0x1ab   : > { %v2443_v61 = vadd.f32 %v2427_v50, %v2395_v8  ;;  %v2251_v33 = vadd.f32 %v2235_v45, %v2203_v7  ;;  %v2667_v28 = vmul.f32 %v5426_v21, %v2651_v38  ;;  %v2523_v55 = vmul.f32 %v5377_v9, %v2746_v62  ;;  %v2652_v62 = vld [vmem:[#allocation2 + $0x1c9] sm:$0xff]  ;;  %v2701_v45 = vld [vmem:[#allocation2 + $0x1d2] sm:$0xff] }
 0x1ac   : > { %v2826_v0 = vadd.f32 %v2810_v37, %v2778_v14  ;;  %v2635_v43 = vadd.f32 %v2619_v36, %v2586_v46  ;;  %v2331_v60 = vmul.f32 %v5384_v11, %v5372_v30  ;;  %v2380_v48 = vmul.f32 %v5404_v44, %v2603_v34  ;;  %v2605_v34 = vld [vmem:[#allocation2 + $0x1d0] sm:$0xff] }
 0x1ad   : > { %v2491_v15 = vadd.f32 %v2475_v10, %v2443_v61  ;;  %v2299_v13 = vadd.f32 %v2283_v58, %v2251_v33  ;;  %v2715_v54 = vmul.f32 %v5446_v1, %v2699_v27  ;;  %v2571_v57 = vmul.f32 %v5397_v40, %v2794_v5  ;;  %v2749_v46 = vld [vmem:[#allocation2 + $0x1d3] sm:$0xff] }
 0x1ae   : > { %2993 = vst.msk [vmem:[%s4428_s22 + $0xe0] sm:$0xff] %vm192_vm0, %v2826_v0  ;;  %v2683_v18 = vadd.f32 %v2667_v28, %v2635_v43  ;;  %v2620_v2 = vmul.f32 %v5414_v4, %v2604_v23  ;;  %v2763_v12 = vmul.f32 %v5458_v56, %v2747_v39  ;;  %v2428_v11 = vmul.f32 %v5420_v49, %v2651_v38  ;;  %v2653_v38 = vld [vmem:[#allocation2 + $0x1d1] sm:$0xff] }
 0x1af   : > { %v2539_v26 = vadd.f32 %v2523_v55, %v2491_v15  ;;  %v2347_v41 = vadd.f32 %v2331_v60, %v2299_v13  ;;  %v2811_v19 = vmul.f32 %v5469_v53, %v2795_v63  ;;  %v2668_v29 = vmul.f32 %v5426_v21, %v2652_v62 }
 0x1b0   : > { %v2731_v16 = vadd.f32 %v2715_v54, %v2683_v18  ;;  %v2476_v42 = vmul.f32 %v5434_v3, %v2699_v27  ;;  %v2716_v6 = vmul.f32 %v5446_v1, %v2700_v22  ;;  %v2524_v31 = vmul.f32 %v5377_v9, %v2747_v39 }
 0x1b1   : > { %v2587_v32 = vadd.f32 %v2571_v57, %v2539_v26  ;;  %v2396_v30 = vadd.f32 %v2380_v48, %v2347_v41  ;;  %v2764_v49 = vmul.f32 %v5458_v56, %v2748_v59  ;;  %v2572_v47 = vmul.f32 %v5397_v40, %v2795_v63  ;;  %v2797_v40 = vld [vmem:[#allocation2 + $0x1d4] sm:$0xff] }
 0x1b2   : > { %v2779_v44 = vadd.f32 %v2763_v12, %v2731_v16  ;;  %v2621_v3 = vmul.f32 %v5414_v4, %v2605_v34  ;;  %v2812_v50 = vmul.f32 %v5469_v53, %v2796_v52  ;;  %v2669_v37 = vmul.f32 %v5426_v21, %v2653_v38 }
 0x1b3   : > { %v2636_v35 = vadd.f32 %v2620_v2, %v2587_v32  ;;  %v2444_v20 = vadd.f32 %v2428_v11, %v2396_v30  ;;  %v2717_v27 = vmul.f32 %v5446_v1, %v2701_v45  ;;  %v2765_v4 = vmul.f32 %v5458_v56, %v2749_v46 }
 0x1b4   : > { %v2827_v5 = vadd.f32 %v2811_v19, %v2779_v44  ;;  %v2813_v33 = vmul.f32 %v5469_v53, %v2797_v40 }
 0x1b5   : > { %v2684_v25 = vadd.f32 %v2668_v29, %v2636_v35  ;;  %v2492_v17 = vadd.f32 %v2476_v42, %v2444_v20 }
 0x1b6   : > { %2994 = vst.msk [vmem:[%s4428_s22 + $0xe8] sm:$0xff] %vm192_vm0, %v2827_v5 }
 0x1b7   : > { %v2732_v24 = vadd.f32 %v2716_v6, %v2684_v25  ;;  %v2540_v51 = vadd.f32 %v2524_v31, %v2492_v17 }
 0x1b9   : > { %v2780_v8 = vadd.f32 %v2764_v49, %v2732_v24  ;;  %v2588_v7 = vadd.f32 %v2572_v47, %v2540_v51 }
 0x1bb   : > { %v2828_v9 = vadd.f32 %v2812_v50, %v2780_v8  ;;  %v2637_v14 = vadd.f32 %v2621_v3, %v2588_v7 }
 0x1bd   : > { %2995 = vst.msk [vmem:[%s4428_s22 + $0xf0] sm:$0xff] %vm192_vm0, %v2828_v9  ;;  %v2685_v36 = vadd.f32 %v2669_v37, %v2637_v14 }
 0x1bf   : > { %v2733_v61 = vadd.f32 %v2717_v27, %v2685_v36 }
 0x1c1   : > { %v2781_v10 = vadd.f32 %v2765_v4, %v2733_v61 }
 0x1c3   : > { %v2829_v58 = vadd.f32 %v2813_v33, %v2781_v10 }
 0x1c5   : > { %2996 = vst.msk [vmem:[%s4428_s22 + $0xf8] sm:$0xff] %vm192_vm0, %v2829_v58 }
 0x1c6 PF: > { %s12_s11 = sadd.s32 1, %s3117_s11   ;;  %s5687_s9 = smov %s3113_s10 }
 0x1c7   : > { %p9_p5 = scmp.ge.s32.totalorder %s12_s11, 4   ;;  %s5688_s10 = smov %s5690_s12 }
 0x1c9   :  { %11 = sbr.rel (!%p9_p5) target bundleno = 2 (0x2), region = 72 }

</bundles_post_ra>
